<compile_context>
chip_gen: v5e
topology: v5e:2x2
jax: 0.10.0
libtpu: 0.0.40
codegen_flags: <defaults>
</compile_context>

<pallas_src>
import functools

import jax
import jax.numpy as jnp
from jax.experimental import pallas as pl
from jax.experimental.pallas import tpu as pltpu


LEAKY_SLOPE = 0.2   # get_activation('leakyrelu') -> nn.LeakyReLU(0.2)
LANE = 128          # pad every matmul N (out-channel) dim to lane width -> unmasked vst


# ----------------------------------------------------------------------------- utils

def _round_up(x, m):
    return ((x + m - 1) // m) * m


def _vmem_limit_bytes(block_bytes):
    """Generation-aware scoped-VMEM limit: never below the 32 MiB default, at least 2x the
    estimated live blocks, and well under physical capacity (64 MiB v7x / 128 MiB v5e,v6e)."""
    try:
        cap = int(getattr(pltpu.get_tpu_info(), "vmem_capacity_bytes", 64 * 2 ** 20))
    except Exception:  # robust fallback if the query is unavailable on this backend
        cap = 64 * 2 ** 20
    return int(min(cap * 3 // 4, max(32 * 2 ** 20, 2 * block_bytes)))


def bn_fold(gamma, beta, mean, var, bias=None, eps=1e-5):
    """Fold (conv bias) + eval-mode BatchNorm into a per-channel (scale, shift)."""
    inv = gamma / jnp.sqrt(var + eps)
    b = jnp.zeros_like(mean) if bias is None else bias
    return inv, (b - mean) * inv + beta


def conv_w_stack(w, scale):
    """torch Conv3d weight [Cout, Cin, kd, kh, 1] -> per-tap stack [kd*kh, Cin, Cout] with the
    folded BatchNorm scale baked into the weight (kernel epilogue becomes add-only)."""
    co, ci, kd, kh, kw = w.shape
    assert kw == 1, "DecD convs have kw == 1"
    ws = jnp.transpose(w[..., 0], (2, 3, 1, 0)).reshape(kd * kh, ci, co)
    return ws * scale[None, None, :]


# 4x4 stride-2 conv over (D,H): 4 stride-1 phases (d-parity*2 + h-parity), 16 taps.
CONV1_POSITIONS = tuple(((i % 2) * 2 + (j % 2), i // 2, j // 2)
                        for i in range(4) for j in range(4))
# 3x3 stride-1 "same" conv over (D,H) on plane 0 + the 1x1x1 bypass conv on plane 1.
CONV2_POSITIONS = tuple((0, i, j) for i in range(3) for j in range(3)) + ((1, 1, 1),)


# ----------------------------------------------------------------------------- Pallas kernel

def _dhconv_kernel(x_ref, w_ref, sh_ref, o_ref, *, flat_pos, out_d, out_h, slope):
    """Fused direct (D,H) conv for one (batch, w) image.

    x_ref : [P*Dp, Hp, C]     bf16  stacked input planes (spatially padded in the wrapper)
    w_ref : [npos, C, Np]     bf16  per-tap weights, BN scale pre-folded
    sh_ref: [1, Np]           f32   per-image shift (bias*scale + BN shift (+ class proj))
    o_ref : [out_d*out_h, Np] bf16  output rows

    o = leakyrelu( sum_p  x[r0_p : r0_p+out_d, c0_p : c0_p+out_h, :] @ w[p]  + shift )
    """
    n_out = o_ref.shape[-1]
    acc = jnp.zeros((out_d * out_h, n_out), jnp.float32)
    for p, (r0, c0) in enumerate(flat_pos):
        a = x_ref[r0:r0 + out_d, c0:c0 + out_h, :]
        a = a.reshape(out_d * out_h, a.shape[-1])
        acc = acc + jnp.dot(a, w_ref[p], preferred_element_type=jnp.float32)
    y = acc + sh_ref[...]
    if slope is not None:
        y = jnp.where(y >= 0.0, y, slope * y)
    o_ref[...] = y.astype(o_ref.dtype)


def dhconv(x_planes, w_stack, shift, w_per_img, positions, out_d, out_h,
           slope=LEAKY_SLOPE, out_dtype=jnp.bfloat16):
    """x_planes: [G, P, Dp, Hp, C]  (G = B * w_per_img independent (batch, w) images),
       w_stack : [npos, C, Nout]    (BN scale folded into the weights),
       shift   : [B, Nout]          f32 additive shift per batch element.
       Returns act(direct_conv(...)): [G, out_d, out_h, Nout_padded_to_128]."""
    G, P, Dp, Hp, C = x_planes.shape
    npos, C2, Nout = w_stack.shape
    assert C2 == C and npos == len(positions) and G % w_per_img == 0
    B = G // w_per_img

    n_pad = _round_up(Nout, LANE)                       # lane-dense, unmasked output stores
    if n_pad != Nout:
        w_stack = jnp.pad(w_stack, ((0, 0), (0, 0), (0, n_pad - Nout)))
        shift = jnp.pad(shift, ((0, 0), (0, n_pad - Nout)))

    x_flat = x_planes.astype(jnp.bfloat16).reshape(G, P * Dp, Hp, C)
    w_stack = w_stack.astype(jnp.bfloat16)
    # per-image shift (class projection already folded in per batch element)
    shift_img = jnp.broadcast_to(shift.astype(jnp.float32)[:, None, :],
                                 (B, w_per_img, n_pad)).reshape(G, 1, n_pad)
    flat_pos = tuple((ph * Dp + di, dj) for (ph, di, dj) in positions)

    s_rows = out_d * out_h
    blk_bytes = (2 * P * Dp * Hp * C * 2          # double-buffered input planes
                 + 2 * npos * C * n_pad * 2       # resident weight stack
                 + 2 * s_rows * n_pad * 2         # output block
                 + s_rows * n_pad * 4             # f32 accumulator
                 + 2 * s_rows * C * 4)            # per-tap slice temporaries
    cost = pl.CostEstimate(
        flops=2 * G * npos * s_rows * C * n_pad,
        transcendentals=0,
        bytes_accessed=(G * P * Dp * Hp * C * 2 + npos * C * n_pad * 2
                        + G * s_rows * n_pad * 2 + G * n_pad * 4))

    out = pl.pallas_call(
        functools.partial(_dhconv_kernel, flat_pos=flat_pos,
                          out_d=out_d, out_h=out_h, slope=slope),
        out_shape=jax.ShapeDtypeStruct((G, s_rows, n_pad), out_dtype),
        grid_spec=pltpu.PrefetchScalarGridSpec(
            num_scalar_prefetch=0,
            grid=(G,),
            in_specs=[
                pl.BlockSpec((None, P * Dp, Hp, C), lambda g: (g, 0, 0, 0)),
                pl.BlockSpec((npos, C, n_pad), lambda g: (0, 0, 0)),   # constant -> resident
                pl.BlockSpec((None, 1, n_pad), lambda g: (g, 0, 0)),
            ],
            out_specs=pl.BlockSpec((None, s_rows, n_pad), lambda g: (g, 0, 0)),
        ),
        compiler_params=pltpu.CompilerParams(
            dimension_semantics=("parallel",),
            vmem_limit_bytes=_vmem_limit_bytes(blk_bytes)),
        cost_estimate=cost,
    )(x_flat, w_stack, shift_img)
    return out.reshape(G, out_d, out_h, n_pad)


# ----------------------------------------------------------------------------- JAX glue

def temporal_shift(x, nth_channel, n_shifts):
    """TSM-style zero-padded channel-group shift along the temporal axis (W, axis 1)."""
    B, W, D, H, C = x.shape
    fold = max(C // nth_channel, 1)

    def shift_w(xg, s):
        if s > 0:
            return jnp.pad(xg, ((0, 0), (s, 0), (0, 0), (0, 0), (0, 0)))[:, :W]
        if s < 0:
            return jnp.pad(xg, ((0, 0), (0, -s), (0, 0), (0, 0), (0, 0)))[:, -s:]
        return xg

    parts, c = [], 0
    for s in range(1, n_shifts + 1):
        for sign in (+1, -1):
            if c + fold > C:
                break
            parts.append(shift_w(x[..., c:c + fold], sign * s))
            c += fold
    if c < C:
        parts.append(x[..., c:])
    return jnp.concatenate(parts, axis=-1)


def avg_pool_222(x):
    """AvgPool3d(2, stride=2, padding=0) over the (W, D, H) axes of [B, W, D, H, C]."""
    B, W, D, H, C = x.shape
    x = x.reshape(B, W // 2, 2, D // 2, 2, H // 2, 2, C).astype(jnp.float32)
    return x.mean(axis=(2, 4, 6)).astype(jnp.bfloat16)


# ----------------------------------------------------------------------------- model forward

def down_layer_forward(x, y_class, p, tsm_nth=4, tsm_n_shifts=2):
    """DownLayerResidual.  x: [B, W, D, H, C] bf16 -> [B, W/2, D/2, H/2, Cout] bf16."""
    B, W, D, H, C = x.shape
    assert D % 2 == 0 and H % 2 == 0 and W % 2 == 0, "even spatial dims required"
    Cout = p["bypass_w"].shape[0]
    D1, H1, W1 = D // 2, H // 2, W // 2
    G = B * W1

    # --- resid part 1: TSM -> Conv3d([4,4,1], s2, p[1,1,0], bias) -> BN1 -> leakyrelu (Pallas)
    xs = temporal_shift(x, tsm_nth, tsm_n_shifts)
    xw = xs[:, ::2]                                              # kw=1, stride_w=2 -> even W
    xw = jnp.pad(xw, ((0, 0), (0, 0), (1, 1), (1, 1), (0, 0)))   # zero-pad D,H by 1
    # phase-split the stride-2 (D,H) conv into 4 stride-1 phases -> [G, 4, D1+1, H1+1, C]
    xph = xw.reshape(B, W1, D1 + 1, 2, H1 + 1, 2, C)
    xph = jnp.transpose(xph, (0, 1, 3, 5, 2, 4, 6)).reshape(G, 4, D1 + 1, H1 + 1, C)
    sc1, sh1 = bn_fold(p["bn1_g"], p["bn1_b"], p["bn1_m"], p["bn1_v"], bias=p["conv1_b"])
    w1 = conv_w_stack(p["conv1_w"], sc1)                         # [16, C, C]
    h1 = dhconv(xph, w1, jnp.broadcast_to(sh1[None, :], (B, C)), W1,
                CONV1_POSITIONS, D1, H1, slope=LEAKY_SLOPE)      # [G, D1, H1, pad(C)]
    h1 = h1[..., :C]

    # --- fused: Conv3d([3,3,1], s1, p[1,1,0], bias) -> BN2  +  bypass(AvgPool+1x1x1 conv)
    #            +  class projection  -> leakyrelu            (single Pallas kernel)
    xp = avg_pool_222(x).reshape(G, D1, H1, C)                   # bypass pooled input
    planes = jnp.stack([jnp.pad(h1, ((0, 0), (1, 1), (1, 1), (0, 0))),
                        jnp.pad(xp, ((0, 0), (1, 1), (1, 1), (0, 0)))], axis=1)

    sc2, sh2 = bn_fold(p["bn2_g"], p["bn2_b"], p["bn2_m"], p["bn2_v"], bias=p["conv2_b"])
    scc, shc = bn_fold(p["bnc_g"], p["bnc_b"], p["bnc_m"], p["bnc_v"], bias=None)
    # proj_class (1x1x1 conv, no bias) + BN: tiny (M=B) -> XLA, folded into the per-image shift
    cls = jnp.dot(y_class.astype(jnp.float32),
                  p["projc_w"][:, :, 0, 0, 0].T.astype(jnp.float32)) * scc + shc   # [B, Cout]
    shift2 = sh2[None, :] + cls

    w2 = conv_w_stack(p["conv2_w"], sc2)                         # [9, C, Cout] (BN2 scale folded)
    wb = jnp.transpose(p["bypass_w"][:, :, 0, 0, 0], (1, 0))     # [C, Cout] bypass (no BN/scale)
    wstk = jnp.concatenate([w2, wb[None]], axis=0)               # [10, C, Cout]

    out = dhconv(planes, wstk, shift2, W1, CONV2_POSITIONS, D1, H1, slope=LEAKY_SLOPE)
    return out[..., :Cout].reshape(B, W1, D1, H1, Cout)


def decd_forward(x_in_ncdhw, y_in, params, noise_std=0.0, noise_key=None,
                 tsm_nth=4, tsm_n_shifts=2):
    """DecD.forward.  x_in: [B, C, D, H, W] (NCDHW, like PyTorch), y_in: [B, n_classes]."""
    x = jnp.transpose(x_in_ncdhw, (0, 4, 2, 3, 1)).astype(jnp.float32)   # -> [B, W, D, H, C]
    if noise_std > 0:
        x = x + noise_std * jax.random.normal(noise_key, x.shape, x.dtype)
    x = x.astype(jnp.bfloat16)   # activations flow bf16; matmul accum / epilogues stay f32
    for lp in params["layers"]:
        x = down_layer_forward(x, y_in, lp, tsm_nth=tsm_nth, tsm_n_shifts=tsm_n_shifts)
    B = x.shape[0]
    # match torch x.view(B, C * prod(imsize_compressed)): NCDHW flatten order
    feat = jnp.transpose(x, (0, 4, 2, 3, 1)).reshape(B, -1).astype(jnp.float32)
    # final Linear: M=B, N=1 -> tiny, left to XLA per perf review
    out = feat @ params["fc_w"].astype(jnp.float32).T + params["fc_b"].astype(jnp.float32)
    return jnp.squeeze(out)


# ----------------------------------------------------------------------------- init

def init_params(key, n_channels, conv_channels_list, n_classes, fc_in, n_classes_out, std=0.1):
    l_sizes = [n_channels] + list(conv_channels_list)
    keys = jax.random.split(key, len(conv_channels_list) + 1)
    layers = []
    for i, (ci, co) in enumerate(zip(l_sizes[:-1], l_sizes[1:])):
        k = jax.random.split(keys[i], 6)
        layers.append(dict(
            bypass_w=std * jax.random.normal(k[0], (co, ci, 1, 1, 1), jnp.float32),
            conv1_w=std * jax.random.normal(k[1], (ci, ci, 4, 4, 1), jnp.float32),
            conv1_b=std * jax.random.normal(k[2], (ci,), jnp.float32),
            bn1_g=jnp.ones((ci,), jnp.float32), bn1_b=jnp.zeros((ci,), jnp.float32),
            bn1_m=jnp.zeros((ci,), jnp.float32), bn1_v=jnp.ones((ci,), jnp.float32),
            conv2_w=std * jax.random.normal(k[3], (co, ci, 3, 3, 1), jnp.float32),
            conv2_b=std * jax.random.normal(k[4], (co,), jnp.float32),
            bn2_g=jnp.ones((co,), jnp.float32), bn2_b=jnp.zeros((co,), jnp.float32),
            bn2_m=jnp.zeros((co,), jnp.float32), bn2_v=jnp.ones((co,), jnp.float32),
            projc_w=std * jax.random.normal(k[5], (co, n_classes, 1, 1, 1), jnp.float32),
            bnc_g=jnp.ones((co,), jnp.float32), bnc_b=jnp.zeros((co,), jnp.float32),
            bnc_m=jnp.zeros((co,), jnp.float32), bnc_v=jnp.ones((co,), jnp.float32),
        ))
    kf = jax.random.split(keys[-1], 2)
    return dict(
        layers=layers,
        fc_w=std * jax.random.normal(kf[0], (n_classes_out, fc_in), jnp.float32),
        fc_b=std * jax.random.normal(kf[1], (n_classes_out,), jnp.float32),
    )


# ----------------------------------------------------------------------------- main

if __name__ == "__main__":
    key = jax.random.PRNGKey(0)
    kx, ky, kp = jax.random.split(key, 3)

    # small shapes consistent with the module (2 down layers, each halves D, H, W)
    B, n_channels, n_classes, n_classes_out = 2, 4, 3, 1
    conv_channels_list = [8, 16]
    D, H, W = 8, 8, 4
    n_layers = len(conv_channels_list)
    imsize_compressed = [D // 2 ** n_layers, H // 2 ** n_layers, W // 2 ** n_layers]  # [2, 2, 1]
    fc_in = (conv_channels_list[-1] * imsize_compressed[0]
             * imsize_compressed[1] * imsize_compressed[2])

    x_in = jax.random.normal(kx, (B, n_channels, D, H, W), jnp.float32)   # NCDHW like torch
    y_in = jax.random.normal(ky, (B, n_classes), jnp.float32)

    params = init_params(kp, n_channels, conv_channels_list, n_classes, fc_in, n_classes_out)

    fwd = jax.jit(lambda xi, yi, prm: decd_forward(xi, yi, prm, noise_std=0.0,
                                                   tsm_nth=4, tsm_n_shifts=2))
    out = fwd(x_in, y_in, params)
    out = jax.block_until_ready(out)
    assert out.shape == (B,), out.shape
    assert bool(jnp.all(jnp.isfinite(out)))
    print("KERNEL_OK")
</pallas_src>

<mosaic_0001>
module attributes {stable_mosaic.version = 11 : i64} {
  func.func @_dhconv_kernel(%arg0: i32, %arg1: memref<1x20x5x4xbf16, #tpu.memory_space<vmem>>, %arg2: memref<16x4x128xbf16, #tpu.memory_space<vmem>>, %arg3: memref<1x1x128xf32, #tpu.memory_space<vmem>>, %arg4: memref<1x16x128xbf16, #tpu.memory_space<vmem>>) attributes {dimension_semantics = [#tpu.dimension_semantics<parallel>], iteration_bounds = array<i64: 4>, scalar_prefetch = 0 : i64, scratch_operands = 0 : i64, tpu.core_type = #tpu.core_type<tc>, window_params = [{transform_indices = @transform_0, window_bounds = array<i64: 1, 20, 5, 4>}, {pipeline_mode = #tpu.pipeline_mode<synchronous>, transform_indices = @transform_1, window_bounds = array<i64: 16, 4, 128>}, {transform_indices = @transform_2, window_bounds = array<i64: 1, 1, 128>}, {transform_indices = @transform_3, window_bounds = array<i64: 1, 16, 128>}]} {
    %cst = arith.constant 0.000000e+00 : f32
    %0 = vector.broadcast %cst : f32 to vector<16x128xf32>
    %c0 = arith.constant 0 : index
    %c0_0 = arith.constant 0 : index
    %c0_1 = arith.constant 0 : index
    %c0_2 = arith.constant 0 : index
    %1 = vector.load %arg1[%c0, %c0_0, %c0_1, %c0_2] : memref<1x20x5x4xbf16, #tpu.memory_space<vmem>>, vector<1x4x4x4xbf16>
    %2 = vector.shape_cast %1 : vector<1x4x4x4xbf16> to vector<4x4x4xbf16>
    %3 = vector.shape_cast %2 : vector<4x4x4xbf16> to vector<16x4xbf16>
    %c0_3 = arith.constant 0 : index
    %c0_4 = arith.constant 0 : index
    %c0_5 = arith.constant 0 : index
    %4 = vector.load %arg2[%c0_3, %c0_4, %c0_5] : memref<16x4x128xbf16, #tpu.memory_space<vmem>>, vector<1x4x128xbf16>
    %5 = vector.shape_cast %4 : vector<1x4x128xbf16> to vector<4x128xbf16>
    %cst_6 = arith.constant dense<0.000000e+00> : vector<16x128xf32>
    %6 = tpu.matmul %3, %5, %cst_6 {dimension_numbers = #tpu.dot_dimension_numbers<[1], [0], [0], [1], [0, 0, 1, 1], [], []>} : vector<16x4xbf16>, vector<4x128xbf16>, vector<16x128xf32> -> vector<16x128xf32>
    %7 = arith.addf %0, %6 : vector<16x128xf32>
    %c0_7 = arith.constant 0 : index
    %c5 = arith.constant 5 : index
    %c0_8 = arith.constant 0 : index
    %c0_9 = arith.constant 0 : index
    %8 = vector.load %arg1[%c0_7, %c5, %c0_8, %c0_9] : memref<1x20x5x4xbf16, #tpu.memory_space<vmem>>, vector<1x4x4x4xbf16>
    %9 = vector.shape_cast %8 : vector<1x4x4x4xbf16> to vector<4x4x4xbf16>
    %10 = vector.shape_cast %9 : vector<4x4x4xbf16> to vector<16x4xbf16>
    %c1 = arith.constant 1 : index
    %c0_10 = arith.constant 0 : index
    %c0_11 = arith.constant 0 : index
    %11 = vector.load %arg2[%c1, %c0_10, %c0_11] : memref<16x4x128xbf16, #tpu.memory_space<vmem>>, vector<1x4x128xbf16>
    %12 = vector.shape_cast %11 : vector<1x4x128xbf16> to vector<4x128xbf16>
    %cst_12 = arith.constant dense<0.000000e+00> : vector<16x128xf32>
    %13 = tpu.matmul %10, %12, %cst_12 {dimension_numbers = #tpu.dot_dimension_numbers<[1], [0], [0], [1], [0, 0, 1, 1], [], []>} : vector<16x4xbf16>, vector<4x128xbf16>, vector<16x128xf32> -> vector<16x128xf32>
    %14 = arith.addf %7, %13 : vector<16x128xf32>
    %c0_13 = arith.constant 0 : index
    %c0_14 = arith.constant 0 : index
    %c1_15 = arith.constant 1 : index
    %c0_16 = arith.constant 0 : index
    %15 = vector.load %arg1[%c0_13, %c0_14, %c1_15, %c0_16] : memref<1x20x5x4xbf16, #tpu.memory_space<vmem>>, vector<1x4x4x4xbf16>
    %16 = vector.shape_cast %15 : vector<1x4x4x4xbf16> to vector<4x4x4xbf16>
    %17 = vector.shape_cast %16 : vector<4x4x4xbf16> to vector<16x4xbf16>
    %c2 = arith.constant 2 : index
    %c0_17 = arith.constant 0 : index
    %c0_18 = arith.constant 0 : index
    %18 = vector.load %arg2[%c2, %c0_17, %c0_18] : memref<16x4x128xbf16, #tpu.memory_space<vmem>>, vector<1x4x128xbf16>
    %19 = vector.shape_cast %18 : vector<1x4x128xbf16> to vector<4x128xbf16>
    %cst_19 = arith.constant dense<0.000000e+00> : vector<16x128xf32>
    %20 = tpu.matmul %17, %19, %cst_19 {dimension_numbers = #tpu.dot_dimension_numbers<[1], [0], [0], [1], [0, 0, 1, 1], [], []>} : vector<16x4xbf16>, vector<4x128xbf16>, vector<16x128xf32> -> vector<16x128xf32>
    %21 = arith.addf %14, %20 : vector<16x128xf32>
    %c0_20 = arith.constant 0 : index
    %c5_21 = arith.constant 5 : index
    %c1_22 = arith.constant 1 : index
    %c0_23 = arith.constant 0 : index
    %22 = vector.load %arg1[%c0_20, %c5_21, %c1_22, %c0_23] : memref<1x20x5x4xbf16, #tpu.memory_space<vmem>>, vector<1x4x4x4xbf16>
    %23 = vector.shape_cast %22 : vector<1x4x4x4xbf16> to vector<4x4x4xbf16>
    %24 = vector.shape_cast %23 : vector<4x4x4xbf16> to vector<16x4xbf16>
    %c3 = arith.constant 3 : index
    %c0_24 = arith.constant 0 : index
    %c0_25 = arith.constant 0 : index
    %25 = vector.load %arg2[%c3, %c0_24, %c0_25] : memref<16x4x128xbf16, #tpu.memory_space<vmem>>, vector<1x4x128xbf16>
    %26 = vector.shape_cast %25 : vector<1x4x128xbf16> to vector<4x128xbf16>
    %cst_26 = arith.constant dense<0.000000e+00> : vector<16x128xf32>
    %27 = tpu.matmul %24, %26, %cst_26 {dimension_numbers = #tpu.dot_dimension_numbers<[1], [0], [0], [1], [0, 0, 1, 1], [], []>} : vector<16x4xbf16>, vector<4x128xbf16>, vector<16x128xf32> -> vector<16x128xf32>
    %28 = arith.addf %21, %27 : vector<16x128xf32>
    %c0_27 = arith.constant 0 : index
    %c10 = arith.constant 10 : index
    %c0_28 = arith.constant 0 : index
    %c0_29 = arith.constant 0 : index
    %29 = vector.load %arg1[%c0_27, %c10, %c0_28, %c0_29] : memref<1x20x5x4xbf16, #tpu.memory_space<vmem>>, vector<1x4x4x4xbf16>
    %30 = vector.shape_cast %29 : vector<1x4x4x4xbf16> to vector<4x4x4xbf16>
    %31 = vector.shape_cast %30 : vector<4x4x4xbf16> to vector<16x4xbf16>
    %c4 = arith.constant 4 : index
    %c0_30 = arith.constant 0 : index
    %c0_31 = arith.constant 0 : index
    %32 = vector.load %arg2[%c4, %c0_30, %c0_31] : memref<16x4x128xbf16, #tpu.memory_space<vmem>>, vector<1x4x128xbf16>
    %33 = vector.shape_cast %32 : vector<1x4x128xbf16> to vector<4x128xbf16>
    %cst_32 = arith.constant dense<0.000000e+00> : vector<16x128xf32>
    %34 = tpu.matmul %31, %33, %cst_32 {dimension_numbers = #tpu.dot_dimension_numbers<[1], [0], [0], [1], [0, 0, 1, 1], [], []>} : vector<16x4xbf16>, vector<4x128xbf16>, vector<16x128xf32> -> vector<16x128xf32>
    %35 = arith.addf %28, %34 : vector<16x128xf32>
    %c0_33 = arith.constant 0 : index
    %c15 = arith.constant 15 : index
    %c0_34 = arith.constant 0 : index
    %c0_35 = arith.constant 0 : index
    %36 = vector.load %arg1[%c0_33, %c15, %c0_34, %c0_35] : memref<1x20x5x4xbf16, #tpu.memory_space<vmem>>, vector<1x4x4x4xbf16>
    %37 = vector.shape_cast %36 : vector<1x4x4x4xbf16> to vector<4x4x4xbf16>
    %38 = vector.shape_cast %37 : vector<4x4x4xbf16> to vector<16x4xbf16>
    %c5_36 = arith.constant 5 : index
    %c0_37 = arith.constant 0 : index
    %c0_38 = arith.constant 0 : index
    %39 = vector.load %arg2[%c5_36, %c0_37, %c0_38] : memref<16x4x128xbf16, #tpu.memory_space<vmem>>, vector<1x4x128xbf16>
    %40 = vector.shape_cast %39 : vector<1x4x128xbf16> to vector<4x128xbf16>
    %cst_39 = arith.constant dense<0.000000e+00> : vector<16x128xf32>
    %41 = tpu.matmul %38, %40, %cst_39 {dimension_numbers = #tpu.dot_dimension_numbers<[1], [0], [0], [1], [0, 0, 1, 1], [], []>} : vector<16x4xbf16>, vector<4x128xbf16>, vector<16x128xf32> -> vector<16x128xf32>
    %42 = arith.addf %35, %41 : vector<16x128xf32>
    %c0_40 = arith.constant 0 : index
    %c10_41 = arith.constant 10 : index
    %c1_42 = arith.constant 1 : index
    %c0_43 = arith.constant 0 : index
    %43 = vector.load %arg1[%c0_40, %c10_41, %c1_42, %c0_43] : memref<1x20x5x4xbf16, #tpu.memory_space<vmem>>, vector<1x4x4x4xbf16>
    %44 = vector.shape_cast %43 : vector<1x4x4x4xbf16> to vector<4x4x4xbf16>
    %45 = vector.shape_cast %44 : vector<4x4x4xbf16> to vector<16x4xbf16>
    %c6 = arith.constant 6 : index
    %c0_44 = arith.constant 0 : index
    %c0_45 = arith.constant 0 : index
    %46 = vector.load %arg2[%c6, %c0_44, %c0_45] : memref<16x4x128xbf16, #tpu.memory_space<vmem>>, vector<1x4x128xbf16>
    %47 = vector.shape_cast %46 : vector<1x4x128xbf16> to vector<4x128xbf16>
    %cst_46 = arith.constant dense<0.000000e+00> : vector<16x128xf32>
    %48 = tpu.matmul %45, %47, %cst_46 {dimension_numbers = #tpu.dot_dimension_numbers<[1], [0], [0], [1], [0, 0, 1, 1], [], []>} : vector<16x4xbf16>, vector<4x128xbf16>, vector<16x128xf32> -> vector<16x128xf32>
    %49 = arith.addf %42, %48 : vector<16x128xf32>
    %c0_47 = arith.constant 0 : index
    %c15_48 = arith.constant 15 : index
    %c1_49 = arith.constant 1 : index
    %c0_50 = arith.constant 0 : index
    %50 = vector.load %arg1[%c0_47, %c15_48, %c1_49, %c0_50] : memref<1x20x5x4xbf16, #tpu.memory_space<vmem>>, vector<1x4x4x4xbf16>
    %51 = vector.shape_cast %50 : vector<1x4x4x4xbf16> to vector<4x4x4xbf16>
    %52 = vector.shape_cast %51 : vector<4x4x4xbf16> to vector<16x4xbf16>
    %c7 = arith.constant 7 : index
    %c0_51 = arith.constant 0 : index
    %c0_52 = arith.constant 0 : index
    %53 = vector.load %arg2[%c7, %c0_51, %c0_52] : memref<16x4x128xbf16, #tpu.memory_space<vmem>>, vector<1x4x128xbf16>
    %54 = vector.shape_cast %53 : vector<1x4x128xbf16> to vector<4x128xbf16>
    %cst_53 = arith.constant dense<0.000000e+00> : vector<16x128xf32>
    %55 = tpu.matmul %52, %54, %cst_53 {dimension_numbers = #tpu.dot_dimension_numbers<[1], [0], [0], [1], [0, 0, 1, 1], [], []>} : vector<16x4xbf16>, vector<4x128xbf16>, vector<16x128xf32> -> vector<16x128xf32>
    %56 = arith.addf %49, %55 : vector<16x128xf32>
    %c0_54 = arith.constant 0 : index
    %c1_55 = arith.constant 1 : index
    %c0_56 = arith.constant 0 : index
    %c0_57 = arith.constant 0 : index
    %57 = vector.load %arg1[%c0_54, %c1_55, %c0_56, %c0_57] : memref<1x20x5x4xbf16, #tpu.memory_space<vmem>>, vector<1x4x4x4xbf16>
    %58 = vector.shape_cast %57 : vector<1x4x4x4xbf16> to vector<4x4x4xbf16>
    %59 = vector.shape_cast %58 : vector<4x4x4xbf16> to vector<16x4xbf16>
    %c8 = arith.constant 8 : index
    %c0_58 = arith.constant 0 : index
    %c0_59 = arith.constant 0 : index
    %60 = vector.load %arg2[%c8, %c0_58, %c0_59] : memref<16x4x128xbf16, #tpu.memory_space<vmem>>, vector<1x4x128xbf16>
    %61 = vector.shape_cast %60 : vector<1x4x128xbf16> to vector<4x128xbf16>
    %cst_60 = arith.constant dense<0.000000e+00> : vector<16x128xf32>
    %62 = tpu.matmul %59, %61, %cst_60 {dimension_numbers = #tpu.dot_dimension_numbers<[1], [0], [0], [1], [0, 0, 1, 1], [], []>} : vector<16x4xbf16>, vector<4x128xbf16>, vector<16x128xf32> -> vector<16x128xf32>
    %63 = arith.addf %56, %62 : vector<16x128xf32>
    %c0_61 = arith.constant 0 : index
    %c6_62 = arith.constant 6 : index
    %c0_63 = arith.constant 0 : index
    %c0_64 = arith.constant 0 : index
    %64 = vector.load %arg1[%c0_61, %c6_62, %c0_63, %c0_64] : memref<1x20x5x4xbf16, #tpu.memory_space<vmem>>, vector<1x4x4x4xbf16>
    %65 = vector.shape_cast %64 : vector<1x4x4x4xbf16> to vector<4x4x4xbf16>
    %66 = vector.shape_cast %65 : vector<4x4x4xbf16> to vector<16x4xbf16>
    %c9 = arith.constant 9 : index
    %c0_65 = arith.constant 0 : index
    %c0_66 = arith.constant 0 : index
    %67 = vector.load %arg2[%c9, %c0_65, %c0_66] : memref<16x4x128xbf16, #tpu.memory_space<vmem>>, vector<1x4x128xbf16>
    %68 = vector.shape_cast %67 : vector<1x4x128xbf16> to vector<4x128xbf16>
    %cst_67 = arith.constant dense<0.000000e+00> : vector<16x128xf32>
    %69 = tpu.matmul %66, %68, %cst_67 {dimension_numbers = #tpu.dot_dimension_numbers<[1], [0], [0], [1], [0, 0, 1, 1], [], []>} : vector<16x4xbf16>, vector<4x128xbf16>, vector<16x128xf32> -> vector<16x128xf32>
    %70 = arith.addf %63, %69 : vector<16x128xf32>
    %c0_68 = arith.constant 0 : index
    %c1_69 = arith.constant 1 : index
    %c1_70 = arith.constant 1 : index
    %c0_71 = arith.constant 0 : index
    %71 = vector.load %arg1[%c0_68, %c1_69, %c1_70, %c0_71] : memref<1x20x5x4xbf16, #tpu.memory_space<vmem>>, vector<1x4x4x4xbf16>
    %72 = vector.shape_cast %71 : vector<1x4x4x4xbf16> to vector<4x4x4xbf16>
    %73 = vector.shape_cast %72 : vector<4x4x4xbf16> to vector<16x4xbf16>
    %c10_72 = arith.constant 10 : index
    %c0_73 = arith.constant 0 : index
    %c0_74 = arith.constant 0 : index
    %74 = vector.load %arg2[%c10_72, %c0_73, %c0_74] : memref<16x4x128xbf16, #tpu.memory_space<vmem>>, vector<1x4x128xbf16>
    %75 = vector.shape_cast %74 : vector<1x4x128xbf16> to vector<4x128xbf16>
    %cst_75 = arith.constant dense<0.000000e+00> : vector<16x128xf32>
    %76 = tpu.matmul %73, %75, %cst_75 {dimension_numbers = #tpu.dot_dimension_numbers<[1], [0], [0], [1], [0, 0, 1, 1], [], []>} : vector<16x4xbf16>, vector<4x128xbf16>, vector<16x128xf32> -> vector<16x128xf32>
    %77 = arith.addf %70, %76 : vector<16x128xf32>
    %c0_76 = arith.constant 0 : index
    %c6_77 = arith.constant 6 : index
    %c1_78 = arith.constant 1 : index
    %c0_79 = arith.constant 0 : index
    %78 = vector.load %arg1[%c0_76, %c6_77, %c1_78, %c0_79] : memref<1x20x5x4xbf16, #tpu.memory_space<vmem>>, vector<1x4x4x4xbf16>
    %79 = vector.shape_cast %78 : vector<1x4x4x4xbf16> to vector<4x4x4xbf16>
    %80 = vector.shape_cast %79 : vector<4x4x4xbf16> to vector<16x4xbf16>
    %c11 = arith.constant 11 : index
    %c0_80 = arith.constant 0 : index
    %c0_81 = arith.constant 0 : index
    %81 = vector.load %arg2[%c11, %c0_80, %c0_81] : memref<16x4x128xbf16, #tpu.memory_space<vmem>>, vector<1x4x128xbf16>
    %82 = vector.shape_cast %81 : vector<1x4x128xbf16> to vector<4x128xbf16>
    %cst_82 = arith.constant dense<0.000000e+00> : vector<16x128xf32>
    %83 = tpu.matmul %80, %82, %cst_82 {dimension_numbers = #tpu.dot_dimension_numbers<[1], [0], [0], [1], [0, 0, 1, 1], [], []>} : vector<16x4xbf16>, vector<4x128xbf16>, vector<16x128xf32> -> vector<16x128xf32>
    %84 = arith.addf %77, %83 : vector<16x128xf32>
    %c0_83 = arith.constant 0 : index
    %c11_84 = arith.constant 11 : index
    %c0_85 = arith.constant 0 : index
    %c0_86 = arith.constant 0 : index
    %85 = vector.load %arg1[%c0_83, %c11_84, %c0_85, %c0_86] : memref<1x20x5x4xbf16, #tpu.memory_space<vmem>>, vector<1x4x4x4xbf16>
    %86 = vector.shape_cast %85 : vector<1x4x4x4xbf16> to vector<4x4x4xbf16>
    %87 = vector.shape_cast %86 : vector<4x4x4xbf16> to vector<16x4xbf16>
    %c12 = arith.constant 12 : index
    %c0_87 = arith.constant 0 : index
    %c0_88 = arith.constant 0 : index
    %88 = vector.load %arg2[%c12, %c0_87, %c0_88] : memref<16x4x128xbf16, #tpu.memory_space<vmem>>, vector<1x4x128xbf16>
    %89 = vector.shape_cast %88 : vector<1x4x128xbf16> to vector<4x128xbf16>
    %cst_89 = arith.constant dense<0.000000e+00> : vector<16x128xf32>
    %90 = tpu.matmul %87, %89, %cst_89 {dimension_numbers = #tpu.dot_dimension_numbers<[1], [0], [0], [1], [0, 0, 1, 1], [], []>} : vector<16x4xbf16>, vector<4x128xbf16>, vector<16x128xf32> -> vector<16x128xf32>
    %91 = arith.addf %84, %90 : vector<16x128xf32>
    %c0_90 = arith.constant 0 : index
    %c16 = arith.constant 16 : index
    %c0_91 = arith.constant 0 : index
    %c0_92 = arith.constant 0 : index
    %92 = vector.load %arg1[%c0_90, %c16, %c0_91, %c0_92] : memref<1x20x5x4xbf16, #tpu.memory_space<vmem>>, vector<1x4x4x4xbf16>
    %93 = vector.shape_cast %92 : vector<1x4x4x4xbf16> to vector<4x4x4xbf16>
    %94 = vector.shape_cast %93 : vector<4x4x4xbf16> to vector<16x4xbf16>
    %c13 = arith.constant 13 : index
    %c0_93 = arith.constant 0 : index
    %c0_94 = arith.constant 0 : index
    %95 = vector.load %arg2[%c13, %c0_93, %c0_94] : memref<16x4x128xbf16, #tpu.memory_space<vmem>>, vector<1x4x128xbf16>
    %96 = vector.shape_cast %95 : vector<1x4x128xbf16> to vector<4x128xbf16>
    %cst_95 = arith.constant dense<0.000000e+00> : vector<16x128xf32>
    %97 = tpu.matmul %94, %96, %cst_95 {dimension_numbers = #tpu.dot_dimension_numbers<[1], [0], [0], [1], [0, 0, 1, 1], [], []>} : vector<16x4xbf16>, vector<4x128xbf16>, vector<16x128xf32> -> vector<16x128xf32>
    %98 = arith.addf %91, %97 : vector<16x128xf32>
    %c0_96 = arith.constant 0 : index
    %c11_97 = arith.constant 11 : index
    %c1_98 = arith.constant 1 : index
    %c0_99 = arith.constant 0 : index
    %99 = vector.load %arg1[%c0_96, %c11_97, %c1_98, %c0_99] : memref<1x20x5x4xbf16, #tpu.memory_space<vmem>>, vector<1x4x4x4xbf16>
    %100 = vector.shape_cast %99 : vector<1x4x4x4xbf16> to vector<4x4x4xbf16>
    %101 = vector.shape_cast %100 : vector<4x4x4xbf16> to vector<16x4xbf16>
    %c14 = arith.constant 14 : index
    %c0_100 = arith.constant 0 : index
    %c0_101 = arith.constant 0 : index
    %102 = vector.load %arg2[%c14, %c0_100, %c0_101] : memref<16x4x128xbf16, #tpu.memory_space<vmem>>, vector<1x4x128xbf16>
    %103 = vector.shape_cast %102 : vector<1x4x128xbf16> to vector<4x128xbf16>
    %cst_102 = arith.constant dense<0.000000e+00> : vector<16x128xf32>
    %104 = tpu.matmul %101, %103, %cst_102 {dimension_numbers = #tpu.dot_dimension_numbers<[1], [0], [0], [1], [0, 0, 1, 1], [], []>} : vector<16x4xbf16>, vector<4x128xbf16>, vector<16x128xf32> -> vector<16x128xf32>
    %105 = arith.addf %98, %104 : vector<16x128xf32>
    %c0_103 = arith.constant 0 : index
    %c16_104 = arith.constant 16 : index
    %c1_105 = arith.constant 1 : index
    %c0_106 = arith.constant 0 : index
    %106 = vector.load %arg1[%c0_103, %c16_104, %c1_105, %c0_106] : memref<1x20x5x4xbf16, #tpu.memory_space<vmem>>, vector<1x4x4x4xbf16>
    %107 = vector.shape_cast %106 : vector<1x4x4x4xbf16> to vector<4x4x4xbf16>
    %108 = vector.shape_cast %107 : vector<4x4x4xbf16> to vector<16x4xbf16>
    %c15_107 = arith.constant 15 : index
    %c0_108 = arith.constant 0 : index
    %c0_109 = arith.constant 0 : index
    %109 = vector.load %arg2[%c15_107, %c0_108, %c0_109] : memref<16x4x128xbf16, #tpu.memory_space<vmem>>, vector<1x4x128xbf16>
    %110 = vector.shape_cast %109 : vector<1x4x128xbf16> to vector<4x128xbf16>
    %cst_110 = arith.constant dense<0.000000e+00> : vector<16x128xf32>
    %111 = tpu.matmul %108, %110, %cst_110 {dimension_numbers = #tpu.dot_dimension_numbers<[1], [0], [0], [1], [0, 0, 1, 1], [], []>} : vector<16x4xbf16>, vector<4x128xbf16>, vector<16x128xf32> -> vector<16x128xf32>
    %112 = arith.addf %105, %111 : vector<16x128xf32>
    %c0_111 = arith.constant 0 : index
    %c0_112 = arith.constant 0 : index
    %c0_113 = arith.constant 0 : index
    %113 = vector.load %arg3[%c0_111, %c0_112, %c0_113] : memref<1x1x128xf32, #tpu.memory_space<vmem>>, vector<1x1x128xf32>
    %114 = vector.shape_cast %113 : vector<1x1x128xf32> to vector<1x128xf32>
    %115 = vector.broadcast %114 : vector<1x128xf32> to vector<16x128xf32>
    %116 = arith.addf %112, %115 : vector<16x128xf32>
    %cst_114 = arith.constant 0.000000e+00 : f32
    %117 = vector.broadcast %cst_114 : f32 to vector<16x128xf32>
    %118 = arith.cmpf oge, %116, %117 : vector<16x128xf32>
    %cst_115 = arith.constant 2.000000e-01 : f32
    %119 = vector.broadcast %cst_115 : f32 to vector<16x128xf32>
    %120 = arith.mulf %119, %116 : vector<16x128xf32>
    %121 = arith.select %118, %116, %120 : vector<16x128xi1>, vector<16x128xf32>
    %122 = arith.truncf %121 : vector<16x128xf32> to vector<16x128xbf16>
    %c0_116 = arith.constant 0 : index
    %c0_117 = arith.constant 0 : index
    %c0_118 = arith.constant 0 : index
    %123 = vector.load %arg4[%c0_116, %c0_117, %c0_118] : memref<1x16x128xbf16, #tpu.memory_space<vmem>>, vector<1x16x128xbf16>
    %124 = vector.shape_cast %123 : vector<1x16x128xbf16> to vector<16x128xbf16>
    %125 = vector.shape_cast %122 : vector<16x128xbf16> to vector<1x16x128xbf16>
    tpu.vector_store %arg4[%c0_116, %c0_117, %c0_118], %125 {strides = array<i32>} : memref<1x16x128xbf16, #tpu.memory_space<vmem>>, vector<1x16x128xbf16>,
    return
  }
  func.func @transform_0(%arg0: i32) -> (i32, i32, i32, i32) {
    %c0_i32 = arith.constant 0 : i32
    %c0_i32_0 = arith.constant 0 : i32
    %c0_i32_1 = arith.constant 0 : i32
    %c0_i32_2 = arith.constant 0 : i32
    return %arg0, %c0_i32, %c0_i32_0, %c0_i32_1 : i32, i32, i32, i32
  }
  func.func @transform_1(%arg0: i32) -> (i32, i32, i32) {
    %c0_i32 = arith.constant 0 : i32
    %c0_i32_0 = arith.constant 0 : i32
    %c0_i32_1 = arith.constant 0 : i32
    %c0_i32_2 = arith.constant 0 : i32
    return %c0_i32, %c0_i32_0, %c0_i32_1 : i32, i32, i32
  }
  func.func @transform_2(%arg0: i32) -> (i32, i32, i32) {
    %c0_i32 = arith.constant 0 : i32
    %c0_i32_0 = arith.constant 0 : i32
    %c0_i32_1 = arith.constant 0 : i32
    return %arg0, %c0_i32, %c0_i32_0 : i32, i32, i32
  }
  func.func @transform_3(%arg0: i32) -> (i32, i32, i32) {
    %c0_i32 = arith.constant 0 : i32
    %c0_i32_0 = arith.constant 0 : i32
    %c0_i32_1 = arith.constant 0 : i32
    return %arg0, %c0_i32, %c0_i32_0 : i32, i32, i32
  }
}

module attributes {stable_mosaic.version = 11 : i64} {
  func.func @_dhconv_kernel(%arg0: i32, %arg1: memref<1x12x6x4xbf16, #tpu.memory_space<vmem>>, %arg2: memref<10x4x128xbf16, #tpu.memory_space<vmem>>, %arg3: memref<1x1x128xf32, #tpu.memory_space<vmem>>, %arg4: memref<1x16x128xbf16, #tpu.memory_space<vmem>>) attributes {dimension_semantics = [#tpu.dimension_semantics<parallel>], iteration_bounds = array<i64: 4>, scalar_prefetch = 0 : i64, scratch_operands = 0 : i64, tpu.core_type = #tpu.core_type<tc>, window_params = [{transform_indices = @transform_0, window_bounds = array<i64: 1, 12, 6, 4>}, {pipeline_mode = #tpu.pipeline_mode<synchronous>, transform_indices = @transform_1, window_bounds = array<i64: 10, 4, 128>}, {transform_indices = @transform_2, window_bounds = array<i64: 1, 1, 128>}, {transform_indices = @transform_3, window_bounds = array<i64: 1, 16, 128>}]} {
    %cst = arith.constant 0.000000e+00 : f32
    %0 = vector.broadcast %cst : f32 to vector<16x128xf32>
    %c0 = arith.constant 0 : index
    %c0_0 = arith.constant 0 : index
    %c0_1 = arith.constant 0 : index
    %c0_2 = arith.constant 0 : index
    %1 = vector.load %arg1[%c0, %c0_0, %c0_1, %c0_2] : memref<1x12x6x4xbf16, #tpu.memory_space<vmem>>, vector<1x4x4x4xbf16>
    %2 = vector.shape_cast %1 : vector<1x4x4x4xbf16> to vector<4x4x4xbf16>
    %3 = vector.shape_cast %2 : vector<4x4x4xbf16> to vector<16x4xbf16>
    %c0_3 = arith.constant 0 : index
    %c0_4 = arith.constant 0 : index
    %c0_5 = arith.constant 0 : index
    %4 = vector.load %arg2[%c0_3, %c0_4, %c0_5] : memref<10x4x128xbf16, #tpu.memory_space<vmem>>, vector<1x4x128xbf16>
    %5 = vector.shape_cast %4 : vector<1x4x128xbf16> to vector<4x128xbf16>
    %cst_6 = arith.constant dense<0.000000e+00> : vector<16x128xf32>
    %6 = tpu.matmul %3, %5, %cst_6 {dimension_numbers = #tpu.dot_dimension_numbers<[1], [0], [0], [1], [0, 0, 1, 1], [], []>} : vector<16x4xbf16>, vector<4x128xbf16>, vector<16x128xf32> -> vector<16x128xf32>
    %7 = arith.addf %0, %6 : vector<16x128xf32>
    %c0_7 = arith.constant 0 : index
    %c0_8 = arith.constant 0 : index
    %c1 = arith.constant 1 : index
    %c0_9 = arith.constant 0 : index
    %8 = vector.load %arg1[%c0_7, %c0_8, %c1, %c0_9] : memref<1x12x6x4xbf16, #tpu.memory_space<vmem>>, vector<1x4x4x4xbf16>
    %9 = vector.shape_cast %8 : vector<1x4x4x4xbf16> to vector<4x4x4xbf16>
    %10 = vector.shape_cast %9 : vector<4x4x4xbf16> to vector<16x4xbf16>
    %c1_10 = arith.constant 1 : index
    %c0_11 = arith.constant 0 : index
    %c0_12 = arith.constant 0 : index
    %11 = vector.load %arg2[%c1_10, %c0_11, %c0_12] : memref<10x4x128xbf16, #tpu.memory_space<vmem>>, vector<1x4x128xbf16>
    %12 = vector.shape_cast %11 : vector<1x4x128xbf16> to vector<4x128xbf16>
    %cst_13 = arith.constant dense<0.000000e+00> : vector<16x128xf32>
    %13 = tpu.matmul %10, %12, %cst_13 {dimension_numbers = #tpu.dot_dimension_numbers<[1], [0], [0], [1], [0, 0, 1, 1], [], []>} : vector<16x4xbf16>, vector<4x128xbf16>, vector<16x128xf32> -> vector<16x128xf32>
    %14 = arith.addf %7, %13 : vector<16x128xf32>
    %c0_14 = arith.constant 0 : index
    %c0_15 = arith.constant 0 : index
    %c2 = arith.constant 2 : index
    %c0_16 = arith.constant 0 : index
    %15 = vector.load %arg1[%c0_14, %c0_15, %c2, %c0_16] : memref<1x12x6x4xbf16, #tpu.memory_space<vmem>>, vector<1x4x4x4xbf16>
    %16 = vector.shape_cast %15 : vector<1x4x4x4xbf16> to vector<4x4x4xbf16>
    %17 = vector.shape_cast %16 : vector<4x4x4xbf16> to vector<16x4xbf16>
    %c2_17 = arith.constant 2 : index
    %c0_18 = arith.constant 0 : index
    %c0_19 = arith.constant 0 : index
    %18 = vector.load %arg2[%c2_17, %c0_18, %c0_19] : memref<10x4x128xbf16, #tpu.memory_space<vmem>>, vector<1x4x128xbf16>
    %19 = vector.shape_cast %18 : vector<1x4x128xbf16> to vector<4x128xbf16>
    %cst_20 = arith.constant dense<0.000000e+00> : vector<16x128xf32>
    %20 = tpu.matmul %17, %19, %cst_20 {dimension_numbers = #tpu.dot_dimension_numbers<[1], [0], [0], [1], [0, 0, 1, 1], [], []>} : vector<16x4xbf16>, vector<4x128xbf16>, vector<16x128xf32> -> vector<16x128xf32>
    %21 = arith.addf %14, %20 : vector<16x128xf32>
    %c0_21 = arith.constant 0 : index
    %c1_22 = arith.constant 1 : index
    %c0_23 = arith.constant 0 : index
    %c0_24 = arith.constant 0 : index
    %22 = vector.load %arg1[%c0_21, %c1_22, %c0_23, %c0_24] : memref<1x12x6x4xbf16, #tpu.memory_space<vmem>>, vector<1x4x4x4xbf16>
    %23 = vector.shape_cast %22 : vector<1x4x4x4xbf16> to vector<4x4x4xbf16>
    %24 = vector.shape_cast %23 : vector<4x4x4xbf16> to vector<16x4xbf16>
    %c3 = arith.constant 3 : index
    %c0_25 = arith.constant 0 : index
    %c0_26 = arith.constant 0 : index
    %25 = vector.load %arg2[%c3, %c0_25, %c0_26] : memref<10x4x128xbf16, #tpu.memory_space<vmem>>, vector<1x4x128xbf16>
    %26 = vector.shape_cast %25 : vector<1x4x128xbf16> to vector<4x128xbf16>
    %cst_27 = arith.constant dense<0.000000e+00> : vector<16x128xf32>
    %27 = tpu.matmul %24, %26, %cst_27 {dimension_numbers = #tpu.dot_dimension_numbers<[1], [0], [0], [1], [0, 0, 1, 1], [], []>} : vector<16x4xbf16>, vector<4x128xbf16>, vector<16x128xf32> -> vector<16x128xf32>
    %28 = arith.addf %21, %27 : vector<16x128xf32>
    %c0_28 = arith.constant 0 : index
    %c1_29 = arith.constant 1 : index
    %c1_30 = arith.constant 1 : index
    %c0_31 = arith.constant 0 : index
    %29 = vector.load %arg1[%c0_28, %c1_29, %c1_30, %c0_31] : memref<1x12x6x4xbf16, #tpu.memory_space<vmem>>, vector<1x4x4x4xbf16>
    %30 = vector.shape_cast %29 : vector<1x4x4x4xbf16> to vector<4x4x4xbf16>
    %31 = vector.shape_cast %30 : vector<4x4x4xbf16> to vector<16x4xbf16>
    %c4 = arith.constant 4 : index
    %c0_32 = arith.constant 0 : index
    %c0_33 = arith.constant 0 : index
    %32 = vector.load %arg2[%c4, %c0_32, %c0_33] : memref<10x4x128xbf16, #tpu.memory_space<vmem>>, vector<1x4x128xbf16>
    %33 = vector.shape_cast %32 : vector<1x4x128xbf16> to vector<4x128xbf16>
    %cst_34 = arith.constant dense<0.000000e+00> : vector<16x128xf32>
    %34 = tpu.matmul %31, %33, %cst_34 {dimension_numbers = #tpu.dot_dimension_numbers<[1], [0], [0], [1], [0, 0, 1, 1], [], []>} : vector<16x4xbf16>, vector<4x128xbf16>, vector<16x128xf32> -> vector<16x128xf32>
    %35 = arith.addf %28, %34 : vector<16x128xf32>
    %c0_35 = arith.constant 0 : index
    %c1_36 = arith.constant 1 : index
    %c2_37 = arith.constant 2 : index
    %c0_38 = arith.constant 0 : index
    %36 = vector.load %arg1[%c0_35, %c1_36, %c2_37, %c0_38] : memref<1x12x6x4xbf16, #tpu.memory_space<vmem>>, vector<1x4x4x4xbf16>
    %37 = vector.shape_cast %36 : vector<1x4x4x4xbf16> to vector<4x4x4xbf16>
    %38 = vector.shape_cast %37 : vector<4x4x4xbf16> to vector<16x4xbf16>
    %c5 = arith.constant 5 : index
    %c0_39 = arith.constant 0 : index
    %c0_40 = arith.constant 0 : index
    %39 = vector.load %arg2[%c5, %c0_39, %c0_40] : memref<10x4x128xbf16, #tpu.memory_space<vmem>>, vector<1x4x128xbf16>
    %40 = vector.shape_cast %39 : vector<1x4x128xbf16> to vector<4x128xbf16>
    %cst_41 = arith.constant dense<0.000000e+00> : vector<16x128xf32>
    %41 = tpu.matmul %38, %40, %cst_41 {dimension_numbers = #tpu.dot_dimension_numbers<[1], [0], [0], [1], [0, 0, 1, 1], [], []>} : vector<16x4xbf16>, vector<4x128xbf16>, vector<16x128xf32> -> vector<16x128xf32>
    %42 = arith.addf %35, %41 : vector<16x128xf32>
    %c0_42 = arith.constant 0 : index
    %c2_43 = arith.constant 2 : index
    %c0_44 = arith.constant 0 : index
    %c0_45 = arith.constant 0 : index
    %43 = vector.load %arg1[%c0_42, %c2_43, %c0_44, %c0_45] : memref<1x12x6x4xbf16, #tpu.memory_space<vmem>>, vector<1x4x4x4xbf16>
    %44 = vector.shape_cast %43 : vector<1x4x4x4xbf16> to vector<4x4x4xbf16>
    %45 = vector.shape_cast %44 : vector<4x4x4xbf16> to vector<16x4xbf16>
    %c6 = arith.constant 6 : index
    %c0_46 = arith.constant 0 : index
    %c0_47 = arith.constant 0 : index
    %46 = vector.load %arg2[%c6, %c0_46, %c0_47] : memref<10x4x128xbf16, #tpu.memory_space<vmem>>, vector<1x4x128xbf16>
    %47 = vector.shape_cast %46 : vector<1x4x128xbf16> to vector<4x128xbf16>
    %cst_48 = arith.constant dense<0.000000e+00> : vector<16x128xf32>
    %48 = tpu.matmul %45, %47, %cst_48 {dimension_numbers = #tpu.dot_dimension_numbers<[1], [0], [0], [1], [0, 0, 1, 1], [], []>} : vector<16x4xbf16>, vector<4x128xbf16>, vector<16x128xf32> -> vector<16x128xf32>
    %49 = arith.addf %42, %48 : vector<16x128xf32>
    %c0_49 = arith.constant 0 : index
    %c2_50 = arith.constant 2 : index
    %c1_51 = arith.constant 1 : index
    %c0_52 = arith.constant 0 : index
    %50 = vector.load %arg1[%c0_49, %c2_50, %c1_51, %c0_52] : memref<1x12x6x4xbf16, #tpu.memory_space<vmem>>, vector<1x4x4x4xbf16>
    %51 = vector.shape_cast %50 : vector<1x4x4x4xbf16> to vector<4x4x4xbf16>
    %52 = vector.shape_cast %51 : vector<4x4x4xbf16> to vector<16x4xbf16>
    %c7 = arith.constant 7 : index
    %c0_53 = arith.constant 0 : index
    %c0_54 = arith.constant 0 : index
    %53 = vector.load %arg2[%c7, %c0_53, %c0_54] : memref<10x4x128xbf16, #tpu.memory_space<vmem>>, vector<1x4x128xbf16>
    %54 = vector.shape_cast %53 : vector<1x4x128xbf16> to vector<4x128xbf16>
    %cst_55 = arith.constant dense<0.000000e+00> : vector<16x128xf32>
    %55 = tpu.matmul %52, %54, %cst_55 {dimension_numbers = #tpu.dot_dimension_numbers<[1], [0], [0], [1], [0, 0, 1, 1], [], []>} : vector<16x4xbf16>, vector<4x128xbf16>, vector<16x128xf32> -> vector<16x128xf32>
    %56 = arith.addf %49, %55 : vector<16x128xf32>
    %c0_56 = arith.constant 0 : index
    %c2_57 = arith.constant 2 : index
    %c2_58 = arith.constant 2 : index
    %c0_59 = arith.constant 0 : index
    %57 = vector.load %arg1[%c0_56, %c2_57, %c2_58, %c0_59] : memref<1x12x6x4xbf16, #tpu.memory_space<vmem>>, vector<1x4x4x4xbf16>
    %58 = vector.shape_cast %57 : vector<1x4x4x4xbf16> to vector<4x4x4xbf16>
    %59 = vector.shape_cast %58 : vector<4x4x4xbf16> to vector<16x4xbf16>
    %c8 = arith.constant 8 : index
    %c0_60 = arith.constant 0 : index
    %c0_61 = arith.constant 0 : index
    %60 = vector.load %arg2[%c8, %c0_60, %c0_61] : memref<10x4x128xbf16, #tpu.memory_space<vmem>>, vector<1x4x128xbf16>
    %61 = vector.shape_cast %60 : vector<1x4x128xbf16> to vector<4x128xbf16>
    %cst_62 = arith.constant dense<0.000000e+00> : vector<16x128xf32>
    %62 = tpu.matmul %59, %61, %cst_62 {dimension_numbers = #tpu.dot_dimension_numbers<[1], [0], [0], [1], [0, 0, 1, 1], [], []>} : vector<16x4xbf16>, vector<4x128xbf16>, vector<16x128xf32> -> vector<16x128xf32>
    %63 = arith.addf %56, %62 : vector<16x128xf32>
    %c0_63 = arith.constant 0 : index
    %c7_64 = arith.constant 7 : index
    %c1_65 = arith.constant 1 : index
    %c0_66 = arith.constant 0 : index
    %64 = vector.load %arg1[%c0_63, %c7_64, %c1_65, %c0_66] : memref<1x12x6x4xbf16, #tpu.memory_space<vmem>>, vector<1x4x4x4xbf16>
    %65 = vector.shape_cast %64 : vector<1x4x4x4xbf16> to vector<4x4x4xbf16>
    %66 = vector.shape_cast %65 : vector<4x4x4xbf16> to vector<16x4xbf16>
    %c9 = arith.constant 9 : index
    %c0_67 = arith.constant 0 : index
    %c0_68 = arith.constant 0 : index
    %67 = vector.load %arg2[%c9, %c0_67, %c0_68] : memref<10x4x128xbf16, #tpu.memory_space<vmem>>, vector<1x4x128xbf16>
    %68 = vector.shape_cast %67 : vector<1x4x128xbf16> to vector<4x128xbf16>
    %cst_69 = arith.constant dense<0.000000e+00> : vector<16x128xf32>
    %69 = tpu.matmul %66, %68, %cst_69 {dimension_numbers = #tpu.dot_dimension_numbers<[1], [0], [0], [1], [0, 0, 1, 1], [], []>} : vector<16x4xbf16>, vector<4x128xbf16>, vector<16x128xf32> -> vector<16x128xf32>
    %70 = arith.addf %63, %69 : vector<16x128xf32>
    %c0_70 = arith.constant 0 : index
    %c0_71 = arith.constant 0 : index
    %c0_72 = arith.constant 0 : index
    %71 = vector.load %arg3[%c0_70, %c0_71, %c0_72] : memref<1x1x128xf32, #tpu.memory_space<vmem>>, vector<1x1x128xf32>
    %72 = vector.shape_cast %71 : vector<1x1x128xf32> to vector<1x128xf32>
    %73 = vector.broadcast %72 : vector<1x128xf32> to vector<16x128xf32>
    %74 = arith.addf %70, %73 : vector<16x128xf32>
    %cst_73 = arith.constant 0.000000e+00 : f32
    %75 = vector.broadcast %cst_73 : f32 to vector<16x128xf32>
    %76 = arith.cmpf oge, %74, %75 : vector<16x128xf32>
    %cst_74 = arith.constant 2.000000e-01 : f32
    %77 = vector.broadcast %cst_74 : f32 to vector<16x128xf32>
    %78 = arith.mulf %77, %74 : vector<16x128xf32>
    %79 = arith.select %76, %74, %78 : vector<16x128xi1>, vector<16x128xf32>
    %80 = arith.truncf %79 : vector<16x128xf32> to vector<16x128xbf16>
    %c0_75 = arith.constant 0 : index
    %c0_76 = arith.constant 0 : index
    %c0_77 = arith.constant 0 : index
    %81 = vector.load %arg4[%c0_75, %c0_76, %c0_77] : memref<1x16x128xbf16, #tpu.memory_space<vmem>>, vector<1x16x128xbf16>
    %82 = vector.shape_cast %81 : vector<1x16x128xbf16> to vector<16x128xbf16>
    %83 = vector.shape_cast %80 : vector<16x128xbf16> to vector<1x16x128xbf16>
    tpu.vector_store %arg4[%c0_75, %c0_76, %c0_77], %83 {strides = array<i32>} : memref<1x16x128xbf16, #tpu.memory_space<vmem>>, vector<1x16x128xbf16>,
    return
  }
  func.func @transform_0(%arg0: i32) -> (i32, i32, i32, i32) {
    %c0_i32 = arith.constant 0 : i32
    %c0_i32_0 = arith.constant 0 : i32
    %c0_i32_1 = arith.constant 0 : i32
    %c0_i32_2 = arith.constant 0 : i32
    return %arg0, %c0_i32, %c0_i32_0, %c0_i32_1 : i32, i32, i32, i32
  }
  func.func @transform_1(%arg0: i32) -> (i32, i32, i32) {
    %c0_i32 = arith.constant 0 : i32
    %c0_i32_0 = arith.constant 0 : i32
    %c0_i32_1 = arith.constant 0 : i32
    %c0_i32_2 = arith.constant 0 : i32
    return %c0_i32, %c0_i32_0, %c0_i32_1 : i32, i32, i32
  }
  func.func @transform_2(%arg0: i32) -> (i32, i32, i32) {
    %c0_i32 = arith.constant 0 : i32
    %c0_i32_0 = arith.constant 0 : i32
    %c0_i32_1 = arith.constant 0 : i32
    return %arg0, %c0_i32, %c0_i32_0 : i32, i32, i32
  }
  func.func @transform_3(%arg0: i32) -> (i32, i32, i32) {
    %c0_i32 = arith.constant 0 : i32
    %c0_i32_0 = arith.constant 0 : i32
    %c0_i32_1 = arith.constant 0 : i32
    return %arg0, %c0_i32, %c0_i32_0 : i32, i32, i32
  }
}

module attributes {stable_mosaic.version = 11 : i64} {
  func.func @_dhconv_kernel(%arg0: i32, %arg1: memref<1x12x3x8xbf16, #tpu.memory_space<vmem>>, %arg2: memref<16x8x128xbf16, #tpu.memory_space<vmem>>, %arg3: memref<1x1x128xf32, #tpu.memory_space<vmem>>, %arg4: memref<1x4x128xbf16, #tpu.memory_space<vmem>>) attributes {dimension_semantics = [#tpu.dimension_semantics<parallel>], iteration_bounds = array<i64: 2>, scalar_prefetch = 0 : i64, scratch_operands = 0 : i64, tpu.core_type = #tpu.core_type<tc>, window_params = [{transform_indices = @transform_0, window_bounds = array<i64: 1, 12, 3, 8>}, {pipeline_mode = #tpu.pipeline_mode<synchronous>, transform_indices = @transform_1, window_bounds = array<i64: 16, 8, 128>}, {transform_indices = @transform_2, window_bounds = array<i64: 1, 1, 128>}, {transform_indices = @transform_3, window_bounds = array<i64: 1, 4, 128>}]} {
    %cst = arith.constant 0.000000e+00 : f32
    %0 = vector.broadcast %cst : f32 to vector<4x128xf32>
    %c0 = arith.constant 0 : index
    %c0_0 = arith.constant 0 : index
    %c0_1 = arith.constant 0 : index
    %c0_2 = arith.constant 0 : index
    %1 = vector.load %arg1[%c0, %c0_0, %c0_1, %c0_2] : memref<1x12x3x8xbf16, #tpu.memory_space<vmem>>, vector<1x2x2x8xbf16>
    %2 = vector.shape_cast %1 : vector<1x2x2x8xbf16> to vector<2x2x8xbf16>
    %3 = vector.shape_cast %2 : vector<2x2x8xbf16> to vector<4x8xbf16>
    %c0_3 = arith.constant 0 : index
    %c0_4 = arith.constant 0 : index
    %c0_5 = arith.constant 0 : index
    %4 = vector.load %arg2[%c0_3, %c0_4, %c0_5] : memref<16x8x128xbf16, #tpu.memory_space<vmem>>, vector<1x8x128xbf16>
    %5 = vector.shape_cast %4 : vector<1x8x128xbf16> to vector<8x128xbf16>
    %cst_6 = arith.constant dense<0.000000e+00> : vector<4x128xf32>
    %6 = tpu.matmul %3, %5, %cst_6 {dimension_numbers = #tpu.dot_dimension_numbers<[1], [0], [0], [1], [0, 0, 1, 1], [], []>} : vector<4x8xbf16>, vector<8x128xbf16>, vector<4x128xf32> -> vector<4x128xf32>
    %7 = arith.addf %0, %6 : vector<4x128xf32>
    %c0_7 = arith.constant 0 : index
    %c3 = arith.constant 3 : index
    %c0_8 = arith.constant 0 : index
    %c0_9 = arith.constant 0 : index
    %8 = vector.load %arg1[%c0_7, %c3, %c0_8, %c0_9] : memref<1x12x3x8xbf16, #tpu.memory_space<vmem>>, vector<1x2x2x8xbf16>
    %9 = vector.shape_cast %8 : vector<1x2x2x8xbf16> to vector<2x2x8xbf16>
    %10 = vector.shape_cast %9 : vector<2x2x8xbf16> to vector<4x8xbf16>
    %c1 = arith.constant 1 : index
    %c0_10 = arith.constant 0 : index
    %c0_11 = arith.constant 0 : index
    %11 = vector.load %arg2[%c1, %c0_10, %c0_11] : memref<16x8x128xbf16, #tpu.memory_space<vmem>>, vector<1x8x128xbf16>
    %12 = vector.shape_cast %11 : vector<1x8x128xbf16> to vector<8x128xbf16>
    %cst_12 = arith.constant dense<0.000000e+00> : vector<4x128xf32>
    %13 = tpu.matmul %10, %12, %cst_12 {dimension_numbers = #tpu.dot_dimension_numbers<[1], [0], [0], [1], [0, 0, 1, 1], [], []>} : vector<4x8xbf16>, vector<8x128xbf16>, vector<4x128xf32> -> vector<4x128xf32>
    %14 = arith.addf %7, %13 : vector<4x128xf32>
    %c0_13 = arith.constant 0 : index
    %c0_14 = arith.constant 0 : index
    %c1_15 = arith.constant 1 : index
    %c0_16 = arith.constant 0 : index
    %15 = vector.load %arg1[%c0_13, %c0_14, %c1_15, %c0_16] : memref<1x12x3x8xbf16, #tpu.memory_space<vmem>>, vector<1x2x2x8xbf16>
    %16 = vector.shape_cast %15 : vector<1x2x2x8xbf16> to vector<2x2x8xbf16>
    %17 = vector.shape_cast %16 : vector<2x2x8xbf16> to vector<4x8xbf16>
    %c2 = arith.constant 2 : index
    %c0_17 = arith.constant 0 : index
    %c0_18 = arith.constant 0 : index
    %18 = vector.load %arg2[%c2, %c0_17, %c0_18] : memref<16x8x128xbf16, #tpu.memory_space<vmem>>, vector<1x8x128xbf16>
    %19 = vector.shape_cast %18 : vector<1x8x128xbf16> to vector<8x128xbf16>
    %cst_19 = arith.constant dense<0.000000e+00> : vector<4x128xf32>
    %20 = tpu.matmul %17, %19, %cst_19 {dimension_numbers = #tpu.dot_dimension_numbers<[1], [0], [0], [1], [0, 0, 1, 1], [], []>} : vector<4x8xbf16>, vector<8x128xbf16>, vector<4x128xf32> -> vector<4x128xf32>
    %21 = arith.addf %14, %20 : vector<4x128xf32>
    %c0_20 = arith.constant 0 : index
    %c3_21 = arith.constant 3 : index
    %c1_22 = arith.constant 1 : index
    %c0_23 = arith.constant 0 : index
    %22 = vector.load %arg1[%c0_20, %c3_21, %c1_22, %c0_23] : memref<1x12x3x8xbf16, #tpu.memory_space<vmem>>, vector<1x2x2x8xbf16>
    %23 = vector.shape_cast %22 : vector<1x2x2x8xbf16> to vector<2x2x8xbf16>
    %24 = vector.shape_cast %23 : vector<2x2x8xbf16> to vector<4x8xbf16>
    %c3_24 = arith.constant 3 : index
    %c0_25 = arith.constant 0 : index
    %c0_26 = arith.constant 0 : index
    %25 = vector.load %arg2[%c3_24, %c0_25, %c0_26] : memref<16x8x128xbf16, #tpu.memory_space<vmem>>, vector<1x8x128xbf16>
    %26 = vector.shape_cast %25 : vector<1x8x128xbf16> to vector<8x128xbf16>
    %cst_27 = arith.constant dense<0.000000e+00> : vector<4x128xf32>
    %27 = tpu.matmul %24, %26, %cst_27 {dimension_numbers = #tpu.dot_dimension_numbers<[1], [0], [0], [1], [0, 0, 1, 1], [], []>} : vector<4x8xbf16>, vector<8x128xbf16>, vector<4x128xf32> -> vector<4x128xf32>
    %28 = arith.addf %21, %27 : vector<4x128xf32>
    %c0_28 = arith.constant 0 : index
    %c6 = arith.constant 6 : index
    %c0_29 = arith.constant 0 : index
    %c0_30 = arith.constant 0 : index
    %29 = vector.load %arg1[%c0_28, %c6, %c0_29, %c0_30] : memref<1x12x3x8xbf16, #tpu.memory_space<vmem>>, vector<1x2x2x8xbf16>
    %30 = vector.shape_cast %29 : vector<1x2x2x8xbf16> to vector<2x2x8xbf16>
    %31 = vector.shape_cast %30 : vector<2x2x8xbf16> to vector<4x8xbf16>
    %c4 = arith.constant 4 : index
    %c0_31 = arith.constant 0 : index
    %c0_32 = arith.constant 0 : index
    %32 = vector.load %arg2[%c4, %c0_31, %c0_32] : memref<16x8x128xbf16, #tpu.memory_space<vmem>>, vector<1x8x128xbf16>
    %33 = vector.shape_cast %32 : vector<1x8x128xbf16> to vector<8x128xbf16>
    %cst_33 = arith.constant dense<0.000000e+00> : vector<4x128xf32>
    %34 = tpu.matmul %31, %33, %cst_33 {dimension_numbers = #tpu.dot_dimension_numbers<[1], [0], [0], [1], [0, 0, 1, 1], [], []>} : vector<4x8xbf16>, vector<8x128xbf16>, vector<4x128xf32> -> vector<4x128xf32>
    %35 = arith.addf %28, %34 : vector<4x128xf32>
    %c0_34 = arith.constant 0 : index
    %c9 = arith.constant 9 : index
    %c0_35 = arith.constant 0 : index
    %c0_36 = arith.constant 0 : index
    %36 = vector.load %arg1[%c0_34, %c9, %c0_35, %c0_36] : memref<1x12x3x8xbf16, #tpu.memory_space<vmem>>, vector<1x2x2x8xbf16>
    %37 = vector.shape_cast %36 : vector<1x2x2x8xbf16> to vector<2x2x8xbf16>
    %38 = vector.shape_cast %37 : vector<2x2x8xbf16> to vector<4x8xbf16>
    %c5 = arith.constant 5 : index
    %c0_37 = arith.constant 0 : index
    %c0_38 = arith.constant 0 : index
    %39 = vector.load %arg2[%c5, %c0_37, %c0_38] : memref<16x8x128xbf16, #tpu.memory_space<vmem>>, vector<1x8x128xbf16>
    %40 = vector.shape_cast %39 : vector<1x8x128xbf16> to vector<8x128xbf16>
    %cst_39 = arith.constant dense<0.000000e+00> : vector<4x128xf32>
    %41 = tpu.matmul %38, %40, %cst_39 {dimension_numbers = #tpu.dot_dimension_numbers<[1], [0], [0], [1], [0, 0, 1, 1], [], []>} : vector<4x8xbf16>, vector<8x128xbf16>, vector<4x128xf32> -> vector<4x128xf32>
    %42 = arith.addf %35, %41 : vector<4x128xf32>
    %c0_40 = arith.constant 0 : index
    %c6_41 = arith.constant 6 : index
    %c1_42 = arith.constant 1 : index
    %c0_43 = arith.constant 0 : index
    %43 = vector.load %arg1[%c0_40, %c6_41, %c1_42, %c0_43] : memref<1x12x3x8xbf16, #tpu.memory_space<vmem>>, vector<1x2x2x8xbf16>
    %44 = vector.shape_cast %43 : vector<1x2x2x8xbf16> to vector<2x2x8xbf16>
    %45 = vector.shape_cast %44 : vector<2x2x8xbf16> to vector<4x8xbf16>
    %c6_44 = arith.constant 6 : index
    %c0_45 = arith.constant 0 : index
    %c0_46 = arith.constant 0 : index
    %46 = vector.load %arg2[%c6_44, %c0_45, %c0_46] : memref<16x8x128xbf16, #tpu.memory_space<vmem>>, vector<1x8x128xbf16>
    %47 = vector.shape_cast %46 : vector<1x8x128xbf16> to vector<8x128xbf16>
    %cst_47 = arith.constant dense<0.000000e+00> : vector<4x128xf32>
    %48 = tpu.matmul %45, %47, %cst_47 {dimension_numbers = #tpu.dot_dimension_numbers<[1], [0], [0], [1], [0, 0, 1, 1], [], []>} : vector<4x8xbf16>, vector<8x128xbf16>, vector<4x128xf32> -> vector<4x128xf32>
    %49 = arith.addf %42, %48 : vector<4x128xf32>
    %c0_48 = arith.constant 0 : index
    %c9_49 = arith.constant 9 : index
    %c1_50 = arith.constant 1 : index
    %c0_51 = arith.constant 0 : index
    %50 = vector.load %arg1[%c0_48, %c9_49, %c1_50, %c0_51] : memref<1x12x3x8xbf16, #tpu.memory_space<vmem>>, vector<1x2x2x8xbf16>
    %51 = vector.shape_cast %50 : vector<1x2x2x8xbf16> to vector<2x2x8xbf16>
    %52 = vector.shape_cast %51 : vector<2x2x8xbf16> to vector<4x8xbf16>
    %c7 = arith.constant 7 : index
    %c0_52 = arith.constant 0 : index
    %c0_53 = arith.constant 0 : index
    %53 = vector.load %arg2[%c7, %c0_52, %c0_53] : memref<16x8x128xbf16, #tpu.memory_space<vmem>>, vector<1x8x128xbf16>
    %54 = vector.shape_cast %53 : vector<1x8x128xbf16> to vector<8x128xbf16>
    %cst_54 = arith.constant dense<0.000000e+00> : vector<4x128xf32>
    %55 = tpu.matmul %52, %54, %cst_54 {dimension_numbers = #tpu.dot_dimension_numbers<[1], [0], [0], [1], [0, 0, 1, 1], [], []>} : vector<4x8xbf16>, vector<8x128xbf16>, vector<4x128xf32> -> vector<4x128xf32>
    %56 = arith.addf %49, %55 : vector<4x128xf32>
    %c0_55 = arith.constant 0 : index
    %c1_56 = arith.constant 1 : index
    %c0_57 = arith.constant 0 : index
    %c0_58 = arith.constant 0 : index
    %57 = vector.load %arg1[%c0_55, %c1_56, %c0_57, %c0_58] : memref<1x12x3x8xbf16, #tpu.memory_space<vmem>>, vector<1x2x2x8xbf16>
    %58 = vector.shape_cast %57 : vector<1x2x2x8xbf16> to vector<2x2x8xbf16>
    %59 = vector.shape_cast %58 : vector<2x2x8xbf16> to vector<4x8xbf16>
    %c8 = arith.constant 8 : index
    %c0_59 = arith.constant 0 : index
    %c0_60 = arith.constant 0 : index
    %60 = vector.load %arg2[%c8, %c0_59, %c0_60] : memref<16x8x128xbf16, #tpu.memory_space<vmem>>, vector<1x8x128xbf16>
    %61 = vector.shape_cast %60 : vector<1x8x128xbf16> to vector<8x128xbf16>
    %cst_61 = arith.constant dense<0.000000e+00> : vector<4x128xf32>
    %62 = tpu.matmul %59, %61, %cst_61 {dimension_numbers = #tpu.dot_dimension_numbers<[1], [0], [0], [1], [0, 0, 1, 1], [], []>} : vector<4x8xbf16>, vector<8x128xbf16>, vector<4x128xf32> -> vector<4x128xf32>
    %63 = arith.addf %56, %62 : vector<4x128xf32>
    %c0_62 = arith.constant 0 : index
    %c4_63 = arith.constant 4 : index
    %c0_64 = arith.constant 0 : index
    %c0_65 = arith.constant 0 : index
    %64 = vector.load %arg1[%c0_62, %c4_63, %c0_64, %c0_65] : memref<1x12x3x8xbf16, #tpu.memory_space<vmem>>, vector<1x2x2x8xbf16>
    %65 = vector.shape_cast %64 : vector<1x2x2x8xbf16> to vector<2x2x8xbf16>
    %66 = vector.shape_cast %65 : vector<2x2x8xbf16> to vector<4x8xbf16>
    %c9_66 = arith.constant 9 : index
    %c0_67 = arith.constant 0 : index
    %c0_68 = arith.constant 0 : index
    %67 = vector.load %arg2[%c9_66, %c0_67, %c0_68] : memref<16x8x128xbf16, #tpu.memory_space<vmem>>, vector<1x8x128xbf16>
    %68 = vector.shape_cast %67 : vector<1x8x128xbf16> to vector<8x128xbf16>
    %cst_69 = arith.constant dense<0.000000e+00> : vector<4x128xf32>
    %69 = tpu.matmul %66, %68, %cst_69 {dimension_numbers = #tpu.dot_dimension_numbers<[1], [0], [0], [1], [0, 0, 1, 1], [], []>} : vector<4x8xbf16>, vector<8x128xbf16>, vector<4x128xf32> -> vector<4x128xf32>
    %70 = arith.addf %63, %69 : vector<4x128xf32>
    %c0_70 = arith.constant 0 : index
    %c1_71 = arith.constant 1 : index
    %c1_72 = arith.constant 1 : index
    %c0_73 = arith.constant 0 : index
    %71 = vector.load %arg1[%c0_70, %c1_71, %c1_72, %c0_73] : memref<1x12x3x8xbf16, #tpu.memory_space<vmem>>, vector<1x2x2x8xbf16>
    %72 = vector.shape_cast %71 : vector<1x2x2x8xbf16> to vector<2x2x8xbf16>
    %73 = vector.shape_cast %72 : vector<2x2x8xbf16> to vector<4x8xbf16>
    %c10 = arith.constant 10 : index
    %c0_74 = arith.constant 0 : index
    %c0_75 = arith.constant 0 : index
    %74 = vector.load %arg2[%c10, %c0_74, %c0_75] : memref<16x8x128xbf16, #tpu.memory_space<vmem>>, vector<1x8x128xbf16>
    %75 = vector.shape_cast %74 : vector<1x8x128xbf16> to vector<8x128xbf16>
    %cst_76 = arith.constant dense<0.000000e+00> : vector<4x128xf32>
    %76 = tpu.matmul %73, %75, %cst_76 {dimension_numbers = #tpu.dot_dimension_numbers<[1], [0], [0], [1], [0, 0, 1, 1], [], []>} : vector<4x8xbf16>, vector<8x128xbf16>, vector<4x128xf32> -> vector<4x128xf32>
    %77 = arith.addf %70, %76 : vector<4x128xf32>
    %c0_77 = arith.constant 0 : index
    %c4_78 = arith.constant 4 : index
    %c1_79 = arith.constant 1 : index
    %c0_80 = arith.constant 0 : index
    %78 = vector.load %arg1[%c0_77, %c4_78, %c1_79, %c0_80] : memref<1x12x3x8xbf16, #tpu.memory_space<vmem>>, vector<1x2x2x8xbf16>
    %79 = vector.shape_cast %78 : vector<1x2x2x8xbf16> to vector<2x2x8xbf16>
    %80 = vector.shape_cast %79 : vector<2x2x8xbf16> to vector<4x8xbf16>
    %c11 = arith.constant 11 : index
    %c0_81 = arith.constant 0 : index
    %c0_82 = arith.constant 0 : index
    %81 = vector.load %arg2[%c11, %c0_81, %c0_82] : memref<16x8x128xbf16, #tpu.memory_space<vmem>>, vector<1x8x128xbf16>
    %82 = vector.shape_cast %81 : vector<1x8x128xbf16> to vector<8x128xbf16>
    %cst_83 = arith.constant dense<0.000000e+00> : vector<4x128xf32>
    %83 = tpu.matmul %80, %82, %cst_83 {dimension_numbers = #tpu.dot_dimension_numbers<[1], [0], [0], [1], [0, 0, 1, 1], [], []>} : vector<4x8xbf16>, vector<8x128xbf16>, vector<4x128xf32> -> vector<4x128xf32>
    %84 = arith.addf %77, %83 : vector<4x128xf32>
    %c0_84 = arith.constant 0 : index
    %c7_85 = arith.constant 7 : index
    %c0_86 = arith.constant 0 : index
    %c0_87 = arith.constant 0 : index
    %85 = vector.load %arg1[%c0_84, %c7_85, %c0_86, %c0_87] : memref<1x12x3x8xbf16, #tpu.memory_space<vmem>>, vector<1x2x2x8xbf16>
    %86 = vector.shape_cast %85 : vector<1x2x2x8xbf16> to vector<2x2x8xbf16>
    %87 = vector.shape_cast %86 : vector<2x2x8xbf16> to vector<4x8xbf16>
    %c12 = arith.constant 12 : index
    %c0_88 = arith.constant 0 : index
    %c0_89 = arith.constant 0 : index
    %88 = vector.load %arg2[%c12, %c0_88, %c0_89] : memref<16x8x128xbf16, #tpu.memory_space<vmem>>, vector<1x8x128xbf16>
    %89 = vector.shape_cast %88 : vector<1x8x128xbf16> to vector<8x128xbf16>
    %cst_90 = arith.constant dense<0.000000e+00> : vector<4x128xf32>
    %90 = tpu.matmul %87, %89, %cst_90 {dimension_numbers = #tpu.dot_dimension_numbers<[1], [0], [0], [1], [0, 0, 1, 1], [], []>} : vector<4x8xbf16>, vector<8x128xbf16>, vector<4x128xf32> -> vector<4x128xf32>
    %91 = arith.addf %84, %90 : vector<4x128xf32>
    %c0_91 = arith.constant 0 : index
    %c10_92 = arith.constant 10 : index
    %c0_93 = arith.constant 0 : index
    %c0_94 = arith.constant 0 : index
    %92 = vector.load %arg1[%c0_91, %c10_92, %c0_93, %c0_94] : memref<1x12x3x8xbf16, #tpu.memory_space<vmem>>, vector<1x2x2x8xbf16>
    %93 = vector.shape_cast %92 : vector<1x2x2x8xbf16> to vector<2x2x8xbf16>
    %94 = vector.shape_cast %93 : vector<2x2x8xbf16> to vector<4x8xbf16>
    %c13 = arith.constant 13 : index
    %c0_95 = arith.constant 0 : index
    %c0_96 = arith.constant 0 : index
    %95 = vector.load %arg2[%c13, %c0_95, %c0_96] : memref<16x8x128xbf16, #tpu.memory_space<vmem>>, vector<1x8x128xbf16>
    %96 = vector.shape_cast %95 : vector<1x8x128xbf16> to vector<8x128xbf16>
    %cst_97 = arith.constant dense<0.000000e+00> : vector<4x128xf32>
    %97 = tpu.matmul %94, %96, %cst_97 {dimension_numbers = #tpu.dot_dimension_numbers<[1], [0], [0], [1], [0, 0, 1, 1], [], []>} : vector<4x8xbf16>, vector<8x128xbf16>, vector<4x128xf32> -> vector<4x128xf32>
    %98 = arith.addf %91, %97 : vector<4x128xf32>
    %c0_98 = arith.constant 0 : index
    %c7_99 = arith.constant 7 : index
    %c1_100 = arith.constant 1 : index
    %c0_101 = arith.constant 0 : index
    %99 = vector.load %arg1[%c0_98, %c7_99, %c1_100, %c0_101] : memref<1x12x3x8xbf16, #tpu.memory_space<vmem>>, vector<1x2x2x8xbf16>
    %100 = vector.shape_cast %99 : vector<1x2x2x8xbf16> to vector<2x2x8xbf16>
    %101 = vector.shape_cast %100 : vector<2x2x8xbf16> to vector<4x8xbf16>
    %c14 = arith.constant 14 : index
    %c0_102 = arith.constant 0 : index
    %c0_103 = arith.constant 0 : index
    %102 = vector.load %arg2[%c14, %c0_102, %c0_103] : memref<16x8x128xbf16, #tpu.memory_space<vmem>>, vector<1x8x128xbf16>
    %103 = vector.shape_cast %102 : vector<1x8x128xbf16> to vector<8x128xbf16>
    %cst_104 = arith.constant dense<0.000000e+00> : vector<4x128xf32>
    %104 = tpu.matmul %101, %103, %cst_104 {dimension_numbers = #tpu.dot_dimension_numbers<[1], [0], [0], [1], [0, 0, 1, 1], [], []>} : vector<4x8xbf16>, vector<8x128xbf16>, vector<4x128xf32> -> vector<4x128xf32>
    %105 = arith.addf %98, %104 : vector<4x128xf32>
    %c0_105 = arith.constant 0 : index
    %c10_106 = arith.constant 10 : index
    %c1_107 = arith.constant 1 : index
    %c0_108 = arith.constant 0 : index
    %106 = vector.load %arg1[%c0_105, %c10_106, %c1_107, %c0_108] : memref<1x12x3x8xbf16, #tpu.memory_space<vmem>>, vector<1x2x2x8xbf16>
    %107 = vector.shape_cast %106 : vector<1x2x2x8xbf16> to vector<2x2x8xbf16>
    %108 = vector.shape_cast %107 : vector<2x2x8xbf16> to vector<4x8xbf16>
    %c15 = arith.constant 15 : index
    %c0_109 = arith.constant 0 : index
    %c0_110 = arith.constant 0 : index
    %109 = vector.load %arg2[%c15, %c0_109, %c0_110] : memref<16x8x128xbf16, #tpu.memory_space<vmem>>, vector<1x8x128xbf16>
    %110 = vector.shape_cast %109 : vector<1x8x128xbf16> to vector<8x128xbf16>
    %cst_111 = arith.constant dense<0.000000e+00> : vector<4x128xf32>
    %111 = tpu.matmul %108, %110, %cst_111 {dimension_numbers = #tpu.dot_dimension_numbers<[1], [0], [0], [1], [0, 0, 1, 1], [], []>} : vector<4x8xbf16>, vector<8x128xbf16>, vector<4x128xf32> -> vector<4x128xf32>
    %112 = arith.addf %105, %111 : vector<4x128xf32>
    %c0_112 = arith.constant 0 : index
    %c0_113 = arith.constant 0 : index
    %c0_114 = arith.constant 0 : index
    %113 = vector.load %arg3[%c0_112, %c0_113, %c0_114] : memref<1x1x128xf32, #tpu.memory_space<vmem>>, vector<1x1x128xf32>
    %114 = vector.shape_cast %113 : vector<1x1x128xf32> to vector<1x128xf32>
    %115 = vector.broadcast %114 : vector<1x128xf32> to vector<4x128xf32>
    %116 = arith.addf %112, %115 : vector<4x128xf32>
    %cst_115 = arith.constant 0.000000e+00 : f32
    %117 = vector.broadcast %cst_115 : f32 to vector<4x128xf32>
    %118 = arith.cmpf oge, %116, %117 : vector<4x128xf32>
    %cst_116 = arith.constant 2.000000e-01 : f32
    %119 = vector.broadcast %cst_116 : f32 to vector<4x128xf32>
    %120 = arith.mulf %119, %116 : vector<4x128xf32>
    %121 = arith.select %118, %116, %120 : vector<4x128xi1>, vector<4x128xf32>
    %122 = arith.truncf %121 : vector<4x128xf32> to vector<4x128xbf16>
    %c0_117 = arith.constant 0 : index
    %c0_118 = arith.constant 0 : index
    %c0_119 = arith.constant 0 : index
    %123 = vector.load %arg4[%c0_117, %c0_118, %c0_119] : memref<1x4x128xbf16, #tpu.memory_space<vmem>>, vector<1x4x128xbf16>
    %124 = vector.shape_cast %123 : vector<1x4x128xbf16> to vector<4x128xbf16>
    %125 = vector.shape_cast %122 : vector<4x128xbf16> to vector<1x4x128xbf16>
    tpu.vector_store %arg4[%c0_117, %c0_118, %c0_119], %125 {strides = array<i32>} : memref<1x4x128xbf16, #tpu.memory_space<vmem>>, vector<1x4x128xbf16>,
    return
  }
  func.func @transform_0(%arg0: i32) -> (i32, i32, i32, i32) {
    %c0_i32 = arith.constant 0 : i32
    %c0_i32_0 = arith.constant 0 : i32
    %c0_i32_1 = arith.constant 0 : i32
    %c0_i32_2 = arith.constant 0 : i32
    return %arg0, %c0_i32, %c0_i32_0, %c0_i32_1 : i32, i32, i32, i32
  }
  func.func @transform_1(%arg0: i32) -> (i32, i32, i32) {
    %c0_i32 = arith.constant 0 : i32
    %c0_i32_0 = arith.constant 0 : i32
    %c0_i32_1 = arith.constant 0 : i32
    %c0_i32_2 = arith.constant 0 : i32
    return %c0_i32, %c0_i32_0, %c0_i32_1 : i32, i32, i32
  }
  func.func @transform_2(%arg0: i32) -> (i32, i32, i32) {
    %c0_i32 = arith.constant 0 : i32
    %c0_i32_0 = arith.constant 0 : i32
    %c0_i32_1 = arith.constant 0 : i32
    return %arg0, %c0_i32, %c0_i32_0 : i32, i32, i32
  }
  func.func @transform_3(%arg0: i32) -> (i32, i32, i32) {
    %c0_i32 = arith.constant 0 : i32
    %c0_i32_0 = arith.constant 0 : i32
    %c0_i32_1 = arith.constant 0 : i32
    return %arg0, %c0_i32, %c0_i32_0 : i32, i32, i32
  }
}

module attributes {stable_mosaic.version = 11 : i64} {
  func.func @_dhconv_kernel(%arg0: i32, %arg1: memref<1x8x4x8xbf16, #tpu.memory_space<vmem>>, %arg2: memref<10x8x128xbf16, #tpu.memory_space<vmem>>, %arg3: memref<1x1x128xf32, #tpu.memory_space<vmem>>, %arg4: memref<1x4x128xbf16, #tpu.memory_space<vmem>>) attributes {dimension_semantics = [#tpu.dimension_semantics<parallel>], iteration_bounds = array<i64: 2>, scalar_prefetch = 0 : i64, scratch_operands = 0 : i64, tpu.core_type = #tpu.core_type<tc>, window_params = [{transform_indices = @transform_0, window_bounds = array<i64: 1, 8, 4, 8>}, {pipeline_mode = #tpu.pipeline_mode<synchronous>, transform_indices = @transform_1, window_bounds = array<i64: 10, 8, 128>}, {transform_indices = @transform_2, window_bounds = array<i64: 1, 1, 128>}, {transform_indices = @transform_3, window_bounds = array<i64: 1, 4, 128>}]} {
    %cst = arith.constant 0.000000e+00 : f32
    %0 = vector.broadcast %cst : f32 to vector<4x128xf32>
    %c0 = arith.constant 0 : index
    %c0_0 = arith.constant 0 : index
    %c0_1 = arith.constant 0 : index
    %c0_2 = arith.constant 0 : index
    %1 = vector.load %arg1[%c0, %c0_0, %c0_1, %c0_2] : memref<1x8x4x8xbf16, #tpu.memory_space<vmem>>, vector<1x2x2x8xbf16>
    %2 = vector.shape_cast %1 : vector<1x2x2x8xbf16> to vector<2x2x8xbf16>
    %3 = vector.shape_cast %2 : vector<2x2x8xbf16> to vector<4x8xbf16>
    %c0_3 = arith.constant 0 : index
    %c0_4 = arith.constant 0 : index
    %c0_5 = arith.constant 0 : index
    %4 = vector.load %arg2[%c0_3, %c0_4, %c0_5] : memref<10x8x128xbf16, #tpu.memory_space<vmem>>, vector<1x8x128xbf16>
    %5 = vector.shape_cast %4 : vector<1x8x128xbf16> to vector<8x128xbf16>
    %cst_6 = arith.constant dense<0.000000e+00> : vector<4x128xf32>
    %6 = tpu.matmul %3, %5, %cst_6 {dimension_numbers = #tpu.dot_dimension_numbers<[1], [0], [0], [1], [0, 0, 1, 1], [], []>} : vector<4x8xbf16>, vector<8x128xbf16>, vector<4x128xf32> -> vector<4x128xf32>
    %7 = arith.addf %0, %6 : vector<4x128xf32>
    %c0_7 = arith.constant 0 : index
    %c0_8 = arith.constant 0 : index
    %c1 = arith.constant 1 : index
    %c0_9 = arith.constant 0 : index
    %8 = vector.load %arg1[%c0_7, %c0_8, %c1, %c0_9] : memref<1x8x4x8xbf16, #tpu.memory_space<vmem>>, vector<1x2x2x8xbf16>
    %9 = vector.shape_cast %8 : vector<1x2x2x8xbf16> to vector<2x2x8xbf16>
    %10 = vector.shape_cast %9 : vector<2x2x8xbf16> to vector<4x8xbf16>
    %c1_10 = arith.constant 1 : index
    %c0_11 = arith.constant 0 : index
    %c0_12 = arith.constant 0 : index
    %11 = vector.load %arg2[%c1_10, %c0_11, %c0_12] : memref<10x8x128xbf16, #tpu.memory_space<vmem>>, vector<1x8x128xbf16>
    %12 = vector.shape_cast %11 : vector<1x8x128xbf16> to vector<8x128xbf16>
    %cst_13 = arith.constant dense<0.000000e+00> : vector<4x128xf32>
    %13 = tpu.matmul %10, %12, %cst_13 {dimension_numbers = #tpu.dot_dimension_numbers<[1], [0], [0], [1], [0, 0, 1, 1], [], []>} : vector<4x8xbf16>, vector<8x128xbf16>, vector<4x128xf32> -> vector<4x128xf32>
    %14 = arith.addf %7, %13 : vector<4x128xf32>
    %c0_14 = arith.constant 0 : index
    %c0_15 = arith.constant 0 : index
    %c2 = arith.constant 2 : index
    %c0_16 = arith.constant 0 : index
    %15 = vector.load %arg1[%c0_14, %c0_15, %c2, %c0_16] : memref<1x8x4x8xbf16, #tpu.memory_space<vmem>>, vector<1x2x2x8xbf16>
    %16 = vector.shape_cast %15 : vector<1x2x2x8xbf16> to vector<2x2x8xbf16>
    %17 = vector.shape_cast %16 : vector<2x2x8xbf16> to vector<4x8xbf16>
    %c2_17 = arith.constant 2 : index
    %c0_18 = arith.constant 0 : index
    %c0_19 = arith.constant 0 : index
    %18 = vector.load %arg2[%c2_17, %c0_18, %c0_19] : memref<10x8x128xbf16, #tpu.memory_space<vmem>>, vector<1x8x128xbf16>
    %19 = vector.shape_cast %18 : vector<1x8x128xbf16> to vector<8x128xbf16>
    %cst_20 = arith.constant dense<0.000000e+00> : vector<4x128xf32>
    %20 = tpu.matmul %17, %19, %cst_20 {dimension_numbers = #tpu.dot_dimension_numbers<[1], [0], [0], [1], [0, 0, 1, 1], [], []>} : vector<4x8xbf16>, vector<8x128xbf16>, vector<4x128xf32> -> vector<4x128xf32>
    %21 = arith.addf %14, %20 : vector<4x128xf32>
    %c0_21 = arith.constant 0 : index
    %c1_22 = arith.constant 1 : index
    %c0_23 = arith.constant 0 : index
    %c0_24 = arith.constant 0 : index
    %22 = vector.load %arg1[%c0_21, %c1_22, %c0_23, %c0_24] : memref<1x8x4x8xbf16, #tpu.memory_space<vmem>>, vector<1x2x2x8xbf16>
    %23 = vector.shape_cast %22 : vector<1x2x2x8xbf16> to vector<2x2x8xbf16>
    %24 = vector.shape_cast %23 : vector<2x2x8xbf16> to vector<4x8xbf16>
    %c3 = arith.constant 3 : index
    %c0_25 = arith.constant 0 : index
    %c0_26 = arith.constant 0 : index
    %25 = vector.load %arg2[%c3, %c0_25, %c0_26] : memref<10x8x128xbf16, #tpu.memory_space<vmem>>, vector<1x8x128xbf16>
    %26 = vector.shape_cast %25 : vector<1x8x128xbf16> to vector<8x128xbf16>
    %cst_27 = arith.constant dense<0.000000e+00> : vector<4x128xf32>
    %27 = tpu.matmul %24, %26, %cst_27 {dimension_numbers = #tpu.dot_dimension_numbers<[1], [0], [0], [1], [0, 0, 1, 1], [], []>} : vector<4x8xbf16>, vector<8x128xbf16>, vector<4x128xf32> -> vector<4x128xf32>
    %28 = arith.addf %21, %27 : vector<4x128xf32>
    %c0_28 = arith.constant 0 : index
    %c1_29 = arith.constant 1 : index
    %c1_30 = arith.constant 1 : index
    %c0_31 = arith.constant 0 : index
    %29 = vector.load %arg1[%c0_28, %c1_29, %c1_30, %c0_31] : memref<1x8x4x8xbf16, #tpu.memory_space<vmem>>, vector<1x2x2x8xbf16>
    %30 = vector.shape_cast %29 : vector<1x2x2x8xbf16> to vector<2x2x8xbf16>
    %31 = vector.shape_cast %30 : vector<2x2x8xbf16> to vector<4x8xbf16>
    %c4 = arith.constant 4 : index
    %c0_32 = arith.constant 0 : index
    %c0_33 = arith.constant 0 : index
    %32 = vector.load %arg2[%c4, %c0_32, %c0_33] : memref<10x8x128xbf16, #tpu.memory_space<vmem>>, vector<1x8x128xbf16>
    %33 = vector.shape_cast %32 : vector<1x8x128xbf16> to vector<8x128xbf16>
    %cst_34 = arith.constant dense<0.000000e+00> : vector<4x128xf32>
    %34 = tpu.matmul %31, %33, %cst_34 {dimension_numbers = #tpu.dot_dimension_numbers<[1], [0], [0], [1], [0, 0, 1, 1], [], []>} : vector<4x8xbf16>, vector<8x128xbf16>, vector<4x128xf32> -> vector<4x128xf32>
    %35 = arith.addf %28, %34 : vector<4x128xf32>
    %c0_35 = arith.constant 0 : index
    %c1_36 = arith.constant 1 : index
    %c2_37 = arith.constant 2 : index
    %c0_38 = arith.constant 0 : index
    %36 = vector.load %arg1[%c0_35, %c1_36, %c2_37, %c0_38] : memref<1x8x4x8xbf16, #tpu.memory_space<vmem>>, vector<1x2x2x8xbf16>
    %37 = vector.shape_cast %36 : vector<1x2x2x8xbf16> to vector<2x2x8xbf16>
    %38 = vector.shape_cast %37 : vector<2x2x8xbf16> to vector<4x8xbf16>
    %c5 = arith.constant 5 : index
    %c0_39 = arith.constant 0 : index
    %c0_40 = arith.constant 0 : index
    %39 = vector.load %arg2[%c5, %c0_39, %c0_40] : memref<10x8x128xbf16, #tpu.memory_space<vmem>>, vector<1x8x128xbf16>
    %40 = vector.shape_cast %39 : vector<1x8x128xbf16> to vector<8x128xbf16>
    %cst_41 = arith.constant dense<0.000000e+00> : vector<4x128xf32>
    %41 = tpu.matmul %38, %40, %cst_41 {dimension_numbers = #tpu.dot_dimension_numbers<[1], [0], [0], [1], [0, 0, 1, 1], [], []>} : vector<4x8xbf16>, vector<8x128xbf16>, vector<4x128xf32> -> vector<4x128xf32>
    %42 = arith.addf %35, %41 : vector<4x128xf32>
    %c0_42 = arith.constant 0 : index
    %c2_43 = arith.constant 2 : index
    %c0_44 = arith.constant 0 : index
    %c0_45 = arith.constant 0 : index
    %43 = vector.load %arg1[%c0_42, %c2_43, %c0_44, %c0_45] : memref<1x8x4x8xbf16, #tpu.memory_space<vmem>>, vector<1x2x2x8xbf16>
    %44 = vector.shape_cast %43 : vector<1x2x2x8xbf16> to vector<2x2x8xbf16>
    %45 = vector.shape_cast %44 : vector<2x2x8xbf16> to vector<4x8xbf16>
    %c6 = arith.constant 6 : index
    %c0_46 = arith.constant 0 : index
    %c0_47 = arith.constant 0 : index
    %46 = vector.load %arg2[%c6, %c0_46, %c0_47] : memref<10x8x128xbf16, #tpu.memory_space<vmem>>, vector<1x8x128xbf16>
    %47 = vector.shape_cast %46 : vector<1x8x128xbf16> to vector<8x128xbf16>
    %cst_48 = arith.constant dense<0.000000e+00> : vector<4x128xf32>
    %48 = tpu.matmul %45, %47, %cst_48 {dimension_numbers = #tpu.dot_dimension_numbers<[1], [0], [0], [1], [0, 0, 1, 1], [], []>} : vector<4x8xbf16>, vector<8x128xbf16>, vector<4x128xf32> -> vector<4x128xf32>
    %49 = arith.addf %42, %48 : vector<4x128xf32>
    %c0_49 = arith.constant 0 : index
    %c2_50 = arith.constant 2 : index
    %c1_51 = arith.constant 1 : index
    %c0_52 = arith.constant 0 : index
    %50 = vector.load %arg1[%c0_49, %c2_50, %c1_51, %c0_52] : memref<1x8x4x8xbf16, #tpu.memory_space<vmem>>, vector<1x2x2x8xbf16>
    %51 = vector.shape_cast %50 : vector<1x2x2x8xbf16> to vector<2x2x8xbf16>
    %52 = vector.shape_cast %51 : vector<2x2x8xbf16> to vector<4x8xbf16>
    %c7 = arith.constant 7 : index
    %c0_53 = arith.constant 0 : index
    %c0_54 = arith.constant 0 : index
    %53 = vector.load %arg2[%c7, %c0_53, %c0_54] : memref<10x8x128xbf16, #tpu.memory_space<vmem>>, vector<1x8x128xbf16>
    %54 = vector.shape_cast %53 : vector<1x8x128xbf16> to vector<8x128xbf16>
    %cst_55 = arith.constant dense<0.000000e+00> : vector<4x128xf32>
    %55 = tpu.matmul %52, %54, %cst_55 {dimension_numbers = #tpu.dot_dimension_numbers<[1], [0], [0], [1], [0, 0, 1, 1], [], []>} : vector<4x8xbf16>, vector<8x128xbf16>, vector<4x128xf32> -> vector<4x128xf32>
    %56 = arith.addf %49, %55 : vector<4x128xf32>
    %c0_56 = arith.constant 0 : index
    %c2_57 = arith.constant 2 : index
    %c2_58 = arith.constant 2 : index
    %c0_59 = arith.constant 0 : index
    %57 = vector.load %arg1[%c0_56, %c2_57, %c2_58, %c0_59] : memref<1x8x4x8xbf16, #tpu.memory_space<vmem>>, vector<1x2x2x8xbf16>
    %58 = vector.shape_cast %57 : vector<1x2x2x8xbf16> to vector<2x2x8xbf16>
    %59 = vector.shape_cast %58 : vector<2x2x8xbf16> to vector<4x8xbf16>
    %c8 = arith.constant 8 : index
    %c0_60 = arith.constant 0 : index
    %c0_61 = arith.constant 0 : index
    %60 = vector.load %arg2[%c8, %c0_60, %c0_61] : memref<10x8x128xbf16, #tpu.memory_space<vmem>>, vector<1x8x128xbf16>
    %61 = vector.shape_cast %60 : vector<1x8x128xbf16> to vector<8x128xbf16>
    %cst_62 = arith.constant dense<0.000000e+00> : vector<4x128xf32>
    %62 = tpu.matmul %59, %61, %cst_62 {dimension_numbers = #tpu.dot_dimension_numbers<[1], [0], [0], [1], [0, 0, 1, 1], [], []>} : vector<4x8xbf16>, vector<8x128xbf16>, vector<4x128xf32> -> vector<4x128xf32>
    %63 = arith.addf %56, %62 : vector<4x128xf32>
    %c0_63 = arith.constant 0 : index
    %c5_64 = arith.constant 5 : index
    %c1_65 = arith.constant 1 : index
    %c0_66 = arith.constant 0 : index
    %64 = vector.load %arg1[%c0_63, %c5_64, %c1_65, %c0_66] : memref<1x8x4x8xbf16, #tpu.memory_space<vmem>>, vector<1x2x2x8xbf16>
    %65 = vector.shape_cast %64 : vector<1x2x2x8xbf16> to vector<2x2x8xbf16>
    %66 = vector.shape_cast %65 : vector<2x2x8xbf16> to vector<4x8xbf16>
    %c9 = arith.constant 9 : index
    %c0_67 = arith.constant 0 : index
    %c0_68 = arith.constant 0 : index
    %67 = vector.load %arg2[%c9, %c0_67, %c0_68] : memref<10x8x128xbf16, #tpu.memory_space<vmem>>, vector<1x8x128xbf16>
    %68 = vector.shape_cast %67 : vector<1x8x128xbf16> to vector<8x128xbf16>
    %cst_69 = arith.constant dense<0.000000e+00> : vector<4x128xf32>
    %69 = tpu.matmul %66, %68, %cst_69 {dimension_numbers = #tpu.dot_dimension_numbers<[1], [0], [0], [1], [0, 0, 1, 1], [], []>} : vector<4x8xbf16>, vector<8x128xbf16>, vector<4x128xf32> -> vector<4x128xf32>
    %70 = arith.addf %63, %69 : vector<4x128xf32>
    %c0_70 = arith.constant 0 : index
    %c0_71 = arith.constant 0 : index
    %c0_72 = arith.constant 0 : index
    %71 = vector.load %arg3[%c0_70, %c0_71, %c0_72] : memref<1x1x128xf32, #tpu.memory_space<vmem>>, vector<1x1x128xf32>
    %72 = vector.shape_cast %71 : vector<1x1x128xf32> to vector<1x128xf32>
    %73 = vector.broadcast %72 : vector<1x128xf32> to vector<4x128xf32>
    %74 = arith.addf %70, %73 : vector<4x128xf32>
    %cst_73 = arith.constant 0.000000e+00 : f32
    %75 = vector.broadcast %cst_73 : f32 to vector<4x128xf32>
    %76 = arith.cmpf oge, %74, %75 : vector<4x128xf32>
    %cst_74 = arith.constant 2.000000e-01 : f32
    %77 = vector.broadcast %cst_74 : f32 to vector<4x128xf32>
    %78 = arith.mulf %77, %74 : vector<4x128xf32>
    %79 = arith.select %76, %74, %78 : vector<4x128xi1>, vector<4x128xf32>
    %80 = arith.truncf %79 : vector<4x128xf32> to vector<4x128xbf16>
    %c0_75 = arith.constant 0 : index
    %c0_76 = arith.constant 0 : index
    %c0_77 = arith.constant 0 : index
    %81 = vector.load %arg4[%c0_75, %c0_76, %c0_77] : memref<1x4x128xbf16, #tpu.memory_space<vmem>>, vector<1x4x128xbf16>
    %82 = vector.shape_cast %81 : vector<1x4x128xbf16> to vector<4x128xbf16>
    %83 = vector.shape_cast %80 : vector<4x128xbf16> to vector<1x4x128xbf16>
    tpu.vector_store %arg4[%c0_75, %c0_76, %c0_77], %83 {strides = array<i32>} : memref<1x4x128xbf16, #tpu.memory_space<vmem>>, vector<1x4x128xbf16>,
    return
  }
  func.func @transform_0(%arg0: i32) -> (i32, i32, i32, i32) {
    %c0_i32 = arith.constant 0 : i32
    %c0_i32_0 = arith.constant 0 : i32
    %c0_i32_1 = arith.constant 0 : i32
    %c0_i32_2 = arith.constant 0 : i32
    return %arg0, %c0_i32, %c0_i32_0, %c0_i32_1 : i32, i32, i32, i32
  }
  func.func @transform_1(%arg0: i32) -> (i32, i32, i32) {
    %c0_i32 = arith.constant 0 : i32
    %c0_i32_0 = arith.constant 0 : i32
    %c0_i32_1 = arith.constant 0 : i32
    %c0_i32_2 = arith.constant 0 : i32
    return %c0_i32, %c0_i32_0, %c0_i32_1 : i32, i32, i32
  }
  func.func @transform_2(%arg0: i32) -> (i32, i32, i32) {
    %c0_i32 = arith.constant 0 : i32
    %c0_i32_0 = arith.constant 0 : i32
    %c0_i32_1 = arith.constant 0 : i32
    return %arg0, %c0_i32, %c0_i32_0 : i32, i32, i32
  }
  func.func @transform_3(%arg0: i32) -> (i32, i32, i32) {
    %c0_i32 = arith.constant 0 : i32
    %c0_i32_0 = arith.constant 0 : i32
    %c0_i32_1 = arith.constant 0 : i32
    return %arg0, %c0_i32, %c0_i32_0 : i32, i32, i32
  }
}

</mosaic_0001>

<bundles_post_ra>
// kernel: _lambda_.5
= control target key start
LH: loop header
LB: loop body
LE: loop exit
PB: predicated region body
PF: predicated region fallthrough
CT: control target
= control target key end

     0   :  { %s1288_s12 = smov 0   ;;  %s1534_s0 = inlined_call_operand.vmem [shape: bf16[4,12,6,4], index: 0, kind: input, shape index: {}]   ;;  %s1535_s1 = inlined_call_operand.vmem [shape: bf16[10,4,128], index: 1, kind: input, shape index: {}]   ;;  %s1536_s2 = inlined_call_operand.vmem [shape: f32[4,1,128], index: 2, kind: input, shape index: {}]   ;;  %s1537_s3 = inlined_call_operand.vmem [shape: bf16[4,16,128], index: 3, kind: output, shape index: {}]  }
   0x1 LB: > { %s1163_s13 = sadd.s32 4294967295, %s1266_s12   ;;  %p1167_p0 = scmp.ge.s32.totalorder %s1266_s12, 1  ;;  %s1266_s12 = sphi %s1288_s12, %s13_s12  }
   0x2   : > { %p145_p1 = scmp.lt.s32.totalorder %s1266_s12, 5 }
   0x4   : > { %p146_p2 = pnand %p1167_p0, %p145_p1 }
   0x5   : > { %p172_p3 = scmp.lt.s32.totalorder (!%p146_p2), %s1163_s13, 3 }
   0x6   : > { %149 = sbr.rel (%p146_p2) target bundleno = 285 (0x11d), region = 32 }
   0xb   : > { %vm203_vm0 = vcmask 1041408   ;;  %v1171_v0 = vld [vmem:[%s1535_s1 + $0x2] sm:$0x3]  ;;  %s1543_s13 = smov (!%p172_p3, %s1163_s13), 3  ;;  %v190_v2 = vld [vmem:[%s1535_s1] sm:$0x3] }
   0xc   : > { %v306_v1 = vsel %vm203_vm0, %v1171_v0, 0  ;;  %v1182_v3 = vld [vmem:[%s1535_s1 + $0x4] sm:$0x3]  ;;  %s1250_s20 = smul.u32 48, %s1543_s13  ;;  %v337_v4 = vsel %vm203_vm0, %v190_v2, 0  ;;  %vm207_vm1 = vcmask 1043458   ;;  %s179_s15 = scalar_lea.vmem %s1536_s2, %s1543_s13 }
   0xd   : > { %315 = vmatpush.bf16.msra.mxu0 %v306_v1  ;;  %v433_v5 = vsel %vm203_vm0, %v1182_v3, 0  ;;  %346 = vmatpush.bf16.msra.mxu1 %v337_v4  ;;  %vm229_vm2 = vsmask.f32 1280  ;;  %vm230_vm3 = vsmask.f32 3336  ;;  %vm393_vm9 = vcmask 1040384  }
   0xe   : > { %442 = vmatpush.bf16.msra.mxu2 %v433_v5  ;;  %s1314_s23 = scalar_lea.vmem %s1534_s0, %s1250_s20  ;;  %vm232_vm4 = vsmask.f32 5392  ;;  %vm234_vm5 = vsmask.f32 7448  ;;  %vm231_vm6 = vmor %vm229_vm2, %vm230_vm3  ;;  %v1188_v38 = vld [vmem:[%s1535_s1 + $0x6] sm:$0x3] }
   0xf   : > { %v191_v6 = vld [vmem:[%s1314_s23] sm:$0x7]  ;;  %v192_v7 = vld [vmem:[%s1314_s23 + $0x4] sm:$0x7]  ;;  %v193_v8 = vld [vmem:[%s1314_s23 + $0x8] sm:$0x7] }
  0x10   : > { %v194_v9 = vld [vmem:[%s1314_s23 + $0xc] sm:$0x7]  ;;  %v199_v10 = vrot.slane %v191_v6, 2  ;;  %v200_v11 = vrot.slane %v192_v7, 2  ;;  %v201_v12 = vrot.slane %v193_v8, 2  ;;  %vm233_vm7 = vmor %vm231_vm6, %vm232_vm4  ;;  %v473_v51 = vsel %vm203_vm0, %v1188_v38, 0 }
  0x11   : > { %v202_v13 = vrot.slane %v194_v9, 2  ;;  %vm1335_vm8 = vmor %vm233_vm7, %vm234_vm5  ;;  %482 = vmatpush.bf16.msra.mxu3 %v473_v51  ;;  %v353_v1 = vld [vmem:[%s1314_s23] sm:$0x6]  ;;  %v354_v2 = vld [vmem:[%s1314_s23 + $0x4] sm:$0x6]  ;;  %vm394_vm10 = vcmask 1042434  }
  0x12   : > { %v206_v14 = vsel %vm203_vm0, %v191_v6, %v199_v10  ;;  %v208_v15 = vsel %vm207_vm1, %v191_v6, %v199_v10  ;;  %v213_v16 = vsel %vm203_vm0, %v192_v7, %v200_v11  ;;  %v214_v17 = vsel %vm207_vm1, %v192_v7, %v200_v11  ;;  %v355_v3 = vld [vmem:[%s1314_s23 + $0x8] sm:$0x6]  ;;  %v186_v4 = vld [vmem:[%s1314_s23] sm:$0x3]  ;;  %v356_v5 = vld [vmem:[%s1314_s23 + $0xc] sm:$0x6] }
  0x13   : > { %v210_v18 = vrot.slane %v208_v15, 2  ;;  %v216_v19 = vrot.slane %v214_v17, 2  ;;  %v219_v20 = vsel %vm203_vm0, %v193_v8, %v201_v12  ;;  %v220_v21 = vsel %vm207_vm1, %v193_v8, %v201_v12  ;;  %v187_v7 = vld [vmem:[%s1314_s23 + $0x4] sm:$0x3]  ;;  %v188_v8 = vld [vmem:[%s1314_s23 + $0x8] sm:$0x3]  ;;  %vm395_vm12 = vmor %vm393_vm9, %vm394_vm10 }
  0x14   : > { %v222_v22 = vrot.slane %v220_v21, 2  ;;  %v225_v23 = vsel %vm203_vm0, %v194_v9, %v202_v13  ;;  %v226_v24 = vsel %vm207_vm1, %v194_v9, %v202_v13  ;;  %v236_v25 = vshrl.u32 %v206_v14, 16  ;;  %v189_v12 = vld [vmem:[%s1314_s23 + $0xc] sm:$0x3]  ;;  %s1244_s18 = sshll.u32 %s1543_s13, 3 }
  0x15   : > { %v228_v26 = vrot.slane %v226_v24, 2  ;;  %v239_v27 = vshll.u32 %v206_v14, 16  ;;  %v245_v28 = vshll.u32 %v210_v18, 16  ;;  %v249_v29 = vshrl.u32 %v213_v16, 16  ;;  %s184_s21 = scalar_lea.vmem %s1537_s3, %s1244_s18 }
  0x16   : > { %v238_v30 = vrot.slane %v236_v25, 6  ;;  %v252_v31 = vshll.u32 %v213_v16, 16  ;;  %v258_v32 = vshll.u32 %v216_v19, 16  ;;  %v262_v33 = vshrl.u32 %v219_v20, 16  ;;  %v1194_v16 = vld [vmem:[%s1535_s1 + $0x8] sm:$0x3] }
  0x17   : > { %v241_v34 = vrot.slane %v239_v27, 7  ;;  %v247_v35 = vrot.slane %v245_v28, 7  ;;  %v251_v36 = vrot.slane %v249_v29, 6  ;;  %v265_v37 = vshll.u32 %v219_v20, 16 }
  0x18   : > { %v254_v39 = vrot.slane %v252_v31, 7  ;;  %v260_v40 = vrot.slane %v258_v32, 7  ;;  %v264_v41 = vrot.slane %v262_v33, 6  ;;  %v271_v42 = vshll.u32 %v222_v22, 16  ;;  %v1192_v33 = vld [vmem:[%s1314_s23 + $0xc] sm:$0x7] }
  0x19   : > { %v242_v43 = vor.u32 %v241_v34, %v238_v30  ;;  %v267_v44 = vrot.slane %v265_v37, 7  ;;  %v275_v45 = vshrl.u32 %v225_v23, 16  ;;  %v278_v46 = vshll.u32 %v225_v23, 16  ;;  %v1191_v30 = vld [vmem:[%s1314_s23 + $0x8] sm:$0x7] }
  0x1a   : > { %v255_v48 = vor.u32 %v254_v39, %v251_v36  ;;  %v273_v49 = vrot.slane %v271_v42, 7  ;;  %v284_v50 = vshll.u32 %v228_v26, 16  ;;  %vm302_vm11 = vcmask 31744   ;;  %v1190_v26 = vld [vmem:[%s1314_s23 + $0x4] sm:$0x7] }
  0x1b   : > { %v243_v52 = vrot.slane %v242_v43, 2  ;;  %v268_v53 = vor.u32 %v267_v44, %v264_v41  ;;  %v277_v54 = vrot.slane %v275_v45, 6  ;;  %v280_v55 = vrot.slane %v278_v46, 7  ;;  %v1193_v36 = vld [vmem:[%s1314_s23 + $0x10] sm:$0x7] }
  0x1c   : > { %v256_v56 = vrot.slane %v255_v48, 2  ;;  %v286_v60 = vrot.slane %v284_v50, 7  ;;  %v361_v6 = vrot.slane %v353_v1, 2  ;;  %v362_v9 = vrot.slane %v354_v2, 2 }
  0x1d   : > { %v248_v57 = vsel %vm1335_vm8, %v243_v52, %v247_v35  ;;  %v269_v58 = vrot.slane %v268_v53, 2  ;;  %v281_v59 = vor.u32 %v280_v55, %v277_v54  ;;  %v363_v11 = vrot.slane %v355_v3, 2 }
  0x1e   : > { %v261_v61 = vsel %vm1335_vm8, %v256_v56, %v260_v40  ;;  %291 = vst [vmem:[#allocation1] ss:$4 sm:$0xff] %v248_v57  ;;  %vm396_vm13 = vcmask 1044484   ;;  %v364_v13 = vrot.slane %v356_v5, 2  ;;  %v367_v14 = vsel %vm203_vm0, %v353_v1, %v361_v6 }
  0x1f   : > { %v274_v62 = vsel %vm1335_vm8, %v269_v58, %v273_v49  ;;  %v282_v63 = vrot.slane %v281_v59, 2  ;;  %294 = vst [vmem:[#allocation1 + $0x1] ss:$4 sm:$0xff] %v261_v61  ;;  %v369_v15 = vsel %vm207_vm1, %v353_v1, %v361_v6  ;;  %v374_v17 = vsel %vm203_vm0, %v354_v2, %v362_v9  ;;  %vm397_vm14 = vmor %vm395_vm12, %vm396_vm13  ;;  %v1208_v49 = vld [vmem:[%s1535_s1 + $0xa] sm:$0x3] }
  0x20   : > { %297 = vst [vmem:[#allocation1 + $0x2] ss:$4 sm:$0xff] %v274_v62  ;;  %v376_v18 = vsel %vm207_vm1, %v354_v2, %v362_v9  ;;  %vm398_vm15 = vcmask 1046534   ;;  %v596_v19 = vsel %vm203_vm0, %v1194_v16, 0  ;;  %v381_v20 = vsel %vm203_vm0, %v355_v3, %v363_v11  ;;  %v1185_v6 = vld [vmem:[%s1314_s23 + $0x8] sm:$0x3] }
  0x21   : > { %v287_v0 = vsel %vm1335_vm8, %v282_v63, %v286_v60  ;;  %v383_v21 = vsel %vm207_vm1, %v355_v3, %v363_v11  ;;  %605 = vmatpush.bf16.msrb.mxu0 %v596_v19  ;;  %v388_v22 = vsel %vm203_vm0, %v356_v5, %v364_v13  ;;  %v390_v23 = vsel %vm207_vm1, %v356_v5, %v364_v13  ;;  %vm1370_vm2 = vmor %vm397_vm14, %vm398_vm15  ;;  %v1184_v5 = vld [vmem:[%s1314_s23 + $0x4] sm:$0x3]  ;;  %v1186_v9 = vld [vmem:[%s1314_s23 + $0xc] sm:$0x3] }
  0x22   : > { %300 = vst [vmem:[#allocation1 + $0x3] ss:$4 sm:$0xff] %v287_v0  ;;  %v1174_v24 = vrot.slane %v367_v14, 9  ;;  %v1175_v25 = vrot.slane %v369_v15, 9  ;;  %v1176_v28 = vrot.slane %v374_v17, 9  ;;  %v1177_v29 = vrot.slane %v376_v18, 9 }
  0x23   : > { %v1178_v31 = vrot.slane %v381_v20, 9  ;;  %v1179_v32 = vrot.slane %v383_v21, 9  ;;  %v1180_v34 = vrot.slane %v388_v22, 9  ;;  %v1181_v35 = vrot.slane %v390_v23, 9  ;;  %v1187_v17 = vld [vmem:[%s1314_s23 + $0x10] sm:$0x3] }
  0x24   : > { %v499_v37 = vrot.slane %v1190_v26, 2  ;;  %v403_v38 = vsel %vm1370_vm2, %v1174_v24, %v1175_v25  ;;  %v500_v39 = vrot.slane %v1191_v30, 2  ;;  %v407_v40 = vsel %vm1370_vm2, %v1176_v28, %v1177_v29  ;;  %v1214_v22 = vld [vmem:[%s1535_s1 + $0xc] sm:$0x3]  ;;  %v1220_v23 = vld [vmem:[%s1535_s1 + $0xe] sm:$0x3] }
  0x25   : > { %v501_v41 = vrot.slane %v1192_v33, 2  ;;  %v411_v43 = vsel %vm1370_vm2, %v1178_v31, %v1179_v32  ;;  %v502_v44 = vrot.slane %v1193_v36, 2  ;;  %v415_v45 = vsel %vm1370_vm2, %v1180_v34, %v1181_v35  ;;  %v1196_v35 = vld [vmem:[%s1314_s23 + $0x4] sm:$0x6] }
  0x26   : > { %v505_v46 = vsel %vm203_vm0, %v1190_v26, %v499_v37  ;;  %v511_v48 = vsel %vm203_vm0, %v1191_v30, %v500_v39  ;;  %v687_v51 = vsel %vm203_vm0, %v1208_v49, 0  ;;  %v506_v52 = vsel %vm207_vm1, %v1190_v26, %v499_v37 }
  0x27   : > { %v517_v50 = vsel %vm203_vm0, %v1192_v33, %v501_v41  ;;  %v523_v53 = vsel %vm203_vm0, %v1193_v36, %v502_v44  ;;  %v527_v54 = vshrl.u32 %v505_v46, 16  ;;  %v530_v55 = vshll.u32 %v505_v46, 16  ;;  %696 = vmatpush.bf16.msrb.mxu1 %v687_v51 }
  0x28   : > { %v512_v56 = vsel %vm207_vm1, %v1191_v30, %v500_v39  ;;  %v540_v57 = vshrl.u32 %v511_v48, 16  ;;  %v543_v58 = vshll.u32 %v511_v48, 16  ;;  %v553_v59 = vshrl.u32 %v517_v50, 16 }
  0x29   : > { %v301_v10 = vld.sshfl [vmem:[#allocation1] sm:$0xff pattern:$0x73625140]  ;;  %v556_v60 = vshll.u32 %v517_v50, 16  ;;  %v508_v61 = vrot.slane %v506_v52, 2  ;;  %v518_v62 = vsel %vm207_vm1, %v1192_v33, %v501_v41  ;;  %v566_v63 = vshrl.u32 %v523_v53, 16 }
  0x2a   : > { %1172 = vmatmul.msk.bf16.vlgmr.msra.gmra.mxu0 %vm302_vm11, %v301_v10  ;;  %323 = vst [vmem:[#allocation1] ss:$4 sm:$0xff] %v186_v4  ;;  %v569_v0 = vshll.u32 %v523_v53, 16  ;;  %v514_v1 = vrot.slane %v512_v56, 2  ;;  %v524_v2 = vsel %vm207_vm1, %v1193_v36, %v502_v44  ;;  %v529_v3 = vrot.slane %v527_v54, 6 }
  0x2b   : > { %326 = vst [vmem:[#allocation1 + $0x1] ss:$4 sm:$0xff] %v187_v7  ;;  %v532_v4 = vrot.slane %v530_v55, 7  ;;  %v542_v7 = vrot.slane %v540_v57, 6  ;;  %v520_v10 = vrot.slane %v518_v62, 2  ;;  %v555_v11 = vrot.slane %v553_v59, 6 }
  0x2c   : > { %329 = vst [vmem:[#allocation1 + $0x2] ss:$4 sm:$0xff] %v188_v8  ;;  %v545_v8 = vrot.slane %v543_v58, 7  ;;  %v526_v14 = vrot.slane %v524_v2, 2  ;;  %v568_v15 = vrot.slane %v566_v63, 6  ;;  %v571_v16 = vrot.slane %v569_v0, 7 }
  0x2d   : > { %332 = vst [vmem:[#allocation1 + $0x3] ss:$4 sm:$0xff] %v189_v12  ;;  %v558_v12 = vrot.slane %v556_v60, 7  ;;  %v533_v18 = vor.u32 %v532_v4, %v529_v3  ;;  %v536_v19 = vshll.u32 %v508_v61, 16  ;;  %v549_v20 = vshll.u32 %v514_v1, 16 }
  0x2e   : > { %v546_v21 = vor.u32 %v545_v8, %v542_v7  ;;  %v562_v25 = vshll.u32 %v520_v10, 16  ;;  %v727_v26 = vsel %vm203_vm0, %v1214_v22, 0  ;;  %v850_v28 = vsel %vm203_vm0, %v1220_v23, 0  ;;  %v1198_v41 = vld [vmem:[%s1314_s23 + $0xc] sm:$0x6] }
  0x2f   : > { %v559_v24 = vor.u32 %v558_v12, %v555_v11  ;;  %v572_v29 = vor.u32 %v571_v16, %v568_v15  ;;  %v575_v30 = vshll.u32 %v526_v14, 16  ;;  %736 = vmatpush.bf16.msrb.mxu2 %v727_v26  ;;  %859 = vmatpush.bf16.msrb.mxu3 %v850_v28  ;;  %v534_v31 = vrot.slane %v533_v18, 2  ;;  %v1234_v55 = vld [vmem:[%s1535_s1 + $0x10] sm:$0x3]  ;;  %v1216_v1 = vld [vmem:[%s1314_s23 + $0x8] sm:$0x7] }
  0x30   : > { %v538_v32 = vrot.slane %v536_v19, 7  ;;  %v547_v33 = vrot.slane %v546_v21, 2  ;;  %v551_v34 = vrot.slane %v549_v20, 7  ;;  %v564_v37 = vrot.slane %v562_v25, 7  ;;  %v1217_v2 = vld [vmem:[%s1314_s23 + $0xc] sm:$0x7] }
  0x31   : > { %v560_v36 = vrot.slane %v559_v24, 2  ;;  %v573_v39 = vrot.slane %v572_v29, 2  ;;  %v622_v44 = vrot.slane %v1196_v35, 2  ;;  %v624_v50 = vrot.slane %v1198_v41, 2  ;;  %v1218_v7 = vld [vmem:[%s1314_s23 + $0x10] sm:$0x7] }
  0x32   : > { %v941_v58 = vsel %vm203_vm0, %v1234_v55, 0  ;;  %v1219_v8 = vld [vmem:[%s1314_s23 + $0x14] sm:$0x7]  ;;  %v753_v11 = vrot.slane %v1216_v1, 2  ;;  %v754_v12 = vrot.slane %v1217_v2, 2  ;;  %v755_v15 = vrot.slane %v1218_v7, 2 }
  0x33   : > { %v565_v49 = vsel %vm1335_vm8, %v560_v36, %v564_v37  ;;  %v628_v53 = vsel %vm203_vm0, %v1196_v35, %v622_v44  ;;  %v630_v54 = vsel %vm207_vm1, %v1196_v35, %v622_v44  ;;  %v642_v59 = vsel %vm203_vm0, %v1198_v41, %v624_v50  ;;  %950 = vmatpush.bf16.msra.mxu0 %v941_v58  ;;  %v1240_v23 = vld [vmem:[%s1535_s1 + $0x12] sm:$0x3] }
  0x34   : > { %v333_v42 = vld.sshfl [vmem:[#allocation1] sm:$0xff pattern:$0x73625140]  ;;  %v644_v60 = vsel %vm207_vm1, %v1198_v41, %v624_v50  ;;  %v1200_v63 = vrot.slane %v628_v53, 9  ;;  %v1201_v0 = vrot.slane %v630_v54, 9  ;;  %v756_v16 = vrot.slane %v1219_v8, 2 }
  0x35   : > { %1173 = vmatmul.msk.bf16.vlgmr.msra.gmra.mxu1 %vm302_vm11, %v333_v42  ;;  %419 = vst [vmem:[#allocation1] ss:$4 sm:$0xff] %v403_v38  ;;  %v1197_v38 = vld [vmem:[%s1314_s23 + $0x8] sm:$0x6]  ;;  %v539_v42 = vsel %vm1335_vm8, %v534_v31, %v538_v32  ;;  %v759_v20 = vsel %vm203_vm0, %v1216_v1, %v753_v11  ;;  %v765_v21 = vsel %vm203_vm0, %v1217_v2, %v754_v12  ;;  %v1065_v28 = vsel %vm203_vm0, %v1240_v23, 0 }
  0x36   : > { %422 = vst [vmem:[#allocation1 + $0x1] ss:$4 sm:$0xff] %v407_v40  ;;  %v577_v40 = vrot.slane %v575_v30, 7  ;;  %v623_v46 = vrot.slane %v1197_v38, 2  ;;  %v760_v22 = vsel %vm207_vm1, %v1216_v1, %v753_v11  ;;  %v766_v24 = vsel %vm207_vm1, %v1217_v2, %v754_v12  ;;  %1074 = vmatpush.bf16.msra.mxu1 %v1065_v28  ;;  %v1237_v12 = vld [vmem:[%s1314_s23 + $0x20] sm:$0x7] }
  0x37   : > { %425 = vst [vmem:[#allocation1 + $0x2] ss:$4 sm:$0xff] %v411_v43  ;;  %v1199_v43 = vld [vmem:[%s1314_s23 + $0x10] sm:$0x6]  ;;  %v771_v25 = vsel %vm203_vm0, %v1218_v7, %v755_v15  ;;  %v777_v26 = vsel %vm203_vm0, %v1219_v8, %v756_v16  ;;  %v781_v29 = vshrl.u32 %v759_v20, 16  ;;  %v784_v30 = vshll.u32 %v759_v20, 16 }
  0x38   : > { %428 = vst [vmem:[#allocation1 + $0x3] ss:$4 sm:$0xff] %v415_v45  ;;  %v552_v45 = vsel %vm1335_vm8, %v547_v33, %v551_v34  ;;  %v578_v51 = vsel %vm1335_vm8, %v573_v39, %v577_v40  ;;  %v625_v52 = vrot.slane %v1199_v43, 2  ;;  %v635_v56 = vsel %vm203_vm0, %v1197_v38, %v623_v46 }
  0x39   : > { %v637_v57 = vsel %vm207_vm1, %v1197_v38, %v623_v46  ;;  %v1202_v3 = vrot.slane %v635_v56, 9  ;;  %v794_v31 = vshrl.u32 %v765_v21, 16  ;;  %v797_v32 = vshll.u32 %v765_v21, 16  ;;  %v1213_v56 = vld [vmem:[%s1314_s23 + $0x14] sm:$0x3] }
  0x3a   : > { %v649_v61 = vsel %vm203_vm0, %v1199_v43, %v625_v52  ;;  %v651_v62 = vsel %vm207_vm1, %v1199_v43, %v625_v52  ;;  %v1203_v4 = vrot.slane %v637_v57, 9  ;;  %v762_v33 = vrot.slane %v760_v22, 2 }
  0x3b   : > { %v1207_v10 = vrot.slane %v651_v62, 9  ;;  %v772_v34 = vsel %vm207_vm1, %v1218_v7, %v755_v15  ;;  %v807_v35 = vshrl.u32 %v771_v25, 16  ;;  %v810_v36 = vshll.u32 %v771_v25, 16 }
  0x3c   : > { %v661_v14 = vsel %vm1370_vm2, %v1202_v3, %v1203_v4  ;;  %v768_v37 = vrot.slane %v766_v24, 2  ;;  %v778_v38 = vsel %vm207_vm1, %v1219_v8, %v756_v16  ;;  %v820_v39 = vshrl.u32 %v777_v26, 16  ;;  %v1224_v3 = vld [vmem:[%s1314_s23 + $0x10] sm:$0x6]  ;;  %v1236_v8 = vld [vmem:[%s1314_s23 + $0x1c] sm:$0x7] }
  0x3d   : > { %v823_v40 = vshll.u32 %v777_v26, 16  ;;  %v783_v41 = vrot.slane %v781_v29, 6  ;;  %v796_v43 = vrot.slane %v794_v31, 6  ;;  %v799_v44 = vrot.slane %v797_v32, 7  ;;  %v1238_v16 = vld [vmem:[%s1314_s23 + $0x24] sm:$0x7] }
  0x3e   : > { %v774_v46 = vrot.slane %v772_v34, 2  ;;  %v809_v50 = vrot.slane %v807_v35, 6  ;;  %v780_v53 = vrot.slane %v778_v38, 2  ;;  %v822_v54 = vrot.slane %v820_v39, 6 }
  0x3f   : > { %v429_v13 = vld.sshfl [vmem:[#allocation1] sm:$0xff pattern:$0x73625140]  ;;  %v825_v55 = vrot.slane %v823_v40, 7  ;;  %v790_v58 = vshll.u32 %v762_v33, 16  ;;  %v878_v15 = vrot.slane %v1224_v3, 2 }
  0x40   : > { %1183 = vmatmul.msk.bf16.vlgmr.msra.gmra.mxu2 %vm302_vm11, %v429_v13  ;;  %459 = vst [vmem:[#allocation1] ss:$4 sm:$0xff] %v1184_v5  ;;  %v1204_v5 = vrot.slane %v642_v59, 9  ;;  %v657_v13 = vsel %vm1370_vm2, %v1200_v63, %v1201_v0  ;;  %v800_v59 = vor.u32 %v799_v44, %v796_v43  ;;  %v1222_v63 = vld [vmem:[%s1314_s23 + $0x8] sm:$0x6]  ;;  %v829_v2 = vshll.u32 %v780_v53, 16 }
  0x41   : > { %462 = vst [vmem:[#allocation1 + $0x1] ss:$4 sm:$0xff] %v1185_v6  ;;  %v1205_v6 = vrot.slane %v644_v60, 9  ;;  %v803_v60 = vshll.u32 %v768_v37, 16  ;;  %v1223_v0 = vld [vmem:[%s1314_s23 + $0xc] sm:$0x6]  ;;  %v826_v1 = vor.u32 %v825_v55, %v822_v54  ;;  %v896_v33 = vsel %vm203_vm0, %v1224_v3, %v878_v15 }
  0x42   : > { %465 = vst [vmem:[#allocation1 + $0x2] ss:$4 sm:$0xff] %v1186_v9  ;;  %v1206_v9 = vrot.slane %v649_v61, 9  ;;  %v816_v61 = vshll.u32 %v774_v46, 16  ;;  %v877_v11 = vrot.slane %v1223_v0, 2  ;;  %v968_v20 = vrot.slane %v1236_v8, 2 }
  0x43   : > { %468 = vst [vmem:[#allocation1 + $0x3] ss:$4 sm:$0xff] %v1187_v17  ;;  %v665_v18 = vsel %vm1370_vm2, %v1204_v5, %v1205_v6  ;;  %v792_v5 = vrot.slane %v790_v58, 7  ;;  %v801_v6 = vrot.slane %v800_v59, 2  ;;  %v805_v7 = vrot.slane %v803_v60, 7 }
  0x44   : > { %v669_v19 = vsel %vm1370_vm2, %v1206_v9, %v1207_v10  ;;  %v1225_v9 = vld [vmem:[%s1314_s23 + $0x14] sm:$0x6]  ;;  %v876_v10 = vrot.slane %v1222_v63, 2  ;;  %v969_v24 = vrot.slane %v1237_v12, 2  ;;  %v889_v28 = vsel %vm203_vm0, %v1223_v0, %v877_v11 }
  0x45   : > { %v806_v22 = vsel %vm1335_vm8, %v801_v6, %v805_v7  ;;  %v879_v23 = vrot.slane %v1225_v9, 2  ;;  %v970_v29 = vrot.slane %v1238_v16, 2  ;;  %v891_v32 = vsel %vm207_vm1, %v1223_v0, %v877_v11 }
  0x46   : > { %v882_v25 = vsel %vm203_vm0, %v1222_v63, %v876_v10  ;;  %v884_v26 = vsel %vm207_vm1, %v1222_v63, %v876_v10  ;;  %v974_v37 = vsel %vm203_vm0, %v1236_v8, %v968_v20  ;;  %v1228_v43 = vrot.slane %v889_v28, 9 }
  0x47   : > { %v903_v38 = vsel %vm203_vm0, %v1225_v9, %v879_v23  ;;  %v905_v39 = vsel %vm207_vm1, %v1225_v9, %v879_v23  ;;  %v1226_v40 = vrot.slane %v882_v25, 9  ;;  %v1229_v44 = vrot.slane %v891_v32, 9 }
  0x48   : > { %v1230_v46 = vrot.slane %v896_v33, 9  ;;  %v1232_v55 = vrot.slane %v903_v38, 9  ;;  %v1233_v59 = vrot.slane %v905_v39, 9  ;;  %v987_v60 = vsel %vm207_vm1, %v1238_v16, %v970_v29 }
  0x49   : > { %v915_v7 = vsel %vm1370_vm2, %v1228_v43, %v1229_v44 }
  0x4a   : > { %v469_v48 = vld.sshfl [vmem:[#allocation1] sm:$0xff pattern:$0x73625140] }
  0x4b   : > { %1189 = vmatmul.msk.bf16.vlgmr.msra.gmra.mxu3 %vm302_vm11, %v469_v48  ;;  %582 = vst [vmem:[#allocation1] ss:$4 sm:$0xff] %v539_v42  ;;  %v786_v42 = vrot.slane %v784_v30, 7  ;;  %v1211_v48 = vld [vmem:[%s1314_s23 + $0xc] sm:$0x3] }
  0x4c   : > { %585 = vst [vmem:[#allocation1 + $0x1] ss:$4 sm:$0xff] %v552_v45  ;;  %v1210_v45 = vld [vmem:[%s1314_s23 + $0x8] sm:$0x3] }
  0x4d   : > { %588 = vst [vmem:[#allocation1 + $0x2] ss:$4 sm:$0xff] %v565_v49  ;;  %v1212_v49 = vld [vmem:[%s1314_s23 + $0x10] sm:$0x3]  ;;  %v787_v57 = vor.u32 %v786_v42, %v783_v41  ;;  %v980_v41 = vsel %vm203_vm0, %v1237_v12, %v969_v24  ;;  %v1227_v42 = vrot.slane %v884_v26, 9 }
  0x4e   : > { %591 = vst [vmem:[#allocation1 + $0x3] ss:$4 sm:$0xff] %v578_v51  ;;  %v812_v51 = vrot.slane %v810_v36, 7  ;;  %v898_v36 = vsel %vm207_vm1, %v1224_v3, %v878_v15  ;;  %v1009_v53 = vshrl.u32 %v980_v41, 16  ;;  %v1012_v54 = vshll.u32 %v980_v41, 16 }
  0x4f   : > { %v788_v4 = vrot.slane %v787_v57, 2  ;;  %v911_v3 = vsel %vm1370_vm2, %v1226_v40, %v1227_v42 }
  0x50   : > { %v813_v62 = vor.u32 %v812_v51, %v809_v50  ;;  %v999_v50 = vshll.u32 %v974_v37, 16  ;;  %v1231_v51 = vrot.slane %v898_v36, 9  ;;  %v1014_v6 = vrot.slane %v1012_v54, 7 }
  0x51   : > { %v793_v21 = vsel %vm1335_vm8, %v788_v4, %v792_v5  ;;  %v1011_v5 = vrot.slane %v1009_v53, 6 }
  0x55   : > { %v592_v17 = vld.sshfl [vmem:[#allocation1] sm:$0xff pattern:$0x73625140] }
  0x56   : > { %1195 = vmatmul.msk.bf16.vlgmr.msrb.gmra.mxu0 %vm302_vm11, %v592_v17  ;;  %673 = vst [vmem:[#allocation1] ss:$4 sm:$0xff] %v657_v13  ;;  %v814_v13 = vrot.slane %v813_v62, 2  ;;  %v827_v17 = vrot.slane %v826_v1, 2 }
  0x57   : > { %676 = vst [vmem:[#allocation1 + $0x1] ss:$4 sm:$0xff] %v661_v14  ;;  %v818_v14 = vrot.slane %v816_v61, 7 }
  0x58   : > { %679 = vst [vmem:[#allocation1 + $0x2] ss:$4 sm:$0xff] %v665_v18  ;;  %v831_v18 = vrot.slane %v829_v2, 7  ;;  %v1001_v2 = vrot.slane %v999_v50, 7 }
  0x59   : > { %682 = vst [vmem:[#allocation1 + $0x3] ss:$4 sm:$0xff] %v669_v19  ;;  %v1239_v19 = vld [vmem:[%s1314_s23 + $0x28] sm:$0x7]  ;;  %v819_v31 = vsel %vm1335_vm8, %v814_v13, %v818_v14 }
  0x5a   : > { %v971_v34 = vrot.slane %v1239_v19, 2  ;;  %v832_v35 = vsel %vm1335_vm8, %v827_v17, %v831_v18 }
  0x5c   : > { %v993_v0 = vsel %vm207_vm1, %v1239_v19, %v971_v34 }
  0x5d   : > { %v995_v13 = vrot.slane %v993_v0, 2 }
  0x60   : > { %v683_v52 = vld.sshfl [vmem:[#allocation1] sm:$0xff pattern:$0x73625140] }
  0x61   : > { %1209 = vmatmul.msk.bf16.vlgmr.msrb.gmra.mxu1 %vm302_vm11, %v683_v52  ;;  %713 = vst [vmem:[#allocation1] ss:$4 sm:$0xff] %v1210_v45  ;;  %v986_v45 = vsel %vm203_vm0, %v1238_v16, %v970_v29  ;;  %v975_v52 = vsel %vm207_vm1, %v1236_v8, %v968_v20  ;;  %v989_v8 = vrot.slane %v987_v60, 2  ;;  %v923_v16 = vsel %vm1370_vm2, %v1232_v55, %v1233_v59 }
  0x62   : > { %716 = vst [vmem:[#allocation1 + $0x1] ss:$4 sm:$0xff] %v1211_v48  ;;  %v992_v48 = vsel %vm203_vm0, %v1239_v19, %v971_v34  ;;  %v1022_v57 = vshrl.u32 %v986_v45, 16  ;;  %v1025_v58 = vshll.u32 %v986_v45, 16  ;;  %v977_v63 = vrot.slane %v975_v52, 2 }
  0x63   : > { %719 = vst [vmem:[#allocation1 + $0x2] ss:$4 sm:$0xff] %v1212_v49  ;;  %v996_v49 = vshrl.u32 %v974_v37, 16  ;;  %v1035_v61 = vshrl.u32 %v992_v48, 16  ;;  %v1038_v62 = vshll.u32 %v992_v48, 16  ;;  %v1015_v19 = vor.u32 %v1014_v6, %v1011_v5 }
  0x64   : > { %722 = vst [vmem:[#allocation1 + $0x3] ss:$4 sm:$0xff] %v1213_v56  ;;  %v981_v56 = vsel %vm207_vm1, %v1237_v12, %v969_v24  ;;  %v1024_v9 = vrot.slane %v1022_v57, 6  ;;  %v1027_v10 = vrot.slane %v1025_v58, 7  ;;  %v919_v12 = vsel %vm1370_vm2, %v1230_v46, %v1231_v51 }
  0x65   : > { %v998_v1 = vrot.slane %v996_v49, 6  ;;  %v983_v4 = vrot.slane %v981_v56, 2  ;;  %v1037_v14 = vrot.slane %v1035_v61, 6  ;;  %v1040_v15 = vrot.slane %v1038_v62, 7 }
  0x66   : > { %v1005_v18 = vshll.u32 %v977_v63, 16  ;;  %v1044_v24 = vshll.u32 %v995_v13, 16  ;;  %v1016_v28 = vrot.slane %v1015_v19, 2 }
  0x67   : > { %v1002_v17 = vor.u32 %v1001_v2, %v998_v1  ;;  %v1018_v20 = vshll.u32 %v983_v4, 16  ;;  %v1041_v23 = vor.u32 %v1040_v15, %v1037_v14 }
  0x68   : > { %v1007_v26 = vrot.slane %v1005_v18, 7  ;;  %v1046_v32 = vrot.slane %v1044_v24, 7 }
  0x69   : > { %v1003_v25 = vrot.slane %v1002_v17, 2  ;;  %v1020_v29 = vrot.slane %v1018_v20, 7 }
  0x6b   : > { %v723_v30 = vld.sshfl [vmem:[#allocation1] sm:$0xff pattern:$0x73625140]  ;;  %v1008_v33 = vsel %vm1335_vm8, %v1003_v25, %v1007_v26  ;;  %v1021_v34 = vsel %vm1335_vm8, %v1016_v28, %v1020_v29 }
  0x6c   : > { %1215 = vmatmul.msk.bf16.vlgmr.msrb.gmra.mxu2 %vm302_vm11, %v723_v30  ;;  %836 = vst [vmem:[#allocation1] ss:$4 sm:$0xff] %v793_v21  ;;  %v1028_v21 = vor.u32 %v1027_v10, %v1024_v9  ;;  %v1259_v9 = vld [vmem:[%s179_s15] ss:$0 sm:$0xff] }
  0x6d   : > { %839 = vst [vmem:[#allocation1 + $0x1] ss:$4 sm:$0xff] %v806_v22  ;;  %v1031_v22 = vshll.u32 %v989_v8, 16 }
  0x6e   : > { %842 = vst [vmem:[#allocation1 + $0x2] ss:$4 sm:$0xff] %v819_v31  ;;  %v1029_v30 = vrot.slane %v1028_v21, 2  ;;  %v1042_v31 = vrot.slane %v1041_v23, 2 }
  0x6f   : > { %845 = vst [vmem:[#allocation1 + $0x3] ss:$4 sm:$0xff] %v832_v35  ;;  %v1033_v27 = vrot.slane %v1031_v22, 7 }
  0x70   : > { %v1047_v37 = vsel %vm1335_vm8, %v1042_v31, %v1046_v32 }
  0x71   : > { %v1034_v36 = vsel %vm1335_vm8, %v1029_v30, %v1033_v27 }
  0x76   : > { %v846_v11 = vld.sshfl [vmem:[#allocation1] sm:$0xff pattern:$0x73625140] }
  0x77   : > { %1221 = vmatmul.msk.bf16.vlgmr.msrb.gmra.mxu3 %vm302_vm11, %v846_v11  ;;  %927 = vst [vmem:[#allocation1] ss:$4 sm:$0xff] %v911_v3 }
  0x78   : > { %930 = vst [vmem:[#allocation1 + $0x1] ss:$4 sm:$0xff] %v915_v7 }
  0x79   : > { %933 = vst [vmem:[#allocation1 + $0x2] ss:$4 sm:$0xff] %v919_v12 }
  0x7a   : > { %936 = vst [vmem:[#allocation1 + $0x3] ss:$4 sm:$0xff] %v923_v16 }
  0x81   : > { %v937_v35 = vld.sshfl [vmem:[#allocation1] sm:$0xff pattern:$0x73625140] }
  0x82   : > { %1235 = vmatmul.msk.bf16.vlgmr.msra.gmra.mxu0 %vm302_vm11, %v937_v35  ;;  %1051 = vst [vmem:[#allocation1] ss:$4 sm:$0xff] %v1008_v33 }
  0x83   : > { %1054 = vst [vmem:[#allocation1 + $0x1] ss:$4 sm:$0xff] %v1021_v34 }
  0x84   : > { %1057 = vst [vmem:[#allocation1 + $0x2] ss:$4 sm:$0xff] %v1034_v36 }
  0x85   : > { %1060 = vst [vmem:[#allocation1 + $0x3] ss:$4 sm:$0xff] %v1047_v37 }
  0x8c   : > { %v1061_v38 = vld.sshfl [vmem:[#allocation1] sm:$0xff pattern:$0x73625140] }
  0x8d   : > { %1241 = vmatmul.msk.bf16.vlgmr.msra.gmra.mxu1 %vm302_vm11, %v1061_v38 }
  0xa7   : > { %v317_v39 = vpop.f32.mrf.mxu0 }
  0xaf   : > { %v319_v41 = vpop.f32.mrf.mxu0 }
  0xb2   : > { %v348_v40 = vpop.f32.mrf.mxu1 }
  0xb3   : > { %v349_v47 = vadd.f32 %v348_v40, %v317_v39 }
  0xba   : > { %v350_v43 = vpop.f32.mrf.mxu1 }
  0xbb   : > { %v351_v51 = vadd.f32 %v350_v43, %v319_v41 }
  0xc3   : > { %v444_v42 = vpop.f32.mrf.mxu2 }
  0xc4   : > { %v449_v48 = vadd.f32 %v444_v42, %v349_v47 }
  0xcb   : > { %v446_v46 = vpop.f32.mrf.mxu2 }
  0xcc   : > { %v450_v56 = vadd.f32 %v446_v46, %v351_v51 }
  0xce   : > { %v484_v44 = vpop.f32.mrf.mxu3 }
  0xcf   : > { %v489_v52 = vadd.f32 %v484_v44, %v449_v48 }
  0xd3   : > { %v607_v45 = vpop.f32.mrf.mxu0 }
  0xd4   : > { %v612_v55 = vadd.f32 %v607_v45, %v489_v52 }
  0xd6   : > { %v486_v50 = vpop.f32.mrf.mxu3 }
  0xd7   : > { %v490_v60 = vadd.f32 %v486_v50, %v450_v56 }
  0xdb   : > { %v609_v53 = vpop.f32.mrf.mxu0 }
  0xdc   : > { %v613_v63 = vadd.f32 %v609_v53, %v490_v60 }
  0xde   : > { %v698_v49 = vpop.f32.mrf.mxu1 }
  0xdf   : > { %v703_v59 = vadd.f32 %v698_v49, %v612_v55 }
  0xe6   : > { %v700_v58 = vpop.f32.mrf.mxu1 }
  0xe7   : > { %v704_v2 = vadd.f32 %v700_v58, %v613_v63 }
  0xef   : > { %v738_v54 = vpop.f32.mrf.mxu2 }
  0xf0   : > { %v743_v62 = vadd.f32 %v738_v54, %v703_v59 }
  0xf7   : > { %v740_v1 = vpop.f32.mrf.mxu2 }
  0xf8   : > { %v744_v5 = vadd.f32 %v740_v1, %v704_v2 }
  0xfa   : > { %v861_v57 = vpop.f32.mrf.mxu3 }
  0xfb   : > { %v866_v0 = vadd.f32 %v861_v57, %v743_v62 }
  0xff   : > { %v952_v61 = vpop.f32.mrf.mxu0 }
 0x100   : > { %v957_v6 = vadd.f32 %v952_v61, %v866_v0 }
 0x102   : > { %v863_v3 = vpop.f32.mrf.mxu3 }
 0x103   : > { %v867_v7 = vadd.f32 %v863_v3, %v744_v5 }
 0x107   : > { %v954_v10 = vpop.f32.mrf.mxu0 }
 0x108   : > { %v958_v11 = vadd.f32 %v954_v10, %v867_v7 }
 0x10a   : > { %v1076_v4 = vpop.f32.mrf.mxu1 }
 0x10b   : > { %v1081_v8 = vadd.f32 %v1076_v4, %v957_v6 }
 0x10d   : > { %v1087_v12 = vadd.f32 %v1259_v9, %v1081_v8 }
 0x10f   : > { %v1091_v15 = vmul.f32 0.2, %v1087_v12  ;;  %vm1089_vm0 = vcmp.ge.f32.partialorder %v1087_v12, 0.0 }
 0x111   : > { %v1093_v18 = vsel %vm1089_vm0, %v1087_v12, %v1091_v15 }
 0x112   : > { %v1078_v13 = vpop.f32.mrf.mxu1 }
 0x113   : > { %v1082_v14 = vadd.f32 %v1078_v13, %v958_v11 }
 0x115   : > { %v1088_v16 = vadd.f32 %v1259_v9, %v1082_v14 }
 0x117   : > { %vm1090_vm1 = vcmp.ge.f32.partialorder %v1088_v16, 0.0  ;;  %v1092_v17 = vmul.f32 0.2, %v1088_v16 }
 0x119   : > { %v1094_v19 = vsel %vm1090_vm1, %v1088_v16, %v1092_v17 }
 0x11a   : > { %v1248_v20 = vpack.c.bf16 %v1094_v19, %v1093_v18 }
 0x11c   : > { %1249 = vst [vmem:[%s184_s21] sm:$0xff] %v1248_v20  }
 0x11d PF: > { %s13_s12 = sadd.s32 1, %s1266_s12  }
 0x11e   : > { %p10_p4 = scmp.ge.s32.totalorder %s13_s12, 6  }
 0x120   :  { %12 = sbr.rel (!%p10_p4) target bundleno = 1 (0x1), region = 107 }

// kernel: _lambda_.4
= control target key start
LH: loop header
LB: loop body
LE: loop exit
PB: predicated region body
PF: predicated region fallthrough
CT: control target
= control target key end

     0   :  { %s1715_s12 = smov 0   ;;  %s2048_s0 = inlined_call_operand.vmem [shape: bf16[4,20,5,4], index: 0, kind: input, shape index: {}]   ;;  %s2049_s1 = inlined_call_operand.vmem [shape: bf16[16,4,128], index: 1, kind: input, shape index: {}]   ;;  %s2050_s2 = inlined_call_operand.vmem [shape: f32[4,1,128], index: 2, kind: input, shape index: {}]   ;;  %s2051_s3 = inlined_call_operand.vmem [shape: bf16[4,16,128], index: 3, kind: output, shape index: {}]  }
   0x1 LB: > { %s1574_s13 = sadd.s32 4294967295, %s1693_s12   ;;  %p1578_p0 = scmp.ge.s32.totalorder %s1693_s12, 1  ;;  %s1693_s12 = sphi %s1715_s12, %s13_s12  }
   0x2   : > { %p145_p1 = scmp.lt.s32.totalorder %s1693_s12, 5 }
   0x4   : > { %p146_p2 = pnand %p1578_p0, %p145_p1 }
   0x5   : > { %p172_p3 = scmp.lt.s32.totalorder (!%p146_p2), %s1574_s13, 3 }
   0x6   : > { %149 = sbr.rel (%p146_p2) target bundleno = 342 (0x156), region = 32 }
   0xb   : > { %v1586_v0 = vld [vmem:[%s2049_s1 + $0x2] sm:$0x3]  ;;  %vm213_vm0 = vcmask 1041408   ;;  %v190_v1 = vld [vmem:[%s2049_s1] sm:$0x3]  ;;  %s2059_s13 = smov (!%p172_p3, %s1574_s13), 3 }
   0xc   : > { %v215_v2 = vsel %vm213_vm0, %v1586_v0, 0  ;;  %v246_v3 = vsel %vm213_vm0, %v190_v1, 0  ;;  %v1589_v4 = vld [vmem:[%s2049_s1 + $0x4] sm:$0x3]  ;;  %s1677_s20 = smul.u32 80, %s2059_s13  ;;  %vm277_vm1 = vcmask 1043458   ;;  %s179_s27 = scalar_lea.vmem %s2050_s2, %s2059_s13 }
   0xd   : > { %224 = vmatpush.bf16.msra.mxu0 %v215_v2  ;;  %255 = vmatpush.bf16.msra.mxu1 %v246_v3  ;;  %v375_v5 = vsel %vm213_vm0, %v1589_v4, 0  ;;  %vm299_vm2 = vsmask.f32 1280  ;;  %vm210_vm3 = vcmask 31744   ;;  %vm300_vm4 = vsmask.f32 3336 }
   0xe   : > { %384 = vmatpush.bf16.msra.mxu2 %v375_v5  ;;  %s1741_s23 = scalar_lea.vmem %s2048_s0, %s1677_s20  ;;  %vm302_vm5 = vsmask.f32 5392  ;;  %vm304_vm6 = vsmask.f32 7448  ;;  %vm1763_vm7 = vmor %vm299_vm2, %vm300_vm4  ;;  %v1595_v43 = vld [vmem:[%s2049_s1 + $0x6] sm:$0x3] }
   0xf   : > { %v1582_v6 = vld [vmem:[%s1741_s23 + $0x14] sm:$0x3]  ;;  %v1583_v7 = vld [vmem:[%s1741_s23 + $0x18] sm:$0x3]  ;;  %v1584_v8 = vld [vmem:[%s1741_s23 + $0x1c] sm:$0x3] }
  0x10   : > { %v1585_v9 = vld [vmem:[%s1741_s23 + $0x20] sm:$0x3]  ;;  %199 = vst [vmem:[#allocation1] ss:$4 sm:$0xff] %v1582_v6  ;;  %v263_v11 = vld [vmem:[%s1741_s23 + $0x4] sm:$0x7]  ;;  %vm1776_vm8 = vmor %vm1763_vm7, %vm302_vm5 }
  0x11   : > { %202 = vst [vmem:[#allocation1 + $0x1] ss:$4 sm:$0xff] %v1583_v7  ;;  %v262_v10 = vld [vmem:[%s1741_s23] sm:$0x7]  ;;  %v264_v12 = vld [vmem:[%s1741_s23 + $0x8] sm:$0x7]  ;;  %vm1786_vm9 = vmor %vm1776_vm8, %vm304_vm6 }
  0x12   : > { %205 = vst [vmem:[#allocation1 + $0x2] ss:$4 sm:$0xff] %v1584_v8  ;;  %v265_v13 = vld [vmem:[%s1741_s23 + $0xc] sm:$0x7]  ;;  %v270_v14 = vrot.slane %v262_v10, 2  ;;  %v271_v15 = vrot.slane %v263_v11, 2 }
  0x13   : > { %208 = vst [vmem:[#allocation1 + $0x3] ss:$4 sm:$0xff] %v1585_v9  ;;  %v272_v16 = vrot.slane %v264_v12, 2  ;;  %v273_v17 = vrot.slane %v265_v13, 2  ;;  %v186_v22 = vld [vmem:[%s1741_s23] sm:$0x3] }
  0x14   : > { %v276_v18 = vsel %vm213_vm0, %v262_v10, %v270_v14  ;;  %v278_v19 = vsel %vm277_vm1, %v262_v10, %v270_v14  ;;  %v283_v20 = vsel %vm213_vm0, %v263_v11, %v271_v15  ;;  %v284_v21 = vsel %vm277_vm1, %v263_v11, %v271_v15  ;;  %v187_v26 = vld [vmem:[%s1741_s23 + $0x4] sm:$0x3]  ;;  %v188_v27 = vld [vmem:[%s1741_s23 + $0x8] sm:$0x3]  ;;  %v189_v33 = vld [vmem:[%s1741_s23 + $0xc] sm:$0x3] }
  0x15   : > { %v280_v23 = vrot.slane %v278_v19, 2  ;;  %v286_v24 = vrot.slane %v284_v21, 2  ;;  %v290_v25 = vsel %vm277_vm1, %v264_v12, %v272_v16  ;;  %v289_v28 = vsel %vm213_vm0, %v264_v12, %v272_v16  ;;  %v1591_v49 = vld [vmem:[%s1741_s23 + $0x14] sm:$0x7]  ;;  %v1592_v54 = vld [vmem:[%s1741_s23 + $0x18] sm:$0x7] }
  0x16   : > { %v292_v29 = vrot.slane %v290_v25, 2  ;;  %v296_v30 = vsel %vm277_vm1, %v265_v13, %v273_v17  ;;  %v306_v32 = vshrl.u32 %v276_v18, 16  ;;  %v309_v35 = vshll.u32 %v276_v18, 16  ;;  %v1593_v55 = vld [vmem:[%s1741_s23 + $0x1c] sm:$0x7]  ;;  %s1671_s30 = sshll.u32 %s2059_s13, 3 }
  0x17   : > { %v298_v34 = vrot.slane %v296_v30, 2  ;;  %v315_v36 = vshll.u32 %v280_v23, 16  ;;  %v319_v37 = vshrl.u32 %v283_v20, 16  ;;  %v295_v39 = vsel %vm213_vm0, %v265_v13, %v273_v17  ;;  %v1594_v5 = vld [vmem:[%s1741_s23 + $0x20] sm:$0x7]  ;;  %s184_s6 = scalar_lea.vmem %s2051_s3, %s1671_s30 }
  0x18   : > { %v308_v40 = vrot.slane %v306_v32, 6  ;;  %v322_v41 = vshll.u32 %v283_v20, 16  ;;  %v328_v42 = vshll.u32 %v286_v24, 16  ;;  %v311_v45 = vrot.slane %v309_v35, 7 }
  0x19   : > { %v317_v46 = vrot.slane %v315_v36, 7  ;;  %v321_v47 = vrot.slane %v319_v37, 6  ;;  %v332_v48 = vshrl.u32 %v289_v28, 16  ;;  %v335_v52 = vshll.u32 %v289_v28, 16 }
  0x1a   : > { %v209_v38 = vld.sshfl [vmem:[#allocation1] sm:$0xff pattern:$0x73625140]  ;;  %v324_v50 = vrot.slane %v322_v41, 7  ;;  %v330_v51 = vrot.slane %v328_v42, 7  ;;  %v341_v53 = vshll.u32 %v292_v29, 16  ;;  %v312_v56 = vor.u32 %v311_v45, %v308_v40 }
  0x1b   : > { %1587 = vmatmul.msk.bf16.vlgmr.msra.gmra.mxu0 %vm210_vm3, %v209_v38  ;;  %232 = vst [vmem:[#allocation1] ss:$4 sm:$0xff] %v186_v22  ;;  %v334_v57 = vrot.slane %v332_v48, 6  ;;  %v345_v58 = vshrl.u32 %v295_v39, 16  ;;  %v348_v59 = vshll.u32 %v295_v39, 16  ;;  %v337_v62 = vrot.slane %v335_v52, 7 }
  0x1c   : > { %235 = vst [vmem:[#allocation1 + $0x1] ss:$4 sm:$0xff] %v187_v26  ;;  %v325_v61 = vor.u32 %v324_v50, %v321_v47  ;;  %v343_v63 = vrot.slane %v341_v53, 7  ;;  %v354_v0 = vshll.u32 %v298_v34, 16  ;;  %v313_v1 = vrot.slane %v312_v56, 2 }
  0x1d   : > { %238 = vst [vmem:[#allocation1 + $0x2] ss:$4 sm:$0xff] %v188_v27  ;;  %v347_v2 = vrot.slane %v345_v58, 6  ;;  %v350_v3 = vrot.slane %v348_v59, 7  ;;  %v498_v4 = vsel %vm213_vm0, %v1595_v43, 0  ;;  %v338_v7 = vor.u32 %v337_v62, %v334_v57 }
  0x1e   : > { %241 = vst [vmem:[#allocation1 + $0x3] ss:$4 sm:$0xff] %v189_v33  ;;  %v326_v6 = vrot.slane %v325_v61, 2  ;;  %v356_v8 = vrot.slane %v354_v0, 7  ;;  %507 = vmatpush.bf16.msra.mxu3 %v498_v4  ;;  %v401_v9 = vrot.slane %v1591_v49, 2  ;;  %v318_v10 = vsel %vm1786_vm9, %v313_v1, %v317_v46 }
  0x1f   : > { %v351_v11 = vor.u32 %v350_v3, %v347_v2  ;;  %v402_v12 = vrot.slane %v1592_v54, 2  ;;  %v403_v13 = vrot.slane %v1593_v55, 2  ;;  %v339_v15 = vrot.slane %v338_v7, 2  ;;  %v1601_v39 = vld [vmem:[%s2049_s1 + $0x8] sm:$0x3] }
  0x20   : > { %v331_v14 = vsel %vm1786_vm9, %v326_v6, %v330_v51  ;;  %v404_v16 = vrot.slane %v1594_v5, 2  ;;  %v407_v17 = vsel %vm213_vm0, %v1591_v49, %v401_v9  ;;  %v408_v19 = vsel %vm277_vm1, %v1591_v49, %v401_v9  ;;  %v1607_v52 = vld [vmem:[%s2049_s1 + $0xa] sm:$0x3]  ;;  %v1613_v57 = vld [vmem:[%s2049_s1 + $0xc] sm:$0x3] }
  0x21   : > { %v352_v18 = vrot.slane %v351_v11, 2  ;;  %v413_v20 = vsel %vm213_vm0, %v1592_v54, %v402_v12  ;;  %v414_v21 = vsel %vm277_vm1, %v1592_v54, %v402_v12  ;;  %v344_v22 = vsel %vm1786_vm9, %v339_v15, %v343_v63  ;;  %v1609_v12 = vld [vmem:[%s1741_s23 + $0x28] sm:$0x7]  ;;  %v1611_v15 = vld [vmem:[%s1741_s23 + $0x30] sm:$0x7] }
  0x22   : > { %v410_v23 = vrot.slane %v408_v19, 2  ;;  %v416_v24 = vrot.slane %v414_v21, 2  ;;  %v419_v25 = vsel %vm213_vm0, %v1593_v55, %v403_v13  ;;  %v420_v28 = vsel %vm277_vm1, %v1593_v55, %v403_v13  ;;  %v1610_v13 = vld [vmem:[%s1741_s23 + $0x2c] sm:$0x7]  ;;  %v1612_v19 = vld [vmem:[%s1741_s23 + $0x34] sm:$0x7] }
  0x23   : > { %v357_v27 = vsel %vm1786_vm9, %v352_v18, %v356_v8  ;;  %v425_v29 = vsel %vm213_vm0, %v1594_v5, %v404_v16  ;;  %v426_v30 = vsel %vm277_vm1, %v1594_v5, %v404_v16  ;;  %v422_v31 = vrot.slane %v420_v28, 2  ;;  %v1597_v21 = vld [vmem:[%s1741_s23 + $0x28] sm:$0x3] }
  0x24   : > { %v428_v32 = vrot.slane %v426_v30, 2  ;;  %v429_v33 = vshrl.u32 %v407_v17, 16  ;;  %v432_v34 = vshll.u32 %v407_v17, 16  ;;  %v438_v35 = vshll.u32 %v410_v23, 16  ;;  %v1598_v23 = vld [vmem:[%s1741_s23 + $0x2c] sm:$0x3] }
  0x25   : > { %v242_v26 = vld.sshfl [vmem:[#allocation1] sm:$0xff pattern:$0x73625140]  ;;  %v442_v36 = vshrl.u32 %v413_v20, 16  ;;  %v445_v37 = vshll.u32 %v413_v20, 16  ;;  %v451_v38 = vshll.u32 %v416_v24, 16 }
  0x26   : > { %1588 = vmatmul.msk.bf16.vlgmr.msra.gmra.mxu1 %vm210_vm3, %v242_v26  ;;  %361 = vst [vmem:[#allocation1] ss:$4 sm:$0xff] %v318_v10  ;;  %v431_v40 = vrot.slane %v429_v33, 6  ;;  %v434_v41 = vrot.slane %v432_v34, 7  ;;  %v455_v42 = vshrl.u32 %v419_v25, 16  ;;  %v458_v43 = vshll.u32 %v419_v25, 16 }
  0x27   : > { %364 = vst [vmem:[#allocation1 + $0x1] ss:$4 sm:$0xff] %v331_v14  ;;  %v440_v44 = vrot.slane %v438_v35, 7  ;;  %v444_v45 = vrot.slane %v442_v36, 6  ;;  %v447_v46 = vrot.slane %v445_v37, 7  ;;  %v453_v47 = vrot.slane %v451_v38, 7 }
  0x28   : > { %367 = vst [vmem:[#allocation1 + $0x2] ss:$4 sm:$0xff] %v344_v22  ;;  %v435_v48 = vor.u32 %v434_v41, %v431_v40  ;;  %v457_v49 = vrot.slane %v455_v42, 6  ;;  %v460_v50 = vrot.slane %v458_v43, 7  ;;  %v464_v51 = vshll.u32 %v422_v31, 16 }
  0x29   : > { %370 = vst [vmem:[#allocation1 + $0x3] ss:$4 sm:$0xff] %v357_v27  ;;  %v448_v53 = vor.u32 %v447_v46, %v444_v45  ;;  %v468_v54 = vshrl.u32 %v425_v29, 16  ;;  %v471_v55 = vshll.u32 %v425_v29, 16  ;;  %v477_v56 = vshll.u32 %v428_v32, 16 }
  0x2a   : > { %v436_v58 = vrot.slane %v435_v48, 2  ;;  %v461_v59 = vor.u32 %v460_v50, %v457_v49  ;;  %v466_v61 = vrot.slane %v464_v51, 7  ;;  %v538_v62 = vsel %vm213_vm0, %v1601_v39, 0  ;;  %v1599_v24 = vld [vmem:[%s1741_s23 + $0x30] sm:$0x3] }
  0x2b   : > { %v449_v63 = vrot.slane %v448_v53, 2  ;;  %v470_v0 = vrot.slane %v468_v54, 6  ;;  %v473_v1 = vrot.slane %v471_v55, 7  ;;  %547 = vmatpush.bf16.msrb.mxu0 %v538_v62  ;;  %v578_v4 = vsel %vm213_vm0, %v1607_v52, 0  ;;  %v1600_v30 = vld [vmem:[%s1741_s23 + $0x34] sm:$0x3] }
  0x2c   : > { %v441_v2 = vsel %vm1786_vm9, %v436_v58, %v440_v44  ;;  %v462_v3 = vrot.slane %v461_v59, 2  ;;  %v701_v5 = vsel %vm213_vm0, %v1613_v57, 0  ;;  %v479_v8 = vrot.slane %v477_v56, 7  ;;  %587 = vmatpush.bf16.msrb.mxu1 %v578_v4  ;;  %v1619_v39 = vld [vmem:[%s2049_s1 + $0xe] sm:$0x3] }
  0x2d   : > { %v454_v6 = vsel %vm1786_vm9, %v449_v63, %v453_v47  ;;  %v474_v7 = vor.u32 %v473_v1, %v470_v0  ;;  %710 = vmatpush.bf16.msrb.mxu2 %v701_v5  ;;  %v604_v16 = vrot.slane %v1609_v12, 2  ;;  %v605_v17 = vrot.slane %v1610_v13, 2  ;;  %v1615_v42 = vld [vmem:[%s1741_s23 + $0x3c] sm:$0x7]  ;;  %v1616_v55 = vld [vmem:[%s1741_s23 + $0x40] sm:$0x7] }
  0x2e   : > { %v467_v10 = vsel %vm1786_vm9, %v462_v3, %v466_v61  ;;  %v606_v18 = vrot.slane %v1611_v15, 2  ;;  %v607_v25 = vrot.slane %v1612_v19, 2  ;;  %v824_v41 = vsel %vm213_vm0, %v1619_v39, 0  ;;  %v1617_v56 = vld [vmem:[%s1741_s23 + $0x44] sm:$0x7] }
  0x2f   : > { %v475_v11 = vrot.slane %v474_v7, 2  ;;  %v610_v20 = vsel %vm213_vm0, %v1609_v12, %v604_v16  ;;  %v616_v22 = vsel %vm213_vm0, %v1610_v13, %v605_v17  ;;  %v611_v31 = vsel %vm277_vm1, %v1609_v12, %v604_v16  ;;  %833 = vmatpush.bf16.msrb.mxu3 %v824_v41  ;;  %v1603_v58 = vld [vmem:[%s1741_s23 + $0x3c] sm:$0x3]  ;;  %v1618_v63 = vld [vmem:[%s1741_s23 + $0x48] sm:$0x7] }
  0x30   : > { %v371_v9 = vld.sshfl [vmem:[#allocation1] sm:$0xff pattern:$0x73625140]  ;;  %v622_v26 = vsel %vm213_vm0, %v1611_v15, %v606_v18  ;;  %v632_v28 = vshrl.u32 %v610_v20, 16  ;;  %v635_v29 = vshll.u32 %v610_v20, 16  ;;  %v617_v32 = vsel %vm277_vm1, %v1610_v13, %v605_v17 }
  0x31   : > { %1590 = vmatmul.msk.bf16.vlgmr.msra.gmra.mxu2 %vm210_vm3, %v371_v9  ;;  %484 = vst [vmem:[#allocation1] ss:$4 sm:$0xff] %v441_v2  ;;  %v480_v14 = vsel %vm1786_vm9, %v475_v11, %v479_v8  ;;  %v645_v33 = vshrl.u32 %v616_v22, 16  ;;  %v648_v34 = vshll.u32 %v616_v22, 16  ;;  %v623_v35 = vsel %vm277_vm1, %v1611_v15, %v606_v18  ;;  %v1604_v0 = vld [vmem:[%s1741_s23 + $0x40] sm:$0x3] }
  0x32   : > { %487 = vst [vmem:[#allocation1 + $0x1] ss:$4 sm:$0xff] %v454_v6  ;;  %v629_v36 = vsel %vm277_vm1, %v1612_v19, %v607_v25  ;;  %v658_v37 = vshrl.u32 %v622_v26, 16  ;;  %v661_v38 = vshll.u32 %v622_v26, 16  ;;  %v628_v40 = vsel %vm213_vm0, %v1612_v19, %v607_v25  ;;  %v1605_v5 = vld [vmem:[%s1741_s23 + $0x44] sm:$0x3] }
  0x33   : > { %490 = vst [vmem:[#allocation1 + $0x2] ss:$4 sm:$0xff] %v467_v10  ;;  %v613_v43 = vrot.slane %v611_v31, 2  ;;  %v619_v44 = vrot.slane %v617_v32, 2  ;;  %v634_v45 = vrot.slane %v632_v28, 6  ;;  %v637_v46 = vrot.slane %v635_v29, 7 }
  0x34   : > { %493 = vst [vmem:[#allocation1 + $0x3] ss:$4 sm:$0xff] %v480_v14  ;;  %v625_v47 = vrot.slane %v623_v35, 2  ;;  %v631_v48 = vrot.slane %v629_v36, 2  ;;  %v647_v49 = vrot.slane %v645_v33, 6  ;;  %v650_v50 = vrot.slane %v648_v34, 7 }
  0x35   : > { %v660_v51 = vrot.slane %v658_v37, 6  ;;  %v663_v52 = vrot.slane %v661_v38, 7  ;;  %v671_v53 = vshrl.u32 %v628_v40, 16  ;;  %v674_v54 = vshll.u32 %v628_v40, 16  ;;  %v1606_v11 = vld [vmem:[%s1741_s23 + $0x48] sm:$0x3] }
  0x36   : > { %v727_v57 = vrot.slane %v1615_v42, 2  ;;  %v638_v59 = vor.u32 %v637_v46, %v634_v45  ;;  %v641_v61 = vshll.u32 %v613_v43, 16  ;;  %v1855_v62 = vshll.u32 %v619_v44, 16  ;;  %v1625_v25 = vld [vmem:[%s2049_s1 + $0x10] sm:$0x3] }
  0x37   : > { %v651_v1 = vor.u32 %v650_v50, %v647_v49  ;;  %v1859_v2 = vshll.u32 %v625_v47, 16  ;;  %v1861_v3 = vshll.u32 %v631_v48, 16  ;;  %v728_v4 = vrot.slane %v1616_v55, 2  ;;  %v1631_v29 = vld [vmem:[%s2049_s1 + $0x12] sm:$0x3] }
  0x38   : > { %v664_v6 = vor.u32 %v663_v52, %v660_v51  ;;  %v673_v7 = vrot.slane %v671_v53, 6  ;;  %v676_v8 = vrot.slane %v674_v54, 7  ;;  %v729_v9 = vrot.slane %v1617_v56, 2  ;;  %v1637_v34 = vld [vmem:[%s2049_s1 + $0x14] sm:$0x3] }
  0x39   : > { %v730_v12 = vrot.slane %v1618_v63, 2  ;;  %v733_v13 = vsel %vm213_vm0, %v1615_v42, %v727_v57  ;;  %v639_v14 = vrot.slane %v638_v59, 2  ;;  %v643_v15 = vrot.slane %v641_v61, 7 }
  0x3a   : > { %v656_v16 = vrot.slane %v1855_v62, 7  ;;  %v652_v17 = vrot.slane %v651_v1, 2  ;;  %v669_v18 = vrot.slane %v1859_v2, 7  ;;  %v682_v19 = vrot.slane %v1861_v3, 7 }
  0x3b   : > { %v494_v27 = vld.sshfl [vmem:[#allocation1] sm:$0xff pattern:$0x73625140]  ;;  %v739_v20 = vsel %vm213_vm0, %v1616_v55, %v728_v4  ;;  %v677_v22 = vor.u32 %v676_v8, %v673_v7  ;;  %v751_v26 = vsel %vm213_vm0, %v1618_v63, %v730_v12  ;;  %v864_v28 = vsel %vm213_vm0, %v1625_v25, 0 }
  0x3c   : > { %1596 = vmatmul.msk.bf16.vlgmr.msra.gmra.mxu3 %vm210_vm3, %v494_v27  ;;  %524 = vst [vmem:[#allocation1] ss:$4 sm:$0xff] %v1597_v21  ;;  %v665_v21 = vrot.slane %v664_v6, 2  ;;  %v758_v27 = vshll.u32 %v733_v13, 16  ;;  %v768_v31 = vshrl.u32 %v739_v20, 16  ;;  %v771_v32 = vshll.u32 %v739_v20, 16  ;;  %873 = vmatpush.bf16.msra.mxu0 %v864_v28 }
  0x3d   : > { %527 = vst [vmem:[#allocation1 + $0x1] ss:$4 sm:$0xff] %v1598_v23  ;;  %v745_v23 = vsel %vm213_vm0, %v1617_v56, %v729_v9  ;;  %v904_v33 = vsel %vm213_vm0, %v1631_v29, 0  ;;  %v740_v35 = vsel %vm277_vm1, %v1616_v55, %v728_v4  ;;  %v1027_v38 = vsel %vm213_vm0, %v1637_v34, 0  ;;  %v1634_v20 = vld [vmem:[%s1741_s23 + $0x8] sm:$0x7] }
  0x3e   : > { %530 = vst [vmem:[#allocation1 + $0x2] ss:$4 sm:$0xff] %v1599_v24  ;;  %v755_v24 = vshrl.u32 %v733_v13, 16  ;;  %v781_v36 = vshrl.u32 %v745_v23, 16  ;;  %v784_v37 = vshll.u32 %v745_v23, 16  ;;  %913 = vmatpush.bf16.msra.mxu1 %v904_v33  ;;  %v678_v39 = vrot.slane %v677_v22, 2  ;;  %1036 = vmatpush.bf16.msra.mxu2 %v1027_v38 }
  0x3f   : > { %533 = vst [vmem:[#allocation1 + $0x3] ss:$4 sm:$0xff] %v1600_v30  ;;  %v734_v30 = vsel %vm277_vm1, %v1615_v42, %v727_v57  ;;  %v746_v40 = vsel %vm277_vm1, %v1617_v56, %v729_v9  ;;  %v794_v41 = vshrl.u32 %v751_v26, 16  ;;  %v797_v42 = vshll.u32 %v751_v26, 16  ;;  %v1635_v22 = vld [vmem:[%s1741_s23 + $0xc] sm:$0x7] }
  0x40   : > { %v736_v43 = vrot.slane %v734_v30, 2  ;;  %v752_v44 = vsel %vm277_vm1, %v1618_v63, %v730_v12  ;;  %v757_v45 = vrot.slane %v755_v24, 6  ;;  %v760_v46 = vrot.slane %v758_v27, 7  ;;  %v1636_v23 = vld [vmem:[%s1741_s23 + $0x10] sm:$0x7] }
  0x41   : > { %v644_v47 = vsel %vm1786_vm9, %v639_v14, %v643_v15  ;;  %v742_v48 = vrot.slane %v740_v35, 2  ;;  %v770_v49 = vrot.slane %v768_v31, 6  ;;  %v773_v50 = vrot.slane %v771_v32, 7  ;;  %v1621_v27 = vld [vmem:[%s1741_s23 + $0x4] sm:$0x3] }
  0x42   : > { %v657_v51 = vsel %vm1786_vm9, %v652_v17, %v656_v16  ;;  %v748_v52 = vrot.slane %v746_v40, 2  ;;  %v783_v53 = vrot.slane %v781_v36, 6  ;;  %v786_v54 = vrot.slane %v784_v37, 7  ;;  %v1622_v29 = vld [vmem:[%s1741_s23 + $0x8] sm:$0x3] }
  0x43   : > { %v670_v56 = vsel %vm1786_vm9, %v665_v21, %v669_v18  ;;  %v754_v57 = vrot.slane %v752_v44, 2  ;;  %v799_v59 = vrot.slane %v797_v42, 7  ;;  %v683_v61 = vsel %vm1786_vm9, %v678_v39, %v682_v19  ;;  %v1633_v19 = vld [vmem:[%s1741_s23 + $0x4] sm:$0x7]  ;;  %v1623_v30 = vld [vmem:[%s1741_s23 + $0xc] sm:$0x3] }
  0x44   : > { %v761_v62 = vor.u32 %v760_v46, %v757_v45  ;;  %v764_v63 = vshll.u32 %v736_v43, 16  ;;  %v777_v1 = vshll.u32 %v742_v48, 16  ;;  %v787_v2 = vor.u32 %v786_v54, %v783_v53  ;;  %v1624_v37 = vld [vmem:[%s1741_s23 + $0x10] sm:$0x3]  ;;  %v1643_v42 = vld [vmem:[%s2049_s1 + $0x16] sm:$0x3] }
  0x45   : > { %v790_v3 = vshll.u32 %v748_v52, 16  ;;  %v930_v21 = vrot.slane %v1633_v19, 2  ;;  %v931_v24 = vrot.slane %v1634_v20, 2  ;;  %v932_v25 = vrot.slane %v1635_v22, 2  ;;  %v1639_v54 = vld [vmem:[%s1741_s23 + $0x18] sm:$0x7] }
  0x46   : > { %v534_v10 = vld.sshfl [vmem:[#allocation1] sm:$0xff pattern:$0x73625140]  ;;  %v762_v6 = vrot.slane %v761_v62, 2  ;;  %v766_v7 = vrot.slane %v764_v63, 7  ;;  %v779_v9 = vrot.slane %v777_v1, 7 }
  0x47   : > { %1602 = vmatmul.msk.bf16.vlgmr.msrb.gmra.mxu0 %vm210_vm3, %v534_v10  ;;  %564 = vst [vmem:[#allocation1] ss:$4 sm:$0xff] %v1603_v58  ;;  %v796_v58 = vrot.slane %v794_v41, 6  ;;  %v788_v10 = vrot.slane %v787_v2, 2  ;;  %v936_v26 = vsel %vm213_vm0, %v1633_v19, %v930_v21  ;;  %v933_v28 = vrot.slane %v1636_v23, 2 }
  0x48   : > { %567 = vst [vmem:[#allocation1 + $0x1] ss:$4 sm:$0xff] %v1604_v0  ;;  %v774_v0 = vor.u32 %v773_v50, %v770_v49  ;;  %v767_v14 = vsel %vm1786_vm9, %v762_v6, %v766_v7  ;;  %v942_v31 = vsel %vm213_vm0, %v1634_v20, %v931_v24  ;;  %v937_v33 = vsel %vm277_vm1, %v1633_v19, %v930_v21  ;;  %v1641_v62 = vld [vmem:[%s1741_s23 + $0x20] sm:$0x7]  ;;  %v1642_v2 = vld [vmem:[%s1741_s23 + $0x24] sm:$0x7] }
  0x49   : > { %570 = vst [vmem:[#allocation1 + $0x2] ss:$4 sm:$0xff] %v1605_v5  ;;  %v800_v4 = vor.u32 %v799_v59, %v796_v58  ;;  %v803_v5 = vshll.u32 %v754_v57, 16  ;;  %v943_v34 = vsel %vm277_vm1, %v1634_v20, %v931_v24  ;;  %v958_v35 = vshrl.u32 %v936_v26, 16  ;;  %v1640_v58 = vld [vmem:[%s1741_s23 + $0x1c] sm:$0x7] }
  0x4a   : > { %573 = vst [vmem:[#allocation1 + $0x3] ss:$4 sm:$0xff] %v1606_v11  ;;  %v775_v8 = vrot.slane %v774_v0, 2  ;;  %v792_v11 = vrot.slane %v790_v3, 7  ;;  %v961_v36 = vshll.u32 %v936_v26, 16  ;;  %v948_v38 = vsel %vm213_vm0, %v1635_v22, %v932_v25 }
  0x4b   : > { %v801_v12 = vrot.slane %v800_v4, 2  ;;  %v805_v13 = vrot.slane %v803_v5, 7  ;;  %v954_v39 = vsel %vm213_vm0, %v1636_v23, %v933_v28  ;;  %v971_v40 = vshrl.u32 %v942_v31, 16  ;;  %v1627_v4 = vld [vmem:[%s1741_s23 + $0x18] sm:$0x3] }
  0x4c   : > { %v780_v15 = vsel %vm1786_vm9, %v775_v8, %v779_v9  ;;  %v793_v17 = vsel %vm1786_vm9, %v788_v10, %v792_v11  ;;  %v974_v41 = vshll.u32 %v942_v31, 16  ;;  %v939_v43 = vrot.slane %v937_v33, 2  ;;  %v1628_v9 = vld [vmem:[%s1741_s23 + $0x1c] sm:$0x3]  ;;  %v1629_v10 = vld [vmem:[%s1741_s23 + $0x20] sm:$0x3] }
  0x4d   : > { %v806_v18 = vsel %vm1786_vm9, %v801_v12, %v805_v13  ;;  %v945_v44 = vrot.slane %v943_v34, 2  ;;  %v949_v45 = vsel %vm277_vm1, %v1635_v22, %v932_v25  ;;  %v1150_v46 = vsel %vm213_vm0, %v1643_v42, 0  ;;  %v1649_v25 = vld [vmem:[%s2049_s1 + $0x18] sm:$0x3] }
  0x4e   : > { %v960_v48 = vrot.slane %v958_v35, 6  ;;  %v963_v49 = vrot.slane %v961_v36, 7  ;;  %v984_v50 = vshrl.u32 %v948_v38, 16  ;;  %1159 = vmatpush.bf16.msra.mxu3 %v1150_v46  ;;  %v997_v52 = vshrl.u32 %v954_v39, 16 }
  0x4f   : > { %v1000_v53 = vshll.u32 %v954_v39, 16  ;;  %v976_v57 = vrot.slane %v974_v41, 7  ;;  %v980_v0 = vshll.u32 %v945_v44, 16  ;;  %v1053_v3 = vrot.slane %v1639_v54, 2 }
  0x50   : > { %v964_v63 = vor.u32 %v963_v49, %v960_v48  ;;  %v986_v1 = vrot.slane %v984_v50, 6  ;;  %v999_v6 = vrot.slane %v997_v52, 6  ;;  %v1054_v8 = vrot.slane %v1640_v58, 2 }
  0x51   : > { %v574_v55 = vld.sshfl [vmem:[#allocation1] sm:$0xff pattern:$0x73625140]  ;;  %v1002_v7 = vrot.slane %v1000_v53, 7  ;;  %v1055_v13 = vrot.slane %v1641_v62, 2  ;;  %v1059_v20 = vsel %vm213_vm0, %v1639_v54, %v1053_v3 }
  0x52   : > { %1608 = vmatmul.msk.bf16.vlgmr.msrb.gmra.mxu1 %vm210_vm3, %v574_v55  ;;  %687 = vst [vmem:[#allocation1] ss:$4 sm:$0xff] %v644_v47  ;;  %v955_v47 = vsel %vm277_vm1, %v1636_v23, %v933_v28  ;;  %v951_v55 = vrot.slane %v949_v45, 2  ;;  %v965_v21 = vrot.slane %v964_v63, 2  ;;  %v1065_v24 = vsel %vm213_vm0, %v1640_v58, %v1054_v8 }
  0x53   : > { %690 = vst [vmem:[#allocation1 + $0x1] ss:$4 sm:$0xff] %v657_v51  ;;  %v987_v51 = vshll.u32 %v948_v38, 16  ;;  %v957_v59 = vrot.slane %v955_v47, 2  ;;  %v1003_v23 = vor.u32 %v1002_v7, %v999_v6  ;;  %v1071_v28 = vsel %vm213_vm0, %v1641_v62, %v1055_v13 }
  0x54   : > { %693 = vst [vmem:[#allocation1 + $0x2] ss:$4 sm:$0xff] %v670_v56  ;;  %v973_v56 = vrot.slane %v971_v40, 6  ;;  %v993_v12 = vshll.u32 %v951_v55, 16  ;;  %v1084_v33 = vshll.u32 %v1059_v20, 16  ;;  %v1066_v35 = vsel %vm277_vm1, %v1640_v58, %v1054_v8 }
  0x55   : > { %696 = vst [vmem:[#allocation1 + $0x3] ss:$4 sm:$0xff] %v683_v61  ;;  %v967_v61 = vshll.u32 %v939_v43, 16  ;;  %v989_v5 = vrot.slane %v987_v51, 7  ;;  %v1006_v19 = vshll.u32 %v957_v59, 16  ;;  %v1094_v36 = vshrl.u32 %v1065_v24, 16 }
  0x56   : > { %v977_v11 = vor.u32 %v976_v57, %v973_v56  ;;  %v1004_v39 = vrot.slane %v1003_v23, 2  ;;  %v1107_v40 = vshrl.u32 %v1071_v28, 16  ;;  %v1110_v41 = vshll.u32 %v1071_v28, 16  ;;  %v1658_v28 = vld [vmem:[%s1741_s23 + $0x30] sm:$0x7] }
  0x57   : > { %v990_v22 = vor.u32 %v989_v5, %v986_v1  ;;  %v1008_v34 = vrot.slane %v1006_v19, 7  ;;  %v1072_v43 = vsel %vm277_vm1, %v1641_v62, %v1055_v13  ;;  %v1068_v46 = vrot.slane %v1066_v35, 2  ;;  %v1661_v5 = vld [vmem:[%s2049_s1 + $0x1c] sm:$0x3] }
  0x58   : > { %v978_v26 = vrot.slane %v977_v11, 2  ;;  %v1086_v49 = vrot.slane %v1084_v33, 7  ;;  %v1096_v51 = vrot.slane %v1094_v36, 6  ;;  %v1109_v55 = vrot.slane %v1107_v40, 6  ;;  %v1645_v33 = vld [vmem:[%s1741_s23 + $0x2c] sm:$0x3] }
  0x59   : > { %v991_v38 = vrot.slane %v990_v22, 2  ;;  %v1112_v56 = vrot.slane %v1110_v41, 7  ;;  %v1009_v63 = vsel %vm1786_vm9, %v1004_v39, %v1008_v34  ;;  %v1646_v36 = vld [vmem:[%s1741_s23 + $0x30] sm:$0x3]  ;;  %v1647_v40 = vld [vmem:[%s1741_s23 + $0x34] sm:$0x3] }
  0x5a   : > { %v1648_v41 = vld [vmem:[%s1741_s23 + $0x38] sm:$0x3] }
  0x5b   : > { %v1113_v6 = vor.u32 %v1112_v56, %v1109_v55 }
  0x5c   : > { %v697_v16 = vld.sshfl [vmem:[#allocation1] sm:$0xff pattern:$0x73625140] }
  0x5d   : > { %1614 = vmatmul.msk.bf16.vlgmr.msrb.gmra.mxu2 %vm210_vm3, %v697_v16  ;;  %810 = vst [vmem:[#allocation1] ss:$4 sm:$0xff] %v767_v14  ;;  %v1056_v16 = vrot.slane %v1642_v2, 2 }
  0x5e   : > { %813 = vst [vmem:[#allocation1 + $0x1] ss:$4 sm:$0xff] %v780_v15  ;;  %v1630_v15 = vld [vmem:[%s1741_s23 + $0x24] sm:$0x3] }
  0x5f   : > { %816 = vst [vmem:[#allocation1 + $0x2] ss:$4 sm:$0xff] %v793_v17  ;;  %v969_v17 = vrot.slane %v967_v61, 7  ;;  %v1077_v31 = vsel %vm213_vm0, %v1642_v2, %v1056_v16  ;;  %v1078_v47 = vsel %vm277_vm1, %v1642_v2, %v1056_v16  ;;  %v1103_v2 = vshll.u32 %v1068_v46, 16 }
  0x60   : > { %819 = vst [vmem:[#allocation1 + $0x3] ss:$4 sm:$0xff] %v806_v18  ;;  %v982_v18 = vrot.slane %v980_v0, 7  ;;  %v1120_v44 = vshrl.u32 %v1077_v31, 16  ;;  %v1123_v45 = vshll.u32 %v1077_v31, 16  ;;  %v1080_v59 = vrot.slane %v1078_v47, 2 }
  0x61   : > { %v970_v50 = vsel %vm1786_vm9, %v965_v21, %v969_v17  ;;  %v1114_v16 = vrot.slane %v1113_v6, 2  ;;  %v1257_v31 = vrot.slane %v1658_v28, 2 }
  0x62   : > { %v983_v53 = vsel %vm1786_vm9, %v978_v26, %v982_v18  ;;  %v1122_v61 = vrot.slane %v1120_v44, 6  ;;  %v1125_v62 = vrot.slane %v1123_v45, 7  ;;  %v1129_v11 = vshll.u32 %v1080_v59, 16  ;;  %v1657_v26 = vld [vmem:[%s1741_s23 + $0x2c] sm:$0x7] }
  0x64   : > { %v1131_v19 = vrot.slane %v1129_v11, 7 }
  0x67   : > { %v820_v32 = vld.sshfl [vmem:[#allocation1] sm:$0xff pattern:$0x73625140] }
  0x68   : > { %1620 = vmatmul.msk.bf16.vlgmr.msrb.gmra.mxu3 %vm210_vm3, %v820_v32  ;;  %850 = vst [vmem:[#allocation1] ss:$4 sm:$0xff] %v1621_v27  ;;  %v995_v27 = vrot.slane %v993_v12, 7  ;;  %v1081_v32 = vshrl.u32 %v1059_v20, 16 }
  0x69   : > { %853 = vst [vmem:[#allocation1 + $0x1] ss:$4 sm:$0xff] %v1622_v29  ;;  %v1190_v29 = vsel %vm213_vm0, %v1649_v25, 0  ;;  %v1667_v25 = vld [vmem:[%s2049_s1 + $0x1e] sm:$0x3] }
  0x6a   : > { %856 = vst [vmem:[#allocation1 + $0x2] ss:$4 sm:$0xff] %v1623_v30  ;;  %v1060_v30 = vsel %vm277_vm1, %v1639_v54, %v1053_v3  ;;  %1199 = vmatpush.bf16.msrb.mxu0 %v1190_v29  ;;  %v1083_v48 = vrot.slane %v1081_v32, 6  ;;  %v1074_v54 = vrot.slane %v1072_v43, 2  ;;  %v996_v58 = vsel %vm1786_vm9, %v991_v38, %v995_v27  ;;  %v1660_v32 = vld [vmem:[%s1741_s23 + $0x38] sm:$0x7] }
  0x6b   : > { %859 = vst [vmem:[#allocation1 + $0x3] ss:$4 sm:$0xff] %v1624_v37  ;;  %v1097_v37 = vshll.u32 %v1065_v24, 16  ;;  %v1062_v42 = vrot.slane %v1060_v30, 2  ;;  %v1476_v27 = vsel %vm213_vm0, %v1667_v25, 0  ;;  %v1256_v29 = vrot.slane %v1657_v26, 2 }
  0x6c   : > { %v1087_v0 = vor.u32 %v1086_v49, %v1083_v48  ;;  %v1116_v7 = vshll.u32 %v1074_v54, 16  ;;  %1485 = vmatpush.bf16.msrb.mxu3 %v1476_v27  ;;  %v1659_v30 = vld [vmem:[%s1741_s23 + $0x34] sm:$0x7]  ;;  %v1268_v38 = vsel %vm213_vm0, %v1658_v28, %v1257_v31  ;;  %v1269_v43 = vsel %vm277_vm1, %v1658_v28, %v1257_v31 }
  0x6d   : > { %v1099_v52 = vrot.slane %v1097_v37, 7  ;;  %v1090_v1 = vshll.u32 %v1062_v42, 16  ;;  %v1258_v34 = vrot.slane %v1659_v30, 2  ;;  %v1262_v35 = vsel %vm213_vm0, %v1657_v26, %v1256_v29 }
  0x6e   : > { %v1088_v12 = vrot.slane %v1087_v0, 2  ;;  %v1118_v17 = vrot.slane %v1116_v7, 7  ;;  %v1259_v37 = vrot.slane %v1660_v32, 2  ;;  %v1263_v42 = vsel %vm277_vm1, %v1657_v26, %v1256_v29  ;;  %v1664_v0 = vld [vmem:[%s1741_s23 + $0x44] sm:$0x7] }
  0x6f   : > { %v1100_v3 = vor.u32 %v1099_v52, %v1096_v51  ;;  %v1092_v13 = vrot.slane %v1090_v1, 7  ;;  %v1284_v44 = vshrl.u32 %v1262_v35, 16  ;;  %v1287_v45 = vshll.u32 %v1262_v35, 16  ;;  %v1651_v1 = vld [vmem:[%s1741_s23 + $0x40] sm:$0x3] }
  0x70   : > { %v1119_v23 = vsel %vm1786_vm9, %v1114_v16, %v1118_v17  ;;  %v1274_v46 = vsel %vm213_vm0, %v1659_v30, %v1258_v34  ;;  %v1297_v47 = vshrl.u32 %v1268_v38, 16  ;;  %v1300_v48 = vshll.u32 %v1268_v38, 16  ;;  %v1666_v7 = vld [vmem:[%s1741_s23 + $0x4c] sm:$0x7] }
  0x71   : > { %v1093_v20 = vsel %vm1786_vm9, %v1088_v12, %v1092_v13  ;;  %v1280_v49 = vsel %vm213_vm0, %v1660_v32, %v1259_v37  ;;  %v1271_v51 = vrot.slane %v1269_v43, 2  ;;  %v1275_v52 = vsel %vm277_vm1, %v1659_v30, %v1258_v34 }
  0x72   : > { %v860_v14 = vld.sshfl [vmem:[#allocation1] sm:$0xff pattern:$0x73625140]  ;;  %v1286_v54 = vrot.slane %v1284_v44, 6  ;;  %v1289_v55 = vrot.slane %v1287_v45, 7  ;;  %v1310_v56 = vshrl.u32 %v1274_v46, 16 }
  0x73   : > { %1626 = vmatmul.msk.bf16.vlgmr.msra.gmra.mxu0 %vm210_vm3, %v860_v14  ;;  %890 = vst [vmem:[#allocation1] ss:$4 sm:$0xff] %v1627_v4  ;;  %v1655_v4 = vld [vmem:[%s2049_s1 + $0x1a] sm:$0x3]  ;;  %v1101_v14 = vrot.slane %v1100_v3, 2  ;;  %v1299_v59 = vrot.slane %v1297_v47, 6 }
  0x74   : > { %893 = vst [vmem:[#allocation1 + $0x1] ss:$4 sm:$0xff] %v1628_v9  ;;  %v1230_v8 = vsel %vm213_vm0, %v1655_v4, 0  ;;  %v1353_v9 = vsel %vm213_vm0, %v1661_v5, 0  ;;  %v1665_v3 = vld [vmem:[%s1741_s23 + $0x48] sm:$0x7] }
  0x75   : > { %896 = vst [vmem:[#allocation1 + $0x2] ss:$4 sm:$0xff] %v1629_v10  ;;  %v1126_v10 = vor.u32 %v1125_v62, %v1122_v61  ;;  %1239 = vmatpush.bf16.msrb.mxu1 %v1230_v8  ;;  %1362 = vmatpush.bf16.msrb.mxu2 %v1353_v9  ;;  %v1302_v61 = vrot.slane %v1300_v48, 7  ;;  %v1323_v62 = vshrl.u32 %v1280_v49, 16  ;;  %v1306_v6 = vshll.u32 %v1271_v51, 16 }
  0x76   : > { %899 = vst [vmem:[#allocation1 + $0x3] ss:$4 sm:$0xff] %v1630_v15  ;;  %v1105_v15 = vrot.slane %v1103_v2, 7  ;;  %v1277_v2 = vrot.slane %v1275_v52, 2  ;;  %v1652_v9 = vld [vmem:[%s1741_s23 + $0x44] sm:$0x3] }
  0x77   : > { %v1127_v18 = vrot.slane %v1126_v10, 2  ;;  %v1290_v10 = vor.u32 %v1289_v55, %v1286_v54  ;;  %v1312_v11 = vrot.slane %v1310_v56, 6  ;;  %v1380_v13 = vrot.slane %v1664_v0, 2 }
  0x78   : > { %v1106_v21 = vsel %vm1786_vm9, %v1101_v14, %v1105_v15  ;;  %v1653_v14 = vld [vmem:[%s1741_s23 + $0x48] sm:$0x3]  ;;  %v1303_v15 = vor.u32 %v1302_v61, %v1299_v59  ;;  %v1325_v16 = vrot.slane %v1323_v62, 6  ;;  %v1308_v26 = vrot.slane %v1306_v6, 7 }
  0x79   : > { %v1132_v24 = vsel %vm1786_vm9, %v1127_v18, %v1131_v19  ;;  %v1381_v18 = vrot.slane %v1665_v3, 2  ;;  %v1391_v28 = vsel %vm213_vm0, %v1664_v0, %v1380_v13  ;;  %v1291_v29 = vrot.slane %v1290_v10, 2 }
  0x7a   : > { %v1304_v30 = vrot.slane %v1303_v15, 2 }
  0x7d   : > { %v900_v57 = vld.sshfl [vmem:[#allocation1] sm:$0xff pattern:$0x73625140] }
  0x7e   : > { %1632 = vmatmul.msk.bf16.vlgmr.msra.gmra.mxu1 %vm210_vm3, %v900_v57  ;;  %1013 = vst [vmem:[#allocation1] ss:$4 sm:$0xff] %v970_v50  ;;  %v1265_v50 = vrot.slane %v1263_v42, 2  ;;  %v1313_v57 = vshll.u32 %v1274_v46, 16  ;;  %v1392_v42 = vsel %vm277_vm1, %v1664_v0, %v1380_v13  ;;  %v1398_v46 = vsel %vm277_vm1, %v1665_v3, %v1381_v18 }
  0x7f   : > { %1016 = vst [vmem:[#allocation1 + $0x1] ss:$4 sm:$0xff] %v983_v53  ;;  %v1281_v53 = vsel %vm277_vm1, %v1660_v32, %v1259_v37  ;;  %v1397_v32 = vsel %vm213_vm0, %v1665_v3, %v1381_v18  ;;  %v1394_v54 = vrot.slane %v1392_v42, 2 }
  0x80   : > { %1019 = vst [vmem:[#allocation1 + $0x2] ss:$4 sm:$0xff] %v996_v58  ;;  %v1663_v58 = vld [vmem:[%s1741_s23 + $0x40] sm:$0x7]  ;;  %v1283_v4 = vrot.slane %v1281_v53, 2  ;;  %v1293_v5 = vshll.u32 %v1265_v50, 16 }
  0x81   : > { %1022 = vst [vmem:[#allocation1 + $0x3] ss:$4 sm:$0xff] %v1009_v63  ;;  %v1326_v63 = vshll.u32 %v1280_v49, 16  ;;  %v1379_v8 = vrot.slane %v1663_v58, 2  ;;  %v1315_v12 = vrot.slane %v1313_v57, 7  ;;  %v1433_v43 = vshrl.u32 %v1397_v32, 16 }
  0x82   : > { %v1295_v25 = vrot.slane %v1293_v5, 7  ;;  %v1436_v44 = vshll.u32 %v1397_v32, 16  ;;  %v1309_v57 = vsel %vm1786_vm9, %v1304_v30, %v1308_v26 }
  0x83   : > { %v1328_v17 = vrot.slane %v1326_v63, 7  ;;  %v1316_v27 = vor.u32 %v1315_v12, %v1312_v11  ;;  %v1386_v38 = vsel %vm277_vm1, %v1663_v58, %v1379_v8  ;;  %v1435_v59 = vrot.slane %v1433_v43, 6 }
  0x84   : > { %v1388_v49 = vrot.slane %v1386_v38, 2  ;;  %v1296_v53 = vsel %vm1786_vm9, %v1291_v29, %v1295_v25  ;;  %v1438_v61 = vrot.slane %v1436_v44, 7 }
  0x85   : > { %v1329_v31 = vor.u32 %v1328_v17, %v1325_v16 }
  0x86   : > { %v1416_v5 = vshll.u32 %v1388_v49, 16 }
  0x87   : > { %v1330_v45 = vrot.slane %v1329_v31, 2 }
  0x88   : > { %v1023_v22 = vld.sshfl [vmem:[#allocation1] sm:$0xff pattern:$0x73625140]  ;;  %v1418_v13 = vrot.slane %v1416_v5, 7 }
  0x89   : > { %1638 = vmatmul.msk.bf16.vlgmr.msra.gmra.mxu2 %vm210_vm3, %v1023_v22  ;;  %1136 = vst [vmem:[#allocation1] ss:$4 sm:$0xff] %v1093_v20  ;;  %v1319_v20 = vshll.u32 %v1277_v2, 16  ;;  %v1654_v22 = vld [vmem:[%s1741_s23 + $0x4c] sm:$0x3] }
  0x8a   : > { %1139 = vst [vmem:[#allocation1 + $0x1] ss:$4 sm:$0xff] %v1106_v21  ;;  %v1382_v21 = vrot.slane %v1666_v7, 2 }
  0x8b   : > { %1142 = vst [vmem:[#allocation1 + $0x2] ss:$4 sm:$0xff] %v1119_v23  ;;  %v1332_v23 = vshll.u32 %v1283_v4, 16 }
  0x8c   : > { %1145 = vst [vmem:[#allocation1 + $0x3] ss:$4 sm:$0xff] %v1132_v24  ;;  %v1385_v24 = vsel %vm213_vm0, %v1663_v58, %v1379_v8  ;;  %v1403_v34 = vsel %vm213_vm0, %v1666_v7, %v1382_v21  ;;  %v1404_v50 = vsel %vm277_vm1, %v1666_v7, %v1382_v21  ;;  %v1400_v58 = vrot.slane %v1398_v46, 2 }
  0x8d   : > { %v1407_v35 = vshrl.u32 %v1385_v24, 16  ;;  %v1334_v37 = vrot.slane %v1332_v23, 7  ;;  %v1446_v47 = vshrl.u32 %v1403_v34, 16  ;;  %v1449_v48 = vshll.u32 %v1403_v34, 16 }
  0x8e   : > { %v1406_v0 = vrot.slane %v1404_v50, 2  ;;  %v1429_v7 = vshll.u32 %v1394_v54, 16  ;;  %v1439_v8 = vor.u32 %v1438_v61, %v1435_v59 }
  0x8f   : > { %v1409_v51 = vrot.slane %v1407_v35, 6  ;;  %v1451_v2 = vrot.slane %v1449_v48, 7  ;;  %v1335_v3 = vsel %vm1786_vm9, %v1330_v45, %v1334_v37 }
  0x90   : > { %v1455_v11 = vshll.u32 %v1406_v0, 16  ;;  %v1431_v15 = vrot.slane %v1429_v7, 7  ;;  %v1440_v16 = vrot.slane %v1439_v8, 2 }
  0x93   : > { %v1146_v39 = vld.sshfl [vmem:[#allocation1] sm:$0xff pattern:$0x73625140] }
  0x94   : > { %1644 = vmatmul.msk.bf16.vlgmr.msra.gmra.mxu3 %vm210_vm3, %v1146_v39  ;;  %1176 = vst [vmem:[#allocation1] ss:$4 sm:$0xff] %v1645_v33  ;;  %v1321_v33 = vrot.slane %v1319_v20, 7  ;;  %v1420_v39 = vshrl.u32 %v1391_v28, 16 }
  0x95   : > { %1179 = vst [vmem:[#allocation1 + $0x1] ss:$4 sm:$0xff] %v1646_v36  ;;  %v1410_v36 = vshll.u32 %v1385_v24, 16 }
  0x96   : > { %1182 = vst [vmem:[#allocation1 + $0x2] ss:$4 sm:$0xff] %v1647_v40  ;;  %v1423_v40 = vshll.u32 %v1391_v28, 16  ;;  %v1422_v55 = vrot.slane %v1420_v39, 6 }
  0x97   : > { %1185 = vst [vmem:[#allocation1 + $0x3] ss:$4 sm:$0xff] %v1648_v41  ;;  %v1317_v41 = vrot.slane %v1316_v27, 2  ;;  %v1412_v52 = vrot.slane %v1410_v36, 7 }
  0x98   : > { %v1425_v56 = vrot.slane %v1423_v40, 7  ;;  %v226_v26 = vpop.f32.mrf.mxu0 }
  0x99   : > { %v1322_v63 = vsel %vm1786_vm9, %v1317_v41, %v1321_v33  ;;  %v1413_v4 = vor.u32 %v1412_v52, %v1409_v51 }
  0x9a   : > { %v1426_v6 = vor.u32 %v1425_v56, %v1422_v55 }
  0x9b   : > { %v1414_v12 = vrot.slane %v1413_v4, 2 }
  0x9d   : > { %v1419_v20 = vsel %vm1786_vm9, %v1414_v12, %v1418_v13 }
  0x9e   : > { %v1186_v19 = vld.sshfl [vmem:[#allocation1] sm:$0xff pattern:$0x73625140] }
  0x9f   : > { %1650 = vmatmul.msk.bf16.vlgmr.msrb.gmra.mxu0 %vm210_vm3, %v1186_v19  ;;  %1216 = vst [vmem:[#allocation1] ss:$4 sm:$0xff] %v1651_v1  ;;  %v1448_v1 = vrot.slane %v1446_v47, 6  ;;  %v1457_v19 = vrot.slane %v1455_v11, 7 }
  0xa0   : > { %1219 = vst [vmem:[#allocation1 + $0x1] ss:$4 sm:$0xff] %v1652_v9  ;;  %v1442_v9 = vshll.u32 %v1400_v58, 16  ;;  %v228_v29 = vpop.f32.mrf.mxu0 }
  0xa1   : > { %1222 = vst [vmem:[#allocation1 + $0x2] ss:$4 sm:$0xff] %v1653_v14  ;;  %v1452_v10 = vor.u32 %v1451_v2, %v1448_v1  ;;  %v1427_v14 = vrot.slane %v1426_v6, 2 }
  0xa2   : > { %1225 = vst [vmem:[#allocation1 + $0x3] ss:$4 sm:$0xff] %v1654_v22  ;;  %v1444_v17 = vrot.slane %v1442_v9, 7 }
  0xa3   : > { %v1453_v18 = vrot.slane %v1452_v10, 2  ;;  %v1432_v21 = vsel %vm1786_vm9, %v1427_v14, %v1431_v15  ;;  %v257_v27 = vpop.f32.mrf.mxu1 }
  0xa4   : > { %v1445_v23 = vsel %vm1786_vm9, %v1440_v16, %v1444_v17  ;;  %v258_v35 = vadd.f32 %v257_v27, %v226_v26 }
  0xa5   : > { %v1458_v24 = vsel %vm1786_vm9, %v1453_v18, %v1457_v19  ;;  %v1686_v19 = vld [vmem:[%s179_s27] ss:$0 sm:$0xff] }
  0xa9   : > { %v1226_v62 = vld.sshfl [vmem:[#allocation1] sm:$0xff pattern:$0x73625140] }
  0xaa   : > { %1656 = vmatmul.msk.bf16.vlgmr.msrb.gmra.mxu1 %vm210_vm3, %v1226_v62  ;;  %1339 = vst [vmem:[#allocation1] ss:$4 sm:$0xff] %v1296_v53 }
  0xab   : > { %1342 = vst [vmem:[#allocation1 + $0x1] ss:$4 sm:$0xff] %v1309_v57  ;;  %v259_v30 = vpop.f32.mrf.mxu1 }
  0xac   : > { %1345 = vst [vmem:[#allocation1 + $0x2] ss:$4 sm:$0xff] %v1322_v63  ;;  %v260_v39 = vadd.f32 %v259_v30, %v228_v29 }
  0xad   : > { %1348 = vst [vmem:[#allocation1 + $0x3] ss:$4 sm:$0xff] %v1335_v3 }
  0xb4   : > { %v1349_v22 = vld.sshfl [vmem:[#allocation1] sm:$0xff pattern:$0x73625140]  ;;  %v386_v28 = vpop.f32.mrf.mxu2 }
  0xb5   : > { %1662 = vmatmul.msk.bf16.vlgmr.msrb.gmra.mxu2 %vm210_vm3, %v1349_v22  ;;  %1462 = vst [vmem:[#allocation1] ss:$4 sm:$0xff] %v1419_v20  ;;  %v391_v37 = vadd.f32 %v386_v28, %v258_v35 }
  0xb6   : > { %1465 = vst [vmem:[#allocation1 + $0x1] ss:$4 sm:$0xff] %v1432_v21 }
  0xb7   : > { %1468 = vst [vmem:[#allocation1 + $0x2] ss:$4 sm:$0xff] %v1445_v23 }
  0xb8   : > { %1471 = vst [vmem:[#allocation1 + $0x3] ss:$4 sm:$0xff] %v1458_v24 }
  0xbc   : > { %v388_v32 = vpop.f32.mrf.mxu2 }
  0xbd   : > { %v392_v44 = vadd.f32 %v388_v32, %v260_v39 }
  0xbf   : > { %v1472_v25 = vld.sshfl [vmem:[#allocation1] sm:$0xff pattern:$0x73625140]  ;;  %v509_v31 = vpop.f32.mrf.mxu3 }
  0xc0   : > { %1668 = vmatmul.msk.bf16.vlgmr.msrb.gmra.mxu3 %vm210_vm3, %v1472_v25  ;;  %v514_v40 = vadd.f32 %v509_v31, %v391_v37 }
  0xc4   : > { %v549_v60 = vpop.f32.mrf.mxu0 }
  0xc5   : > { %v554_v45 = vadd.f32 %v549_v60, %v514_v40 }
  0xc7   : > { %v511_v34 = vpop.f32.mrf.mxu3 }
  0xc8   : > { %v515_v47 = vadd.f32 %v511_v34, %v392_v44 }
  0xcc   : > { %v551_v38 = vpop.f32.mrf.mxu0 }
  0xcd   : > { %v555_v51 = vadd.f32 %v551_v38, %v515_v47 }
  0xcf   : > { %v589_v33 = vpop.f32.mrf.mxu1 }
  0xd0   : > { %v594_v46 = vadd.f32 %v589_v33, %v554_v45 }
  0xd7   : > { %v591_v41 = vpop.f32.mrf.mxu1 }
  0xd8   : > { %v595_v54 = vadd.f32 %v591_v41, %v555_v51 }
  0xe0   : > { %v712_v36 = vpop.f32.mrf.mxu2 }
  0xe1   : > { %v717_v52 = vadd.f32 %v712_v36, %v594_v46 }
  0xe8   : > { %v714_v43 = vpop.f32.mrf.mxu2 }
  0xe9   : > { %v718_v58 = vadd.f32 %v714_v43, %v595_v54 }
  0xeb   : > { %v835_v42 = vpop.f32.mrf.mxu3 }
  0xec   : > { %v840_v55 = vadd.f32 %v835_v42, %v717_v52 }
  0xf0   : > { %v875_v48 = vpop.f32.mrf.mxu0 }
  0xf1   : > { %v880_v59 = vadd.f32 %v875_v48, %v840_v55 }
  0xf3   : > { %v837_v50 = vpop.f32.mrf.mxu3 }
  0xf4   : > { %v841_v0 = vadd.f32 %v837_v50, %v718_v58 }
  0xf8   : > { %v877_v56 = vpop.f32.mrf.mxu0 }
  0xf9   : > { %v881_v2 = vadd.f32 %v877_v56, %v841_v0 }
  0xfb   : > { %v915_v49 = vpop.f32.mrf.mxu1 }
  0xfc   : > { %v920_v63 = vadd.f32 %v915_v49, %v880_v59 }
 0x103   : > { %v917_v61 = vpop.f32.mrf.mxu1 }
 0x104   : > { %v921_v8 = vadd.f32 %v917_v61, %v881_v2 }
 0x10c   : > { %v1038_v53 = vpop.f32.mrf.mxu2 }
 0x10d   : > { %v1043_v3 = vadd.f32 %v1038_v53, %v920_v63 }
 0x114   : > { %v1040_v62 = vpop.f32.mrf.mxu2 }
 0x115   : > { %v1044_v9 = vadd.f32 %v1040_v62, %v921_v8 }
 0x117   : > { %v1161_v57 = vpop.f32.mrf.mxu3 }
 0x118   : > { %v1166_v6 = vadd.f32 %v1161_v57, %v1043_v3 }
 0x11c   : > { %v1201_v1 = vpop.f32.mrf.mxu0 }
 0x11d   : > { %v1206_v10 = vadd.f32 %v1201_v1, %v1166_v6 }
 0x11f   : > { %v1163_v4 = vpop.f32.mrf.mxu3 }
 0x120   : > { %v1167_v11 = vadd.f32 %v1163_v4, %v1044_v9 }
 0x124   : > { %v1203_v13 = vpop.f32.mrf.mxu0 }
 0x125   : > { %v1207_v17 = vadd.f32 %v1203_v13, %v1167_v11 }
 0x127   : > { %v1241_v5 = vpop.f32.mrf.mxu1 }
 0x128   : > { %v1246_v12 = vadd.f32 %v1241_v5, %v1206_v10 }
 0x12f   : > { %v1243_v16 = vpop.f32.mrf.mxu1 }
 0x130   : > { %v1247_v21 = vadd.f32 %v1243_v16, %v1207_v17 }
 0x138   : > { %v1364_v7 = vpop.f32.mrf.mxu2 }
 0x139   : > { %v1369_v15 = vadd.f32 %v1364_v7, %v1246_v12 }
 0x140   : > { %v1366_v20 = vpop.f32.mrf.mxu2 }
 0x141   : > { %v1370_v22 = vadd.f32 %v1366_v20, %v1247_v21 }
 0x143   : > { %v1487_v14 = vpop.f32.mrf.mxu3 }
 0x144   : > { %v1492_v18 = vadd.f32 %v1487_v14, %v1369_v15 }
 0x146   : > { %v1498_v23 = vadd.f32 %v1686_v19, %v1492_v18 }
 0x148   : > { %v1502_v26 = vmul.f32 0.2, %v1498_v23  ;;  %vm1500_vm10 = vcmp.ge.f32.partialorder %v1498_v23, 0.0 }
 0x14a   : > { %v1504_v29 = vsel %vm1500_vm10, %v1498_v23, %v1502_v26 }
 0x14b   : > { %v1489_v24 = vpop.f32.mrf.mxu3 }
 0x14c   : > { %v1493_v25 = vadd.f32 %v1489_v24, %v1370_v22 }
 0x14e   : > { %v1499_v27 = vadd.f32 %v1686_v19, %v1493_v25 }
 0x150   : > { %vm1501_vm11 = vcmp.ge.f32.partialorder %v1499_v27, 0.0  ;;  %v1503_v28 = vmul.f32 0.2, %v1499_v27 }
 0x152   : > { %v1505_v30 = vsel %vm1501_vm11, %v1499_v27, %v1503_v28 }
 0x153   : > { %v1675_v31 = vpack.c.bf16 %v1505_v30, %v1504_v29 }
 0x155   : > { %1676 = vst [vmem:[%s184_s6] sm:$0xff] %v1675_v31  }
 0x156 PF: > { %s13_s12 = sadd.s32 1, %s1693_s12  }
 0x157   : > { %p10_p4 = scmp.ge.s32.totalorder %s13_s12, 6  }
 0x159   :  { %12 = sbr.rel (!%p10_p4) target bundleno = 1 (0x1), region = 135 }

// kernel: _lambda_.6
= control target key start
LH: loop header
LB: loop body
LE: loop exit
PB: predicated region body
PF: predicated region fallthrough
CT: control target
= control target key end

     0   :  { %s1253_s12 = smov 0   ;;  %s1544_s0 = inlined_call_operand.vmem [shape: bf16[2,12,3,8], index: 0, kind: input, shape index: {}]   ;;  %s1545_s1 = inlined_call_operand.vmem [shape: bf16[16,8,128], index: 1, kind: input, shape index: {}]   ;;  %s1546_s2 = inlined_call_operand.vmem [shape: f32[2,1,128], index: 2, kind: input, shape index: {}]   ;;  %s1547_s3 = inlined_call_operand.vmem [shape: bf16[2,4,128], index: 3, kind: output, shape index: {}]  }
   0x1 LB: > { %s1131_s13 = sadd.s32 4294967295, %s1231_s12   ;;  %p1135_p0 = scmp.ge.s32.totalorder %s1231_s12, 1  ;;  %s1231_s12 = sphi %s1253_s12, %s13_s12  }
   0x2   : > { %p145_p1 = scmp.lt.s32.totalorder %s1231_s12, 3 }
   0x4   : > { %p146_p2 = pnand %p1135_p0, %p145_p1 }
   0x5   : > { %p171_p3 = scmp.lt.s32.totalorder (!%p146_p2), %s1131_s13, 1 }
   0x6   : > { %149 = sbr.rel (%p146_p2) target bundleno = 303 (0x12f), region = 32 }
   0xb   : > { %v1140_v0 = vld [vmem:[%s1545_s1 + $0x4] sm:$0xf]  ;;  %vm201_vm0 = vcmask 1043456   ;;  %v1145_v2 = vld [vmem:[%s1545_s1 + $0x8] sm:$0xf]  ;;  %s1555_s13 = smov (!%p171_p3, %s1131_s13), 1 }
   0xc   : > { %v203_v1 = vsel %vm201_vm0, %v1140_v0, 0  ;;  %v324_v3 = vsel %vm201_vm0, %v1145_v2, 0  ;;  %vm282_vm1 = vsmask.f32 256  ;;  %vm283_vm2 = vsmask.f32 1284  ;;  %s178_s27 = scalar_lea.vmem %s1546_s2, %s1555_s13 }
   0xd   : > { %212 = vmatpush.bf16.msra.mxu0 %v203_v1  ;;  %333 = vmatpush.bf16.msra.mxu2 %v324_v3  ;;  %vm285_vm3 = vsmask.f32 2312  ;;  %s1215_s18 = smul.u32 24, %s1555_s13  ;;  %vm284_vm4 = vmor %vm282_vm1, %vm283_vm2  ;;  %vm252_vm5 = vcmask 1040384   ;;  %vm256_vm6 = vcmask 1042434   ;;  %vm262_vm9 = vcmask 1041409  }
   0xe   : > { %vm286_vm7 = vmor %vm284_vm4, %vm285_vm3  ;;  %vm287_vm8 = vsmask.f32 3340  ;;  %v186_v4 = vld [vmem:[%s1545_s1] sm:$0xf]  ;;  %vm264_vm10 = vcmask 1043459   ;;  %vm266_vm11 = vcmask 1042433  }
   0xf   : > { %s1278_s23 = scalar_lea.vmem %s1544_s0, %s1215_s18  ;;  %v227_v5 = vsel %vm201_vm0, %v186_v4, 0  ;;  %vm289_vm12 = vsmask.f32 4368  ;;  %vm288_vm13 = vmor %vm286_vm7, %vm287_vm8  ;;  %v1151_v9 = vld [vmem:[%s1545_s1 + $0xc] sm:$0xf]  ;;  %vm198_vm14 = vcmask 64512  }
  0x10   : > { %v1138_v6 = vld [vmem:[%s1278_s23 + $0x6] sm:$0x1]  ;;  %v1139_v7 = vld [vmem:[%s1278_s23 + $0x8] sm:$0x1]  ;;  %236 = vmatpush.bf16.msra.mxu1 %v227_v5  ;;  %v242_v8 = vld [vmem:[%s1278_s23] sm:$0x3] }
  0x11   : > { %193 = vst [vmem:[#allocation1] ss:$9 sm:$0xff] %v1138_v6  ;;  %v243_v10 = vld [vmem:[%s1278_s23 + $0x2] sm:$0x3]  ;;  %v246_v11 = vrot.slane %v242_v8, 1  ;;  %v247_v12 = vrot.slane %v242_v8, 2  ;;  %vm1291_vm15 = vmor %vm288_vm13, %vm289_vm12 }
  0x12   : > { %196 = vst [vmem:[#allocation1 + $0x1] ss:$9 sm:$0xff] %v1139_v7  ;;  %v248_v13 = vrot.slane %v242_v8, 3  ;;  %v249_v14 = vrot.slane %v243_v10, 1  ;;  %v250_v15 = vrot.slane %v243_v10, 2  ;;  %v251_v16 = vrot.slane %v243_v10, 3 }
  0x13   : > { %v1147_v17 = vld [vmem:[%s1278_s23 + $0x6] sm:$0x3]  ;;  %v263_v18 = vsel %vm262_vm9, %v242_v8, %v246_v11  ;;  %vm291_vm1 = vsmask.f32 5396  ;;  %v401_v20 = vsel %vm201_vm0, %v1151_v9, 0  ;;  %v255_v21 = vsel %vm252_vm5, %v242_v8, %v246_v11  ;;  %s1137_s30 = sshll.u32 %s1555_s13, 1 }
  0x14   : > { %vm260_vm2 = vcmask 1041408   ;;  %v265_v22 = vsel %vm264_vm10, %v247_v12, %v248_v13  ;;  %vm293_vm3 = vsmask.f32 6424  ;;  %410 = vmatpush.bf16.msra.mxu3 %v401_v20  ;;  %v1148_v23 = vld [vmem:[%s1278_s23 + $0x8] sm:$0x3]  ;;  %v259_v24 = vsel %vm256_vm6, %v247_v12, %v248_v13  ;;  %vm1309_vm4 = vmor %vm1291_vm15, %vm291_vm1  ;;  %s182_s6 = scalar_lea.vmem %s1547_s3, %s1137_s30 }
  0x15   : > { %v267_v25 = vsel %vm266_vm11, %v263_v18, %v265_v22  ;;  %v277_v26 = vsel %vm262_vm9, %v243_v10, %v249_v14  ;;  %v344_v27 = vrot.slane %v1147_v17, 1  ;;  %v184_v28 = vld [vmem:[%s1278_s23] sm:$0x1]  ;;  %v272_v30 = vsel %vm252_vm5, %v243_v10, %v249_v14  ;;  %v1155_v34 = vld [vmem:[%s1545_s1 + $0x10] sm:$0xf]  ;;  %vm294_vm7 = vmor %vm1309_vm4, %vm293_vm3 }
  0x16   : > { %v269_v29 = vrot.slane %v267_v25, 1  ;;  %v275_v31 = vsel %vm256_vm6, %v250_v15, %v251_v16  ;;  %v278_v32 = vsel %vm264_vm10, %v250_v15, %v251_v16  ;;  %v185_v35 = vld [vmem:[%s1278_s23 + $0x2] sm:$0x1]  ;;  %v345_v37 = vrot.slane %v1147_v17, 2  ;;  %v1165_v57 = vld [vmem:[%s1545_s1 + $0x18] sm:$0xf] }
  0x17   : > { %v279_v36 = vsel %vm266_vm11, %v277_v26, %v278_v32  ;;  %v346_v38 = vrot.slane %v1147_v17, 3  ;;  %v347_v39 = vrot.slane %v1148_v23, 1  ;;  %v261_v41 = vsel %vm260_vm2, %v255_v21, %v259_v24  ;;  %v1161_v14 = vld [vmem:[%s1278_s23 + $0xc] sm:$0x3]  ;;  %v1162_v15 = vld [vmem:[%s1278_s23 + $0xe] sm:$0x3] }
  0x18   : > { %v281_v42 = vrot.slane %v279_v36, 1  ;;  %v348_v43 = vrot.slane %v1148_v23, 2  ;;  %v349_v44 = vrot.slane %v1148_v23, 3  ;;  %v276_v45 = vsel %vm260_vm2, %v272_v30, %v275_v31  ;;  %v1159_v16 = vld [vmem:[%s1545_s1 + $0x14] sm:$0xf] }
  0x19   : > { %v197_v40 = vld [vmem:[#allocation1] sm:$0xff]  ;;  %vm295_vm8 = vsmask.f32 7452  ;;  %v431_v46 = vsel %vm201_vm0, %v1155_v34, 0  ;;  %v357_v47 = vsel %vm262_vm9, %v1147_v17, %v344_v27  ;;  %v358_v48 = vsel %vm264_vm10, %v345_v37, %v346_v38  ;;  %v1153_v20 = vld [vmem:[%s1278_s23 + $0xc] sm:$0x1] }
  0x1a   : > { %1141 = vmatmul.msk.bf16.vlgmr.msra.gmra.mxu0 %vm198_vm14, %v197_v40  ;;  %219 = vst [vmem:[#allocation1] ss:$9 sm:$0xff] %v184_v28  ;;  %v297_v49 = vshrl.u32 %v261_v41, 16  ;;  %v302_v50 = vshll.u32 %v269_v29, 16  ;;  %v369_v51 = vsel %vm262_vm9, %v1148_v23, %v347_v39  ;;  %vm1328_vm12 = vmor %vm294_vm7, %vm295_vm8  ;;  %v305_v53 = vshrl.u32 %v276_v45, 16 }
  0x1b   : > { %222 = vst [vmem:[#allocation1 + $0x1] ss:$9 sm:$0xff] %v185_v35  ;;  %440 = vmatpush.bf16.msrb.mxu0 %v431_v46  ;;  %v310_v54 = vshll.u32 %v281_v42, 16  ;;  %v370_v55 = vsel %vm264_vm10, %v348_v43, %v349_v44  ;;  %v359_v56 = vsel %vm266_vm11, %v357_v47, %v358_v48  ;;  %v352_v58 = vsel %vm252_vm5, %v1147_v17, %v344_v27  ;;  %v1171_v17 = vld [vmem:[%s1545_s1 + $0x1c] sm:$0xf] }
  0x1c   : > { %v355_v59 = vsel %vm256_vm6, %v345_v37, %v346_v38  ;;  %v371_v60 = vsel %vm266_vm11, %v369_v51, %v370_v55  ;;  %v538_v61 = vsel %vm201_vm0, %v1165_v57, 0  ;;  %v304_v62 = vsel %vm1328_vm12, %v297_v49, %v302_v50  ;;  %v1154_v24 = vld [vmem:[%s1278_s23 + $0xe] sm:$0x1]  ;;  %v1167_v33 = vld [vmem:[%s1278_s23 + $0x12] sm:$0x3] }
  0x1d   : > { %v364_v63 = vsel %vm252_vm5, %v1148_v23, %v347_v39  ;;  %v367_v0 = vsel %vm256_vm6, %v348_v43, %v349_v44  ;;  %547 = vmatpush.bf16.msrb.mxu2 %v538_v61  ;;  %v312_v1 = vsel %vm1328_vm12, %v305_v53, %v310_v54  ;;  %v361_v2 = vrot.slane %v359_v56, 1  ;;  %v1168_v36 = vld [vmem:[%s1278_s23 + $0x14] sm:$0x3]  ;;  %v1175_v37 = vld [vmem:[%s1545_s1 + $0x20] sm:$0xf] }
  0x1e   : > { %v356_v4 = vsel %vm260_vm2, %v352_v58, %v355_v59  ;;  %v373_v5 = vrot.slane %v371_v60, 1  ;;  %v368_v6 = vsel %vm260_vm2, %v364_v63, %v367_v0  ;;  %v461_v18 = vsel %vm201_vm0, %v1159_v16, 0  ;;  %v1157_v42 = vld [vmem:[%s1278_s23 + $0x12] sm:$0x1]  ;;  %v1158_v47 = vld [vmem:[%s1278_s23 + $0x14] sm:$0x1] }
  0x1f   : > { %v374_v7 = vshrl.u32 %v356_v4, 16  ;;  %v379_v8 = vshll.u32 %v361_v2, 16  ;;  %v382_v9 = vshrl.u32 %v368_v6, 16  ;;  %v615_v19 = vsel %vm201_vm0, %v1171_v17, 0  ;;  %470 = vmatpush.bf16.msrb.mxu1 %v461_v18  ;;  %v1185_v2 = vld [vmem:[%s1545_s1 + $0x28] sm:$0xf] }
  0x20   : > { %v387_v10 = vshll.u32 %v373_v5, 16  ;;  %v481_v21 = vrot.slane %v1161_v14, 1  ;;  %v482_v22 = vrot.slane %v1161_v14, 2  ;;  %v483_v23 = vrot.slane %v1161_v14, 3  ;;  %624 = vmatpush.bf16.msrb.mxu3 %v615_v19 }
  0x21   : > { %v381_v11 = vsel %vm1328_vm12, %v374_v7, %v379_v8  ;;  %v484_v25 = vrot.slane %v1162_v15, 1  ;;  %v485_v26 = vrot.slane %v1162_v15, 2  ;;  %v486_v27 = vrot.slane %v1162_v15, 3 }
  0x22   : > { %v223_v3 = vld [vmem:[#allocation1] sm:$0xff]  ;;  %v389_v12 = vsel %vm1328_vm12, %v382_v9, %v387_v10  ;;  %v494_v29 = vsel %vm262_vm9, %v1161_v14, %v481_v21  ;;  %v495_v30 = vsel %vm264_vm10, %v482_v22, %v483_v23  ;;  %v489_v34 = vsel %vm252_vm5, %v1161_v14, %v481_v21 }
  0x23   : > { %316 = vst [vmem:[#allocation1] ss:$9 sm:$0xff] %v304_v62  ;;  %1142 = vmatmul.msk.bf16.vlgmr.msra.gmra.mxu1 %vm198_vm14, %v223_v3  ;;  %v506_v31 = vsel %vm262_vm9, %v1162_v15, %v484_v25  ;;  %v507_v32 = vsel %vm264_vm10, %v485_v26, %v486_v27  ;;  %v496_v35 = vsel %vm266_vm11, %v494_v29, %v495_v30  ;;  %v645_v41 = vsel %vm201_vm0, %v1175_v37, 0  ;;  %v1173_v29 = vld [vmem:[%s1278_s23 + $0x2] sm:$0x1] }
  0x24   : > { %319 = vst [vmem:[#allocation1 + $0x1] ss:$9 sm:$0xff] %v312_v1  ;;  %v492_v38 = vsel %vm256_vm6, %v482_v22, %v483_v23  ;;  %v501_v39 = vsel %vm252_vm5, %v1162_v15, %v484_v25  ;;  %v508_v40 = vsel %vm266_vm11, %v506_v31, %v507_v32  ;;  %v504_v43 = vsel %vm256_vm6, %v485_v26, %v486_v27  ;;  %v1181_v23 = vld [vmem:[%s1278_s23 + $0x2] sm:$0x3]  ;;  %v1179_v25 = vld [vmem:[%s1545_s1 + $0x24] sm:$0xf] }
  0x25   : > { %v558_v44 = vrot.slane %v1167_v33, 1  ;;  %v559_v45 = vrot.slane %v1167_v33, 2  ;;  %v560_v46 = vrot.slane %v1167_v33, 3  ;;  %654 = vmatpush.bf16.msra.mxu0 %v645_v41  ;;  %v498_v48 = vrot.slane %v496_v35, 1  ;;  %v1191_v26 = vld [vmem:[%s1545_s1 + $0x2c] sm:$0xf] }
  0x26   : > { %v561_v49 = vrot.slane %v1168_v36, 1  ;;  %v562_v50 = vrot.slane %v1168_v36, 2  ;;  %v563_v51 = vrot.slane %v1168_v36, 3  ;;  %v493_v54 = vsel %vm260_vm2, %v489_v34, %v492_v38 }
  0x27   : > { %v510_v55 = vrot.slane %v508_v40, 1  ;;  %v505_v56 = vsel %vm260_vm2, %v501_v39, %v504_v43  ;;  %v571_v57 = vsel %vm262_vm9, %v1167_v33, %v558_v44  ;;  %v572_v58 = vsel %vm264_vm10, %v559_v45, %v560_v46 }
  0x28   : > { %v511_v59 = vshrl.u32 %v493_v54, 16  ;;  %v516_v60 = vshll.u32 %v498_v48, 16  ;;  %v583_v61 = vsel %vm262_vm9, %v1168_v36, %v561_v49  ;;  %v584_v62 = vsel %vm264_vm10, %v562_v50, %v563_v51 }
  0x29   : > { %v519_v63 = vshrl.u32 %v505_v56, 16  ;;  %v524_v0 = vshll.u32 %v510_v55, 16  ;;  %v573_v1 = vsel %vm266_vm11, %v571_v57, %v572_v58  ;;  %v566_v3 = vsel %vm252_vm5, %v1167_v33, %v558_v44  ;;  %v1174_v33 = vld [vmem:[%s1278_s23 + $0x4] sm:$0x1]  ;;  %v1178_v57 = vld [vmem:[%s1278_s23 + $0xa] sm:$0x1] }
  0x2a   : > { %v569_v4 = vsel %vm256_vm6, %v559_v45, %v560_v46  ;;  %v585_v5 = vsel %vm266_vm11, %v583_v61, %v584_v62  ;;  %v752_v6 = vsel %vm201_vm0, %v1185_v2, 0  ;;  %v518_v7 = vsel %vm1328_vm12, %v511_v59, %v516_v60  ;;  %v1188_v45 = vld [vmem:[%s1278_s23 + $0xa] sm:$0x3]  ;;  %v1195_v46 = vld [vmem:[%s1545_s1 + $0x30] sm:$0xf] }
  0x2b   : > { %v320_v13 = vld [vmem:[#allocation1] sm:$0xff]  ;;  %v578_v8 = vsel %vm252_vm5, %v1168_v36, %v561_v49  ;;  %v581_v9 = vsel %vm256_vm6, %v562_v50, %v563_v51  ;;  %v526_v10 = vsel %vm1328_vm12, %v519_v63, %v524_v0  ;;  %v587_v14 = vrot.slane %v585_v5, 1  ;;  %v1177_v51 = vld [vmem:[%s1278_s23 + $0x8] sm:$0x1] }
  0x2c   : > { %1146 = vmatmul.msk.bf16.vlgmr.msra.gmra.mxu2 %vm198_vm14, %v320_v13  ;;  %393 = vst [vmem:[#allocation1] ss:$9 sm:$0xff] %v381_v11  ;;  %v575_v11 = vrot.slane %v573_v1, 1  ;;  %v570_v13 = vsel %vm260_vm2, %v566_v3, %v569_v4  ;;  %v582_v15 = vsel %vm260_vm2, %v578_v8, %v581_v9  ;;  %v675_v27 = vsel %vm201_vm0, %v1179_v25, 0 }
  0x2d   : > { %396 = vst [vmem:[#allocation1 + $0x1] ss:$9 sm:$0xff] %v389_v12  ;;  %761 = vmatpush.bf16.msra.mxu2 %v752_v6  ;;  %v588_v16 = vshrl.u32 %v570_v13, 16  ;;  %v596_v18 = vshrl.u32 %v582_v15, 16  ;;  %v601_v19 = vshll.u32 %v587_v14, 16  ;;  %v695_v30 = vrot.slane %v1181_v23, 1  ;;  %684 = vmatpush.bf16.msra.mxu1 %v675_v27 }
  0x2e   : > { %v593_v17 = vshll.u32 %v575_v11, 16  ;;  %v696_v31 = vrot.slane %v1181_v23, 2  ;;  %v697_v32 = vrot.slane %v1181_v23, 3  ;;  %v859_v50 = vsel %vm201_vm0, %v1195_v46, 0  ;;  %v1205_v13 = vld [vmem:[%s1545_s1 + $0x38] sm:$0xf] }
  0x2f   : > { %v603_v21 = vsel %vm1328_vm12, %v596_v18, %v601_v19  ;;  %v708_v38 = vsel %vm262_vm9, %v1181_v23, %v695_v30  ;;  %v703_v43 = vsel %vm252_vm5, %v1181_v23, %v695_v30  ;;  %v775_v59 = vrot.slane %v1188_v45, 1 }
  0x30   : > { %v709_v39 = vsel %vm264_vm10, %v696_v31, %v697_v32  ;;  %v776_v60 = vrot.slane %v1188_v45, 2  ;;  %v777_v61 = vrot.slane %v1188_v45, 3 }
  0x31   : > { %v710_v44 = vsel %vm266_vm11, %v708_v38, %v709_v39  ;;  %v797_v6 = vsel %vm262_vm9, %v1188_v45, %v775_v59  ;;  %v792_v19 = vsel %vm252_vm5, %v1188_v45, %v775_v59  ;;  %v1193_v38 = vld [vmem:[%s1278_s23 + $0xe] sm:$0x1]  ;;  %v1197_v59 = vld [vmem:[%s1278_s23 + $0x14] sm:$0x1] }
  0x32   : > { %v712_v58 = vrot.slane %v710_v44, 1 }
  0x34   : > { %v397_v28 = vld [vmem:[#allocation1] sm:$0xff]  ;;  %v730_v5 = vshll.u32 %v712_v58, 16 }
  0x35   : > { %1152 = vmatmul.msk.bf16.vlgmr.msra.gmra.mxu3 %vm198_vm14, %v397_v28  ;;  %423 = vst [vmem:[#allocation1] ss:$9 sm:$0xff] %v1153_v20  ;;  %v595_v20 = vsel %vm1328_vm12, %v588_v16, %v593_v17  ;;  %v829_v28 = vsel %vm201_vm0, %v1191_v26, 0  ;;  %v966_v17 = vsel %vm201_vm0, %v1205_v13, 0 }
  0x36   : > { %426 = vst [vmem:[#allocation1 + $0x1] ss:$9 sm:$0xff] %v1154_v24  ;;  %v1182_v24 = vld [vmem:[%s1278_s23 + $0x4] sm:$0x3]  ;;  %838 = vmatpush.bf16.msra.mxu3 %v829_v28 }
  0x37   : > { %v698_v34 = vrot.slane %v1182_v24, 1  ;;  %v699_v35 = vrot.slane %v1182_v24, 2  ;;  %v700_v36 = vrot.slane %v1182_v24, 3 }
  0x39   : > { %v720_v40 = vsel %vm262_vm9, %v1182_v24, %v698_v34  ;;  %v721_v41 = vsel %vm264_vm10, %v699_v35, %v700_v36  ;;  %v715_v48 = vsel %vm252_vm5, %v1182_v24, %v698_v34 }
  0x3a   : > { %v722_v49 = vsel %vm266_vm11, %v720_v40, %v721_v41 }
  0x3b   : > { %v724_v0 = vrot.slane %v722_v49, 1 }
  0x3d   : > { %v427_v53 = vld [vmem:[#allocation1] sm:$0xff]  ;;  %v738_v9 = vshll.u32 %v724_v0, 16  ;;  %v1198_v0 = vld [vmem:[%s1278_s23 + $0x16] sm:$0x1] }
  0x3e   : > { %1156 = vmatmul.msk.bf16.vlgmr.msrb.gmra.mxu0 %vm198_vm14, %v427_v53  ;;  %453 = vst [vmem:[#allocation1] ss:$9 sm:$0xff] %v1157_v42  ;;  %v1187_v42 = vld [vmem:[%s1278_s23 + $0x8] sm:$0x3]  ;;  %v718_v53 = vsel %vm256_vm6, %v699_v35, %v700_v36  ;;  %v1201_v36 = vld [vmem:[%s1278_s23 + $0xe] sm:$0x3] }
  0x3f   : > { %456 = vst [vmem:[#allocation1 + $0x1] ss:$9 sm:$0xff] %v1158_v47  ;;  %v706_v47 = vsel %vm256_vm6, %v696_v31, %v697_v32  ;;  %v772_v54 = vrot.slane %v1187_v42, 1  ;;  %v773_v55 = vrot.slane %v1187_v42, 2  ;;  %v774_v56 = vrot.slane %v1187_v42, 3  ;;  %868 = vmatpush.bf16.msrb.mxu0 %v859_v50 }
  0x40   : > { %v707_v63 = vsel %vm260_vm2, %v703_v43, %v706_v47  ;;  %v719_v1 = vsel %vm260_vm2, %v715_v48, %v718_v53  ;;  %v1211_v31 = vld [vmem:[%s1545_s1 + $0x3c] sm:$0xf]  ;;  %v909_v39 = vrot.slane %v1201_v36, 1  ;;  %v910_v40 = vrot.slane %v1201_v36, 2 }
  0x41   : > { %v785_v2 = vsel %vm262_vm9, %v1187_v42, %v772_v54  ;;  %v786_v3 = vsel %vm264_vm10, %v773_v55, %v774_v56  ;;  %v725_v4 = vshrl.u32 %v707_v63, 16  ;;  %v733_v8 = vshrl.u32 %v719_v1, 16 }
  0x42   : > { %v787_v11 = vsel %vm266_vm11, %v785_v2, %v786_v3  ;;  %v783_v14 = vsel %vm256_vm6, %v773_v55, %v774_v56  ;;  %v1043_v32 = vsel %vm201_vm0, %v1211_v31, 0  ;;  %v911_v41 = vrot.slane %v1201_v36, 3 }
  0x43   : > { %v732_v18 = vsel %vm1328_vm12, %v725_v4, %v730_v5  ;;  %v922_v47 = vsel %vm262_vm9, %v1201_v36, %v909_v39  ;;  %v917_v55 = vsel %vm252_vm5, %v1201_v36, %v909_v39 }
  0x44   : > { %v923_v48 = vsel %vm264_vm10, %v910_v40, %v911_v41  ;;  %v920_v56 = vsel %vm256_vm6, %v910_v40, %v911_v41 }
  0x45   : > { %v924_v53 = vsel %vm266_vm11, %v922_v47, %v923_v48 }
  0x46   : > { %v457_v12 = vld [vmem:[#allocation1] sm:$0xff]  ;;  %v926_v1 = vrot.slane %v924_v53, 1 }
  0x47   : > { %530 = vst [vmem:[#allocation1] ss:$9 sm:$0xff] %v518_v7  ;;  %1160 = vmatmul.msk.bf16.vlgmr.msrb.gmra.mxu1 %vm198_vm14, %v457_v12  ;;  %v798_v7 = vsel %vm264_vm10, %v776_v60, %v777_v61  ;;  %v1199_v12 = vld [vmem:[%s1545_s1 + $0x34] sm:$0xf] }
  0x48   : > { %533 = vst [vmem:[#allocation1 + $0x1] ss:$9 sm:$0xff] %v526_v10  ;;  %v780_v10 = vsel %vm252_vm5, %v1187_v42, %v772_v54  ;;  %v799_v15 = vsel %vm266_vm11, %v797_v6, %v798_v7  ;;  %v889_v16 = vsel %vm201_vm0, %v1199_v12, 0  ;;  %v1194_v42 = vld [vmem:[%s1278_s23 + $0x10] sm:$0x1]  ;;  %v921_v6 = vsel %vm260_vm2, %v917_v55, %v920_v56 }
  0x49   : > { %898 = vmatpush.bf16.msrb.mxu1 %v889_v16  ;;  %v784_v24 = vsel %vm260_vm2, %v780_v10, %v783_v14  ;;  %v801_v25 = vrot.slane %v799_v15, 1  ;;  %v1208_v54 = vld [vmem:[%s1278_s23 + $0x16] sm:$0x3]  ;;  %v944_v12 = vshll.u32 %v926_v1, 16 }
  0x4a   : > { %v802_v27 = vshrl.u32 %v784_v24, 16  ;;  %v989_v2 = vrot.slane %v1208_v54, 1  ;;  %v990_v3 = vrot.slane %v1208_v54, 2  ;;  %v991_v4 = vrot.slane %v1208_v54, 3 }
  0x4b   : > { %v815_v30 = vshll.u32 %v801_v25, 16 }
  0x4c   : > { %v1011_v13 = vsel %vm262_vm9, %v1208_v54, %v989_v2  ;;  %v1012_v14 = vsel %vm264_vm10, %v990_v3, %v991_v4 }
  0x4f   : > { %v534_v22 = vld [vmem:[#allocation1] sm:$0xff] }
  0x50   : > { %1166 = vmatmul.msk.bf16.vlgmr.msrb.gmra.mxu2 %vm198_vm14, %v534_v22  ;;  %607 = vst [vmem:[#allocation1] ss:$9 sm:$0xff] %v595_v20  ;;  %v795_v20 = vsel %vm256_vm6, %v776_v60, %v777_v61  ;;  %v789_v22 = vrot.slane %v787_v11, 1  ;;  %v939_v11 = vshrl.u32 %v921_v6, 16 }
  0x51   : > { %610 = vst [vmem:[#allocation1 + $0x1] ss:$9 sm:$0xff] %v603_v21  ;;  %975 = vmatpush.bf16.msrb.mxu2 %v966_v17  ;;  %v740_v21 = vsel %vm1328_vm12, %v733_v8, %v738_v9  ;;  %v796_v26 = vsel %vm260_vm2, %v792_v19, %v795_v20  ;;  %v1013_v20 = vsel %vm266_vm11, %v1011_v13, %v1012_v14 }
  0x52   : > { %v807_v28 = vshll.u32 %v789_v22, 16  ;;  %v1006_v22 = vsel %vm252_vm5, %v1208_v54, %v989_v2 }
  0x58   : > { %v611_v37 = vld [vmem:[#allocation1] sm:$0xff] }
  0x59   : > { %1172 = vmatmul.msk.bf16.vlgmr.msrb.gmra.mxu3 %vm198_vm14, %v611_v37  ;;  %637 = vst [vmem:[#allocation1] ss:$9 sm:$0xff] %v1173_v29  ;;  %v810_v29 = vshrl.u32 %v796_v26, 16  ;;  %v1202_v37 = vld [vmem:[%s1278_s23 + $0x10] sm:$0x3] }
  0x5a   : > { %640 = vst [vmem:[#allocation1 + $0x1] ss:$9 sm:$0xff] %v1174_v33  ;;  %v809_v33 = vsel %vm1328_vm12, %v802_v27, %v807_v28  ;;  %1052 = vmatpush.bf16.msrb.mxu3 %v1043_v32  ;;  %v912_v43 = vrot.slane %v1202_v37, 1  ;;  %v913_v44 = vrot.slane %v1202_v37, 2  ;;  %v914_v45 = vrot.slane %v1202_v37, 3 }
  0x5b   : > { %v817_v34 = vsel %vm1328_vm12, %v810_v29, %v815_v30  ;;  %v1015_v28 = vrot.slane %v1013_v20, 1 }
  0x5c   : > { %v934_v49 = vsel %vm262_vm9, %v1202_v37, %v912_v43  ;;  %v935_v50 = vsel %vm264_vm10, %v913_v44, %v914_v45  ;;  %v932_v60 = vsel %vm256_vm6, %v913_v44, %v914_v45 }
  0x5d   : > { %v936_v58 = vsel %vm266_vm11, %v934_v49, %v935_v50 }
  0x5e   : > { %v938_v7 = vrot.slane %v936_v58, 1 }
  0x60   : > { %v952_v16 = vshll.u32 %v938_v7, 16 }
  0x61   : > { %v641_v62 = vld [vmem:[#allocation1] sm:$0xff] }
  0x62   : > { %1176 = vmatmul.msk.bf16.vlgmr.msra.gmra.mxu0 %vm198_vm14, %v641_v62  ;;  %667 = vst [vmem:[#allocation1] ss:$9 sm:$0xff] %v1177_v51  ;;  %v1207_v51 = vld [vmem:[%s1278_s23 + $0x14] sm:$0x3] }
  0x63   : > { %670 = vst [vmem:[#allocation1 + $0x1] ss:$9 sm:$0xff] %v1178_v57  ;;  %v929_v57 = vsel %vm252_vm5, %v1202_v37, %v912_v43  ;;  %v986_v61 = vrot.slane %v1207_v51, 1  ;;  %v987_v62 = vrot.slane %v1207_v51, 2  ;;  %v988_v63 = vrot.slane %v1207_v51, 3 }
  0x64   : > { %v933_v8 = vsel %vm260_vm2, %v929_v57, %v932_v60 }
  0x65   : > { %v999_v9 = vsel %vm262_vm9, %v1207_v51, %v986_v61  ;;  %v1000_v10 = vsel %vm264_vm10, %v987_v62, %v988_v63  ;;  %v947_v15 = vshrl.u32 %v933_v8, 16  ;;  %v997_v19 = vsel %vm256_vm6, %v987_v62, %v988_v63 }
  0x66   : > { %v1001_v17 = vsel %vm266_vm11, %v999_v9, %v1000_v10 }
  0x67   : > { %v954_v24 = vsel %vm1328_vm12, %v947_v15, %v952_v16  ;;  %v1003_v25 = vrot.slane %v1001_v17, 1 }
  0x69   : > { %v1021_v31 = vshll.u32 %v1003_v25, 16 }
  0x6a   : > { %v671_v23 = vld [vmem:[#allocation1] sm:$0xff] }
  0x6b   : > { %744 = vst [vmem:[#allocation1] ss:$9 sm:$0xff] %v732_v18  ;;  %1180 = vmatmul.msk.bf16.vlgmr.msra.gmra.mxu1 %vm198_vm14, %v671_v23  ;;  %v994_v18 = vsel %vm252_vm5, %v1207_v51, %v986_v61  ;;  %v1009_v23 = vsel %vm256_vm6, %v990_v3, %v991_v4 }
  0x6c   : > { %747 = vst [vmem:[#allocation1 + $0x1] ss:$9 sm:$0xff] %v740_v21  ;;  %v946_v21 = vsel %vm1328_vm12, %v939_v11, %v944_v12  ;;  %v998_v27 = vsel %vm260_vm2, %v994_v18, %v997_v19  ;;  %v1010_v29 = vsel %vm260_vm2, %v1006_v22, %v1009_v23  ;;  %v1224_v18 = vld [vmem:[%s178_s27] ss:$0 sm:$0xff] }
  0x6d   : > { %v1016_v30 = vshrl.u32 %v998_v27, 16  ;;  %v1024_v32 = vshrl.u32 %v1010_v29, 16 }
  0x73   : > { %v748_v35 = vld [vmem:[#allocation1] sm:$0xff] }
  0x74   : > { %1186 = vmatmul.msk.bf16.vlgmr.msra.gmra.mxu2 %vm198_vm14, %v748_v35  ;;  %821 = vst [vmem:[#allocation1] ss:$9 sm:$0xff] %v809_v33  ;;  %v1029_v33 = vshll.u32 %v1015_v28, 16 }
  0x75   : > { %824 = vst [vmem:[#allocation1 + $0x1] ss:$9 sm:$0xff] %v817_v34  ;;  %v1023_v34 = vsel %vm1328_vm12, %v1016_v30, %v1021_v31 }
  0x76   : > { %v1031_v35 = vsel %vm1328_vm12, %v1024_v32, %v1029_v33 }
  0x7c   : > { %v825_v46 = vld [vmem:[#allocation1] sm:$0xff] }
  0x7d   : > { %1192 = vmatmul.msk.bf16.vlgmr.msra.gmra.mxu3 %vm198_vm14, %v825_v46  ;;  %851 = vst [vmem:[#allocation1] ss:$9 sm:$0xff] %v1193_v38 }
  0x7e   : > { %854 = vst [vmem:[#allocation1 + $0x1] ss:$9 sm:$0xff] %v1194_v42 }
  0x85   : > { %v855_v5 = vld [vmem:[#allocation1] sm:$0xff] }
  0x86   : > { %1196 = vmatmul.msk.bf16.vlgmr.msrb.gmra.mxu0 %vm198_vm14, %v855_v5  ;;  %881 = vst [vmem:[#allocation1] ss:$9 sm:$0xff] %v1197_v59 }
  0x87   : > { %884 = vst [vmem:[#allocation1 + $0x1] ss:$9 sm:$0xff] %v1198_v0 }
  0x8e   : > { %v885_v26 = vld [vmem:[#allocation1] sm:$0xff] }
  0x8f   : > { %1200 = vmatmul.msk.bf16.vlgmr.msrb.gmra.mxu1 %vm198_vm14, %v885_v26  ;;  %958 = vst [vmem:[#allocation1] ss:$9 sm:$0xff] %v946_v21 }
  0x90   : > { %961 = vst [vmem:[#allocation1 + $0x1] ss:$9 sm:$0xff] %v954_v24 }
  0x97   : > { %v962_v36 = vld [vmem:[#allocation1] sm:$0xff]  ;;  %v214_v37 = vpop.f32.mrf.mxu0 }
  0x98   : > { %1206 = vmatmul.msk.bf16.vlgmr.msrb.gmra.mxu2 %vm198_vm14, %v962_v36  ;;  %1035 = vst [vmem:[#allocation1] ss:$9 sm:$0xff] %v1023_v34 }
  0x99   : > { %1038 = vst [vmem:[#allocation1 + $0x1] ss:$9 sm:$0xff] %v1031_v35 }
  0x9f   : > { %v216_v38 = vpop.f32.mrf.mxu0 }
  0xa0   : > { %v1039_v39 = vld [vmem:[#allocation1] sm:$0xff]  ;;  %v238_v40 = vpop.f32.mrf.mxu1 }
  0xa1   : > { %1212 = vmatmul.msk.bf16.vlgmr.msrb.gmra.mxu3 %vm198_vm14, %v1039_v39  ;;  %v239_v41 = vadd.f32 %v238_v40, %v214_v37 }
  0xa8   : > { %v240_v42 = vpop.f32.mrf.mxu1 }
  0xaf   : > { %v335_v43 = vpop.f32.mrf.mxu2 }
  0xb0   : > { %v339_v52 = vadd.f32 %v335_v43, %v239_v41 }
  0xb7   : > { %v337_v44 = vpop.f32.mrf.mxu2 }
  0xb8   : > { %v412_v45 = vpop.f32.mrf.mxu3 }
  0xb9   : > { %v416_v46 = vadd.f32 %v412_v45, %v339_v52 }
  0xbb   : > { %v442_v47 = vpop.f32.mrf.mxu0 }
  0xbc   : > { %v446_v48 = vadd.f32 %v442_v47, %v416_v46 }
  0xc0   : > { %v414_v49 = vpop.f32.mrf.mxu3 }
  0xc3   : > { %v444_v50 = vpop.f32.mrf.mxu0 }
  0xc4   : > { %v472_v51 = vpop.f32.mrf.mxu1 }
  0xc5   : > { %v476_v53 = vadd.f32 %v472_v51, %v446_v48 }
  0xcc   : > { %v474_v54 = vpop.f32.mrf.mxu1 }
  0xd3   : > { %v549_v55 = vpop.f32.mrf.mxu2 }
  0xd4   : > { %v553_v4 = vadd.f32 %v549_v55, %v476_v53 }
  0xdb   : > { %v551_v56 = vpop.f32.mrf.mxu2 }
  0xdc   : > { %v626_v57 = vpop.f32.mrf.mxu3 }
  0xdd   : > { %v630_v7 = vadd.f32 %v626_v57, %v553_v4 }
  0xdf   : > { %v656_v58 = vpop.f32.mrf.mxu0 }
  0xe0   : > { %v660_v8 = vadd.f32 %v656_v58, %v630_v7 }
  0xe4   : > { %v628_v59 = vpop.f32.mrf.mxu3 }
  0xe7   : > { %v658_v60 = vpop.f32.mrf.mxu0 }
  0xe8   : > { %v686_v61 = vpop.f32.mrf.mxu1 }
  0xe9   : > { %v690_v10 = vadd.f32 %v686_v61, %v660_v8 }
  0xf0   : > { %v688_v62 = vpop.f32.mrf.mxu1 }
  0xf7   : > { %v763_v63 = vpop.f32.mrf.mxu2 }
  0xf8   : > { %v767_v11 = vadd.f32 %v763_v63, %v690_v10 }
  0xff   : > { %v765_v0 = vpop.f32.mrf.mxu2 }
 0x100   : > { %v840_v1 = vpop.f32.mrf.mxu3 }
 0x101   : > { %v844_v12 = vadd.f32 %v840_v1, %v767_v11 }
 0x103   : > { %v870_v2 = vpop.f32.mrf.mxu0 }
 0x104   : > { %v874_v14 = vadd.f32 %v870_v2, %v844_v12 }
 0x108   : > { %v842_v3 = vpop.f32.mrf.mxu3 }
 0x10b   : > { %v872_v5 = vpop.f32.mrf.mxu0 }
 0x10c   : > { %v900_v6 = vpop.f32.mrf.mxu1 }
 0x10d   : > { %v904_v15 = vadd.f32 %v900_v6, %v874_v14 }
 0x114   : > { %v902_v9 = vpop.f32.mrf.mxu1 }
 0x11b   : > { %v977_v13 = vpop.f32.mrf.mxu2 }
 0x11c   : > { %v981_v16 = vadd.f32 %v977_v13, %v904_v15 }
 0x123   : > { %v979_v17 = vpop.f32.mrf.mxu2 }
 0x124   : > { %v1054_v19 = vpop.f32.mrf.mxu3 }
 0x125   : > { %v1058_v20 = vadd.f32 %v1054_v19, %v981_v16 }
 0x127   : > { %v1063_v21 = vadd.f32 %v1224_v18, %v1058_v20 }
 0x129   : > { %vm1064_vm0 = vcmp.ge.f32.partialorder %v1063_v21, 0.0  ;;  %v1065_v22 = vmul.f32 0.2, %v1063_v21 }
 0x12b   : > { %v1066_v23 = vsel %vm1064_vm0, %v1063_v21, %v1065_v22 }
 0x12c   : > { %v1067_v24 = vpack.c.bf16 %v1066_v23, %v1066_v23  ;;  %v1056_v25 = vpop.f32.mrf.mxu3 }
 0x12e   : > { %1068 = vst [vmem:[%s182_s6] sm:$0x3] %v1067_v24 }
 0x12f PF: > { %s13_s12 = sadd.s32 1, %s1231_s12  }
 0x130   : > { %p10_p4 = scmp.ge.s32.totalorder %s13_s12, 4  }
 0x132   :  { %12 = sbr.rel (!%p10_p4) target bundleno = 1 (0x1), region = 103 }

// kernel: _lambda_.7
= control target key start
LH: loop header
LB: loop body
LE: loop exit
PB: predicated region body
PF: predicated region fallthrough
CT: control target
= control target key end

     0   :  { %s868_s12 = smov 0   ;;  %s1037_s0 = inlined_call_operand.vmem [shape: bf16[2,8,4,8], index: 0, kind: input, shape index: {}]   ;;  %s1038_s1 = inlined_call_operand.vmem [shape: bf16[10,8,128], index: 1, kind: input, shape index: {}]   ;;  %s1039_s2 = inlined_call_operand.vmem [shape: f32[2,1,128], index: 2, kind: input, shape index: {}]   ;;  %s1040_s3 = inlined_call_operand.vmem [shape: bf16[2,4,128], index: 3, kind: output, shape index: {}]  }
   0x1 LB: > { %s779_s13 = sadd.s32 4294967295, %s846_s12   ;;  %p783_p0 = scmp.ge.s32.totalorder %s846_s12, 1  ;;  %s846_s12 = sphi %s868_s12, %s13_s12  }
   0x2   : > { %p145_p1 = scmp.lt.s32.totalorder %s846_s12, 3 }
   0x4   : > { %p146_p2 = pnand %p783_p0, %p145_p1 }
   0x5   : > { %p171_p3 = scmp.lt.s32.totalorder (!%p146_p2), %s779_s13, 1 }
   0x6   : > { %149 = sbr.rel (%p146_p2) target bundleno = 276 (0x114), region = 32 }
   0xb   : > { %vm1041_vm0 = vcmask 1043456   ;;  %v792_v0 = vld [vmem:[%s1038_s1 + $0x8] sm:$0xf]  ;;  %v789_v1 = vld [vmem:[%s1038_s1 + $0x4] sm:$0xf]  ;;  %s1053_s13 = smov (!%p171_p3, %s779_s13), 1 }
   0xc   : > { %v329_v2 = vsel %vm1041_vm0, %v792_v0, 0  ;;  %v271_v3 = vsel %vm1041_vm0, %v789_v1, 0  ;;  %vm227_vm1 = vsmask.f32 256  ;;  %vm228_vm2 = vsmask.f32 1284  ;;  %s178_s15 = scalar_lea.vmem %s1039_s2, %s1053_s13 }
   0xd   : > { %338 = vmatpush.bf16.msra.mxu2 %v329_v2  ;;  %280 = vmatpush.bf16.msra.mxu0 %v271_v3  ;;  %vm230_vm3 = vsmask.f32 2312  ;;  %s830_s18 = sshll.u32 %s1053_s13, 4  ;;  %vm197_vm4 = vcmask 1040384   ;;  %vm201_vm5 = vcmask 1042434   ;;  %vm229_vm6 = vmor %vm227_vm1, %vm228_vm2  ;;  %vm205_vm8 = vcmask 1041408  }
   0xe   : > { %vm232_vm7 = vsmask.f32 3340  ;;  %s890_s21 = scalar_lea.vmem %s1037_s0, %s830_s18  ;;  %vm207_vm9 = vcmask 1041409   ;;  %vm209_vm10 = vcmask 1043459   ;;  %vm231_vm11 = vmor %vm229_vm6, %vm230_vm3  ;;  %vm234_vm12 = vsmask.f32 4368 }
   0xf   : > { %v187_v4 = vld [vmem:[%s890_s21] sm:$0x3]  ;;  %vm236_vm13 = vsmask.f32 5396  ;;  %vm238_vm14 = vsmask.f32 6424  ;;  %vm233_vm1 = vmor %vm231_vm11, %vm232_vm7 }
  0x10   : > { %v188_v5 = vld [vmem:[%s890_s21 + $0x2] sm:$0x3]  ;;  %v191_v6 = vrot.slane %v187_v4, 1  ;;  %v192_v7 = vrot.slane %v187_v4, 2  ;;  %v193_v8 = vrot.slane %v187_v4, 3  ;;  %vm211_vm15 = vcmask 1042433   ;;  %vm235_vm2 = vmor %vm233_vm1, %vm234_vm12 }
  0x11   : > { %v194_v9 = vrot.slane %v188_v5, 1  ;;  %v195_v10 = vrot.slane %v188_v5, 2  ;;  %v196_v11 = vrot.slane %v188_v5, 3  ;;  %vm240_vm0 = vsmask.f32 7452  ;;  %vm237_vm3 = vmor %vm235_vm2, %vm236_vm13  ;;  %s786_s16 = sshll.u32 %s1053_s13, 1 }
  0x12   : > { %v200_v12 = vsel %vm197_vm4, %v187_v4, %v191_v6  ;;  %v204_v13 = vsel %vm201_vm5, %v192_v7, %v193_v8  ;;  %v208_v14 = vsel %vm207_vm9, %v187_v4, %v191_v6  ;;  %v210_v15 = vsel %vm209_vm10, %v192_v7, %v193_v8  ;;  %vm239_vm6 = vmor %vm237_vm3, %vm238_vm14  ;;  %v186_v33 = vld [vmem:[%s1038_s1] sm:$0xf]  ;;  %v796_v34 = vld [vmem:[%s1038_s1 + $0xc] sm:$0xf]  ;;  %s182_s19 = scalar_lea.vmem %s1040_s3, %s786_s16 }
  0x13   : > { %v206_v16 = vsel %vm205_vm8, %v200_v12, %v204_v13  ;;  %v212_v17 = vsel %vm211_vm15, %v208_v14, %v210_v15  ;;  %v217_v18 = vsel %vm197_vm4, %v188_v5, %v194_v9  ;;  %v220_v19 = vsel %vm201_vm5, %v195_v10, %v196_v11  ;;  %vm910_vm7 = vmor %vm239_vm6, %vm240_vm0  ;;  %v184_v37 = vld [vmem:[%s890_s21] sm:$0x1]  ;;  %v185_v38 = vld [vmem:[%s890_s21 + $0x2] sm:$0x1] }
  0x14   : > { %v214_v20 = vrot.slane %v212_v17, 1  ;;  %v221_v21 = vsel %vm205_vm8, %v217_v18, %v220_v19  ;;  %v222_v22 = vsel %vm207_vm9, %v188_v5, %v194_v9  ;;  %v223_v23 = vsel %vm209_vm10, %v195_v10, %v196_v11  ;;  %v311_v40 = vld [vmem:[%s890_s21 + $0x2] sm:$0x2]  ;;  %v310_v41 = vld [vmem:[%s890_s21] sm:$0x2] }
  0x15   : > { %v224_v24 = vsel %vm211_vm15, %v222_v22, %v223_v23  ;;  %v242_v26 = vshrl.u32 %v206_v16, 16  ;;  %v250_v29 = vshrl.u32 %v221_v21, 16  ;;  %vm1044_vm0 = vcmask 1043456   ;;  %v798_v43 = vld [vmem:[%s890_s21 + $0x2] sm:$0x3] }
  0x16   : > { %v226_v27 = vrot.slane %v224_v24, 1  ;;  %v247_v28 = vshll.u32 %v214_v20, 16  ;;  %v295_v35 = vsel %vm1044_vm0, %v186_v33, 0  ;;  %vm1045_vm11 = vmmov %vm1044_vm0  ;;  %vm266_vm12 = vcmask 64512   ;;  %v799_v44 = vld [vmem:[%s890_s21 + $0x4] sm:$0x3] }
  0x17   : > { %v359_v36 = vsel %vm1045_vm11, %v796_v34, 0  ;;  %304 = vmatpush.bf16.msra.mxu1 %v295_v35  ;;  %v379_v46 = vrot.slane %v798_v43, 1  ;;  %v380_v47 = vrot.slane %v798_v43, 2  ;;  %v381_v48 = vrot.slane %v798_v43, 3  ;;  %v802_v60 = vld [vmem:[%s1038_s1 + $0x10] sm:$0xf]  ;;  %vm1046_vm13 = vmmov %vm1044_vm0 }
  0x18   : > { %v249_v30 = vsel %vm910_vm7, %v242_v26, %v247_v28  ;;  %v255_v31 = vshll.u32 %v226_v27, 16  ;;  %368 = vmatpush.bf16.msra.mxu3 %v359_v36  ;;  %v382_v49 = vrot.slane %v799_v44, 1  ;;  %v383_v50 = vrot.slane %v799_v44, 2  ;;  %v810_v61 = vld [vmem:[%s1038_s1 + $0x18] sm:$0xf]  ;;  %vm1047_vm14 = vmmov %vm1044_vm0 }
  0x19   : > { %261 = vst [vmem:[#allocation1] ss:$9 sm:$0xff] %v249_v30  ;;  %v384_v51 = vrot.slane %v799_v44, 3  ;;  %v392_v53 = vsel %vm207_vm9, %v798_v43, %v379_v46  ;;  %v393_v54 = vsel %vm209_vm10, %v380_v47, %v381_v48  ;;  %v387_v57 = vsel %vm197_vm4, %v798_v43, %v379_v46  ;;  %v806_v62 = vld [vmem:[%s1038_s1 + $0x14] sm:$0xf]  ;;  %vm1048_vm1 = vmmov %vm1044_vm0 }
  0x1a   : > { %v257_v32 = vsel %vm910_vm7, %v250_v29, %v255_v31  ;;  %v404_v55 = vsel %vm207_vm9, %v799_v44, %v382_v49  ;;  %v390_v58 = vsel %vm201_vm5, %v380_v47, %v381_v48  ;;  %v394_v59 = vsel %vm211_vm15, %v392_v53, %v393_v54  ;;  %v794_v3 = vld [vmem:[%s890_s21 + $0x2] sm:$0x1]  ;;  %v795_v6 = vld [vmem:[%s890_s21 + $0x4] sm:$0x1]  ;;  %v805_v19 = vld [vmem:[%s890_s21 + $0x4] sm:$0x2] }
  0x1b   : > { %264 = vst [vmem:[#allocation1 + $0x1] ss:$9 sm:$0xff] %v257_v32  ;;  %v405_v56 = vsel %vm209_vm10, %v383_v50, %v384_v51  ;;  %v436_v0 = vsel %vm1046_vm13, %v802_v60, 0  ;;  %v501_v1 = vsel %vm1047_vm14, %v810_v61, 0  ;;  %v471_v2 = vsel %vm1048_vm1, %v806_v62, 0  ;;  %vm1049_vm2 = vmmov %vm1044_vm0 }
  0x1c   : > { %v406_v63 = vsel %vm211_vm15, %v404_v55, %v405_v56  ;;  %v399_v4 = vsel %vm197_vm4, %v799_v44, %v382_v49  ;;  %v402_v5 = vsel %vm201_vm5, %v383_v50, %v384_v51  ;;  %445 = vmatpush.bf16.msrb.mxu0 %v436_v0  ;;  %510 = vmatpush.bf16.msrb.mxu2 %v501_v1  ;;  %v396_v7 = vrot.slane %v394_v59, 1  ;;  %v816_v20 = vld [vmem:[%s1038_s1 + $0x1c] sm:$0xf]  ;;  %v804_v21 = vld [vmem:[%s890_s21 + $0x2] sm:$0x2]  ;;  %vm1050_vm3 = vmmov %vm1044_vm0 }
  0x1d   : > { %480 = vmatpush.bf16.msrb.mxu1 %v471_v2  ;;  %v391_v9 = vsel %vm205_vm8, %v387_v57, %v390_v58  ;;  %v408_v10 = vrot.slane %v406_v63, 1  ;;  %v403_v11 = vsel %vm205_vm8, %v399_v4, %v402_v5  ;;  %v578_v22 = vsel %vm1049_vm2, %v816_v20, 0  ;;  %v812_v24 = vld [vmem:[%s890_s21 + $0x4] sm:$0x3]  ;;  %v813_v26 = vld [vmem:[%s890_s21 + $0x6] sm:$0x3]  ;;  %vm1051_vm6 = vmmov %vm1044_vm0 }
  0x1e   : > { %v409_v12 = vshrl.u32 %v391_v9, 16  ;;  %v414_v13 = vshll.u32 %v396_v7, 16  ;;  %v417_v14 = vshrl.u32 %v403_v11, 16  ;;  %587 = vmatpush.bf16.msrb.mxu3 %v578_v22  ;;  %v820_v27 = vld [vmem:[%s1038_s1 + $0x20] sm:$0xf]  ;;  %v521_v32 = vrot.slane %v812_v24, 1 }
  0x1f   : > { %v422_v15 = vshll.u32 %v408_v10, 16  ;;  %v826_v28 = vld [vmem:[%s1038_s1 + $0x24] sm:$0xf]  ;;  %v613_v29 = vsel %vm1050_vm3, %v820_v27, 0  ;;  %v522_v33 = vrot.slane %v812_v24, 2  ;;  %v523_v34 = vrot.slane %v812_v24, 3 }
  0x20   : > { %v416_v16 = vsel %vm910_vm7, %v409_v12, %v414_v13  ;;  %v691_v30 = vsel %vm1051_vm6, %v826_v28, 0  ;;  %v524_v35 = vrot.slane %v813_v26, 1  ;;  %v525_v36 = vrot.slane %v813_v26, 2  ;;  %v808_v47 = vld [vmem:[%s890_s21 + $0x4] sm:$0x1] }
  0x21   : > { %v424_v17 = vsel %vm910_vm7, %v417_v14, %v422_v15  ;;  %v529_v44 = vsel %vm197_vm4, %v812_v24, %v521_v32  ;;  %v809_v50 = vld [vmem:[%s890_s21 + $0x6] sm:$0x1]  ;;  %v819_v63 = vld [vmem:[%s890_s21 + $0x6] sm:$0x2]  ;;  %v822_v0 = vld [vmem:[%s890_s21 + $0xa] sm:$0x3] }
  0x22   : > { %v265_v39 = vld [vmem:[#allocation1] sm:$0xff]  ;;  %v541_v48 = vsel %vm197_vm4, %v813_v26, %v524_v35  ;;  %v823_v1 = vld [vmem:[%s890_s21 + $0xc] sm:$0x3]  ;;  %v634_v2 = vrot.slane %v822_v0, 1  ;;  %v636_v4 = vrot.slane %v822_v0, 3 }
  0x23   : > { %287 = vst [vmem:[#allocation1] ss:$9 sm:$0xff] %v184_v37  ;;  %790 = vmatmul.msk.bf16.vlgmr.msra.gmra.mxu0 %vm266_vm12, %v265_v39  ;;  %v526_v37 = vrot.slane %v813_v26, 3  ;;  %v534_v39 = vsel %vm207_vm9, %v812_v24, %v521_v32  ;;  %v818_v5 = vld [vmem:[%s890_s21 + $0x4] sm:$0x2]  ;;  %v638_v7 = vrot.slane %v823_v1, 2 }
  0x24   : > { %290 = vst [vmem:[#allocation1 + $0x1] ss:$9 sm:$0xff] %v185_v38  ;;  %622 = vmatpush.bf16.msra.mxu0 %v613_v29  ;;  %v647_v10 = vsel %vm207_vm9, %v822_v0, %v634_v2  ;;  %v642_v15 = vsel %vm197_vm4, %v822_v0, %v634_v2 }
  0x25   : > { %317 = vst [vmem:[#allocation1 + $0x10] sm:$0xff] %v311_v40  ;;  %v535_v40 = vsel %vm209_vm10, %v522_v33, %v523_v34  ;;  %v544_v49 = vsel %vm201_vm5, %v525_v36, %v526_v37 }
  0x26   : > { %v536_v43 = vsel %vm211_vm15, %v534_v39, %v535_v40  ;;  %v545_v55 = vsel %vm205_vm8, %v541_v48, %v544_v49 }
  0x27   : > { %v538_v51 = vrot.slane %v536_v43, 1  ;;  %v559_v58 = vshrl.u32 %v545_v55, 16 }
  0x29   : > { %v556_v57 = vshll.u32 %v538_v51, 16 }
  0x2b   : > { %v291_v42 = vld [vmem:[#allocation1] sm:$0xff] }
  0x2c   : > { %313 = vst [vmem:[#allocation1] sm:$0xff] %v310_v41  ;;  %791 = vmatmul.msk.bf16.vlgmr.msra.gmra.mxu1 %vm266_vm12, %v291_v42  ;;  %v319_v45 = vld [vmem:[#allocation1 + $0x11] ss:$2 sm:$0xff]  ;;  %v546_v41 = vsel %vm207_vm9, %v813_v26, %v524_v35  ;;  %v547_v42 = vsel %vm209_vm10, %v525_v36, %v526_v37 }
  0x2d   : > { %700 = vmatpush.bf16.msra.mxu1 %v691_v30  ;;  %v548_v46 = vsel %vm211_vm15, %v546_v41, %v547_v42 }
  0x2e   : > { %v550_v54 = vrot.slane %v548_v46, 1 }
  0x30   : > { %v564_v59 = vshll.u32 %v550_v54, 16 }
  0x32   : > { %v566_v61 = vsel %vm910_vm7, %v559_v58, %v564_v59 }
  0x33   : > { %v315_v52 = vld [vmem:[#allocation1 + $0x1] ss:$2 sm:$0xff] }
  0x34   : > { %322 = vst [vmem:[#allocation1] ss:$9 sm:$0xff] %v315_v52 }
  0x35   : > { %324 = vst [vmem:[#allocation1 + $0x1] ss:$9 sm:$0xff] %v319_v45  ;;  %v532_v45 = vsel %vm201_vm5, %v522_v33, %v523_v34 }
  0x36   : > { %v533_v53 = vsel %vm205_vm8, %v529_v44, %v532_v45 }
  0x37   : > { %v551_v56 = vshrl.u32 %v533_v53, 16 }
  0x39   : > { %v558_v60 = vsel %vm910_vm7, %v551_v56, %v556_v57 }
  0x3c   : > { %v325_v8 = vld [vmem:[#allocation1] sm:$0xff] }
  0x3d   : > { %793 = vmatmul.msk.bf16.vlgmr.msra.gmra.mxu2 %vm266_vm12, %v325_v8  ;;  %351 = vst [vmem:[#allocation1] ss:$9 sm:$0xff] %v794_v3  ;;  %v635_v3 = vrot.slane %v822_v0, 2  ;;  %v639_v8 = vrot.slane %v823_v1, 3 }
  0x3e   : > { %354 = vst [vmem:[#allocation1 + $0x1] ss:$9 sm:$0xff] %v795_v6  ;;  %v637_v6 = vrot.slane %v823_v1, 1 }
  0x3f   : > { %v648_v11 = vsel %vm209_vm10, %v635_v3, %v636_v4  ;;  %v660_v13 = vsel %vm209_vm10, %v638_v7, %v639_v8  ;;  %v657_v20 = vsel %vm201_vm5, %v638_v7, %v639_v8 }
  0x40   : > { %v659_v12 = vsel %vm207_vm9, %v823_v1, %v637_v6  ;;  %v649_v14 = vsel %vm211_vm15, %v647_v10, %v648_v11 }
  0x45   : > { %v355_v18 = vld [vmem:[#allocation1] sm:$0xff] }
  0x46   : > { %797 = vmatmul.msk.bf16.vlgmr.msra.gmra.mxu3 %vm266_vm12, %v355_v18  ;;  %428 = vst [vmem:[#allocation1] ss:$9 sm:$0xff] %v416_v16  ;;  %v645_v16 = vsel %vm201_vm5, %v635_v3, %v636_v4 }
  0x47   : > { %431 = vst [vmem:[#allocation1 + $0x1] ss:$9 sm:$0xff] %v424_v17  ;;  %v661_v17 = vsel %vm211_vm15, %v659_v12, %v660_v13 }
  0x48   : > { %459 = vst [vmem:[#allocation1 + $0x10] sm:$0xff] %v805_v19  ;;  %v654_v19 = vsel %vm197_vm4, %v823_v1, %v637_v6  ;;  %v663_v24 = vrot.slane %v661_v17, 1 }
  0x49   : > { %v658_v26 = vsel %vm205_vm8, %v654_v19, %v657_v20 }
  0x4a   : > { %v672_v29 = vshrl.u32 %v658_v26, 16  ;;  %v677_v30 = vshll.u32 %v663_v24, 16 }
  0x4c   : > { %v679_v32 = vsel %vm910_vm7, %v672_v29, %v677_v30 }
  0x4e   : > { %v432_v23 = vld [vmem:[#allocation1] sm:$0xff] }
  0x4f   : > { %455 = vst [vmem:[#allocation1] sm:$0xff] %v804_v21  ;;  %803 = vmatmul.msk.bf16.vlgmr.msrb.gmra.mxu0 %vm266_vm12, %v432_v23  ;;  %v461_v31 = vld [vmem:[#allocation1 + $0x11] ss:$2 sm:$0xff]  ;;  %v651_v21 = vrot.slane %v649_v14, 1  ;;  %v646_v23 = vsel %vm205_vm8, %v642_v15, %v645_v16 }
  0x50   : > { %v664_v27 = vshrl.u32 %v646_v23, 16 }
  0x51   : > { %v669_v28 = vshll.u32 %v651_v21, 16 }
  0x56   : > { %v457_v38 = vld [vmem:[#allocation1 + $0x1] ss:$2 sm:$0xff] }
  0x57   : > { %464 = vst [vmem:[#allocation1] ss:$9 sm:$0xff] %v457_v38 }
  0x58   : > { %466 = vst [vmem:[#allocation1 + $0x1] ss:$9 sm:$0xff] %v461_v31  ;;  %v671_v31 = vsel %vm910_vm7, %v664_v27, %v669_v28 }
  0x5f   : > { %v467_v52 = vld [vmem:[#allocation1] sm:$0xff] }
  0x60   : > { %493 = vst [vmem:[#allocation1] ss:$9 sm:$0xff] %v808_v47  ;;  %807 = vmatmul.msk.bf16.vlgmr.msrb.gmra.mxu1 %vm266_vm12, %v467_v52 }
  0x61   : > { %496 = vst [vmem:[#allocation1 + $0x1] ss:$9 sm:$0xff] %v809_v50 }
  0x68   : > { %v497_v62 = vld [vmem:[#allocation1] sm:$0xff] }
  0x69   : > { %811 = vmatmul.msk.bf16.vlgmr.msrb.gmra.mxu2 %vm266_vm12, %v497_v62  ;;  %570 = vst [vmem:[#allocation1] ss:$9 sm:$0xff] %v558_v60  ;;  %v839_v60 = vld [vmem:[%s178_s15] ss:$0 sm:$0xff] }
  0x6a   : > { %573 = vst [vmem:[#allocation1 + $0x1] ss:$9 sm:$0xff] %v566_v61 }
  0x6b   : > { %601 = vst [vmem:[#allocation1 + $0x10] sm:$0xff] %v819_v63 }
  0x71   : > { %v574_v9 = vld [vmem:[#allocation1] sm:$0xff] }
  0x72   : > { %817 = vmatmul.msk.bf16.vlgmr.msrb.gmra.mxu3 %vm266_vm12, %v574_v9  ;;  %597 = vst [vmem:[#allocation1] sm:$0xff] %v818_v5  ;;  %v603_v18 = vld [vmem:[#allocation1 + $0x11] ss:$2 sm:$0xff] }
  0x79   : > { %v599_v22 = vld [vmem:[#allocation1 + $0x1] ss:$2 sm:$0xff] }
  0x7a   : > { %606 = vst [vmem:[#allocation1] ss:$9 sm:$0xff] %v599_v22 }
  0x7b   : > { %608 = vst [vmem:[#allocation1 + $0x1] ss:$9 sm:$0xff] %v603_v18 }
  0x82   : > { %v609_v33 = vld [vmem:[#allocation1] sm:$0xff] }
  0x83   : > { %821 = vmatmul.msk.bf16.vlgmr.msra.gmra.mxu0 %vm266_vm12, %v609_v33  ;;  %683 = vst [vmem:[#allocation1] ss:$9 sm:$0xff] %v671_v31 }
  0x84   : > { %686 = vst [vmem:[#allocation1 + $0x1] ss:$9 sm:$0xff] %v679_v32 }
  0x8b   : > { %v687_v34 = vld [vmem:[#allocation1] sm:$0xff] }
  0x8c   : > { %827 = vmatmul.msk.bf16.vlgmr.msra.gmra.mxu1 %vm266_vm12, %v687_v34 }
  0xa0   : > { %v282_v35 = vpop.f32.mrf.mxu0 }
  0xa8   : > { %v284_v36 = vpop.f32.mrf.mxu0 }
  0xa9   : > { %v306_v37 = vpop.f32.mrf.mxu1 }
  0xaa   : > { %v307_v38 = vadd.f32 %v306_v37, %v282_v35 }
  0xb1   : > { %v308_v39 = vpop.f32.mrf.mxu1 }
  0xc0   : > { %v340_v40 = vpop.f32.mrf.mxu2 }
  0xc1   : > { %v344_v48 = vadd.f32 %v340_v40, %v307_v38 }
  0xc8   : > { %v342_v25 = vpop.f32.mrf.mxu2 }
  0xc9   : > { %v370_v41 = vpop.f32.mrf.mxu3 }
  0xca   : > { %v374_v51 = vadd.f32 %v370_v41, %v344_v48 }
  0xcc   : > { %v447_v42 = vpop.f32.mrf.mxu0 }
  0xcd   : > { %v451_v52 = vadd.f32 %v447_v42, %v374_v51 }
  0xd1   : > { %v372_v43 = vpop.f32.mrf.mxu3 }
  0xd4   : > { %v449_v44 = vpop.f32.mrf.mxu0 }
  0xdd   : > { %v482_v45 = vpop.f32.mrf.mxu1 }
  0xde   : > { %v486_v54 = vadd.f32 %v482_v45, %v451_v52 }
  0xe5   : > { %v484_v46 = vpop.f32.mrf.mxu1 }
  0xec   : > { %v512_v47 = vpop.f32.mrf.mxu2 }
  0xed   : > { %v516_v56 = vadd.f32 %v512_v47, %v486_v54 }
  0xf4   : > { %v514_v49 = vpop.f32.mrf.mxu2 }
  0xf5   : > { %v589_v50 = vpop.f32.mrf.mxu3 }
  0xf6   : > { %v593_v57 = vadd.f32 %v589_v50, %v516_v56 }
  0xfd   : > { %v591_v53 = vpop.f32.mrf.mxu3 }
 0x100   : > { %v624_v55 = vpop.f32.mrf.mxu0 }
 0x101   : > { %v628_v58 = vadd.f32 %v624_v55, %v593_v57 }
 0x108   : > { %v626_v59 = vpop.f32.mrf.mxu0 }
 0x109   : > { %v702_v61 = vpop.f32.mrf.mxu1 }
 0x10a   : > { %v706_v62 = vadd.f32 %v702_v61, %v628_v58 }
 0x10c   : > { %v711_v63 = vadd.f32 %v839_v60, %v706_v62 }
 0x10e   : > { %vm712_vm4 = vcmp.ge.f32.partialorder %v711_v63, 0.0  ;;  %v713_v0 = vmul.f32 0.2, %v711_v63 }
 0x110   : > { %v714_v1 = vsel %vm712_vm4, %v711_v63, %v713_v0 }
 0x111   : > { %v715_v2 = vpack.c.bf16 %v714_v1, %v714_v1  ;;  %v704_v3 = vpop.f32.mrf.mxu1 }
 0x113   : > { %716 = vst [vmem:[%s182_s19] sm:$0x3] %v715_v2 }
 0x114 PF: > { %s13_s12 = sadd.s32 1, %s846_s12  }
 0x115   : > { %p10_p4 = scmp.ge.s32.totalorder %s13_s12, 4  }
 0x117   :  { %12 = sbr.rel (!%p10_p4) target bundleno = 1 (0x1), region = 93 }

</bundles_post_ra>
